<compile_context>
chip_gen: v7x
topology: tpu7x:2x2x1
jax: 0.10.0
libtpu: 0.0.40
codegen_flags: <defaults>
</compile_context>

<pallas_src>
import functools

import jax
import jax.numpy as jnp
from jax import lax
from jax.experimental import pallas as pl
from jax.experimental.pallas import tpu as pltpu


# -----------------------------------------------------------------------------
# Pallas kernel: B images per grid step; all 4 branches fused.
# -----------------------------------------------------------------------------
def _inception_a_kernel(x_ref,
                        wA_ref, bA_ref,            # fused stage-1 weight / bias
                        w3b_ref, c3b_ref,          # branch3 3x3
                        w4b_ref, c4b_ref,          # branch4 first 3x3
                        w4c_ref, c4c_ref,          # branch4 second 3x3
                        o_ref,
                        *, splits, compute_dtype):
    b1, b2, b3n1, b4n1 = splits
    B, H, W, Cin = x_ref.shape
    M = B * H * W
    Cpad = o_ref.shape[-1]

    def im2col(t):
        # (B, H, W, C) -> (B*H*W, 9*C), taps ordered (dy, dx) row-major, channel minor.
        C = t.shape[-1]
        tp = jnp.pad(t, ((0, 0), (1, 1), (1, 1), (0, 0)))
        cols = [tp[:, dy:dy + H, dx:dx + W, :]
                for dy in range(3) for dx in range(3)]
        return jnp.concatenate(cols, axis=-1).reshape(M, 9 * C)

    def mm_bias_relu(a, w_ref, b_ref):
        # single MXU matmul (K accumulation on the MXU), f32 accumulator + bias, ReLU
        y = jnp.dot(a.astype(compute_dtype), w_ref[...].astype(compute_dtype),
                    preferred_element_type=jnp.float32) + b_ref[...]
        return jnp.maximum(y, 0.0)

    x = x_ref[...]                                   # (B, H, W, Cin) f32

    # ---- stage 1: branch1 (avgpool+1x1) + branch2/3/4 1x1s in ONE matmul -----
    px = im2col(x)                                   # (M, 9*Cin)
    s1 = mm_bias_relu(px, wA_ref, bA_ref)            # (M, b1+b2+b3n1+b4n1)

    out12 = s1[:, :b1 + b2]                          # branch1 ++ branch2 outputs
    t3 = s1[:, b1 + b2:b1 + b2 + b3n1]               # branch3 1x1 output
    t4 = s1[:, b1 + b2 + b3n1:]                      # branch4 1x1 output

    # ---- branch 3: 3x3 -------------------------------------------------------
    out3 = mm_bias_relu(im2col(t3.reshape(B, H, W, b3n1)), w3b_ref, c3b_ref)

    # ---- branch 4: 3x3 -> 3x3 ------------------------------------------------
    t4 = mm_bias_relu(im2col(t4.reshape(B, H, W, b4n1)), w4b_ref, c4b_ref)
    out4 = mm_bias_relu(im2col(t4.reshape(B, H, W, t4.shape[-1])), w4c_ref, c4c_ref)

    # ---- concat + zero-pad to a lane-dense (multiple of 128) store ----------
    cat = jnp.concatenate([out12, out3, out4], axis=-1)      # (M, Ctot)
    Ctot = cat.shape[-1]
    if Cpad > Ctot:
        cat = jnp.pad(cat, ((0, 0), (0, Cpad - Ctot)))
    o_ref[...] = cat.reshape(B, H, W, Cpad).astype(o_ref.dtype)


# -----------------------------------------------------------------------------
# Fused stage-1 weight construction (wrapper side, plain JAX)
# -----------------------------------------------------------------------------
def _build_stage1_params(P, cin):
    """Build the (9*Cin, b1+b2+b3n1+b4n1) fused weight and its bias.

    Column blocks: [branch1 avgpool+1x1 | branch2 1x1 | branch3 1x1 | branch4 1x1].
    Branch1 uses w1/9 on all 9 taps (avgpool folded); 1x1s use only the center tap.
    """
    def center_only(w):                                  # (cin, cout) -> (9*cin, cout)
        z = jnp.zeros((9, cin, w.shape[-1]), w.dtype)
        return z.at[4].set(w).reshape(9 * cin, -1)       # tap 4 == (dy=1, dx=1)

    w1_rep = jnp.tile(P["w1"][None] / 9.0, (9, 1, 1)).reshape(9 * cin, -1)
    wA = jnp.concatenate(
        [w1_rep, center_only(P["w2"]), center_only(P["w3a"]), center_only(P["w4a"])],
        axis=-1)
    bA = jnp.concatenate([P["c1"], P["c2"], P["c3a"], P["c4a"]], axis=-1)
    return wA.astype(jnp.float32), bA.astype(jnp.float32)


# -----------------------------------------------------------------------------
# Wrapper (NCHW in / NCHW out, like the PyTorch module)
# -----------------------------------------------------------------------------
def inception_a_pallas(x_nchw, P, *, block_images=None, compute_dtype=jnp.float32):
    x = jnp.transpose(x_nchw, (0, 2, 3, 1)).astype(jnp.float32)   # -> NHWC
    N, H, W, Cin = x.shape

    b1 = P["w1"].shape[-1]
    b2 = P["w2"].shape[-1]
    b3n1 = P["w3a"].shape[-1]
    b3n3 = P["w3b"].shape[-1]
    b4n1 = P["w4a"].shape[-1]
    b4n3 = P["w4c"].shape[-1]
    Ctot = b1 + b2 + b3n3 + b4n3
    Cpad = pl.cdiv(Ctot, 128) * 128                    # lane-dense output store

    # B images per block so B*H*W fills the 128-row MXU M dimension.
    # NOTE(v7x): with 2 TensorCores, keep grid = N // B >= 2 when N allows it
    # (or shrink B) so both cores get work; on v5e/v6e (1 TC) bigger B is better.
    if block_images is None:
        B = min(N, max(1, 128 // (H * W)))
        while N % B != 0:
            B -= 1
    else:
        B = block_images
    assert N % B == 0

    # Pre-fused / reshaped parameters (all matmul-ready).
    wA, bA = _build_stage1_params(P, Cin)
    w3b = P["w3b"].reshape(9 * b3n1, b3n3)
    w4b = P["w4b"].reshape(9 * b4n1, b4n3)
    w4c = P["w4c"].reshape(9 * b4n3, b4n3)
    params = [wA, bA, w3b, P["c3b"], w4b, P["c4b"], w4c, P["c4c"]]

    in_specs = [pl.BlockSpec((B, H, W, Cin), lambda n: (n, 0, 0, 0))]
    for arr in params:
        in_specs.append(pl.BlockSpec(arr.shape,
                                     lambda n, nd=arr.ndim: (0,) * nd))
    out_spec = pl.BlockSpec((B, H, W, Cpad), lambda n: (n, 0, 0, 0))

    kernel = functools.partial(_inception_a_kernel,
                               splits=(b1, b2, b3n1, b4n1),
                               compute_dtype=compute_dtype)

    # TODO(synk): for real Inception-A shapes (e.g. 35x35x384), tile spatially
    # (row blocks with a 1-row halo) and set vmem_limit_bytes explicitly for v7x.
    out_nhwc = pl.pallas_call(
        kernel,
        out_shape=jax.ShapeDtypeStruct((N, H, W, Cpad), jnp.float32),
        grid_spec=pltpu.PrefetchScalarGridSpec(
            num_scalar_prefetch=0,
            grid=(N // B,),
            in_specs=in_specs,
            out_specs=out_spec),
        compiler_params=pltpu.CompilerParams(
            dimension_semantics=("parallel",)),
    )(x, *params)

    return jnp.transpose(out_nhwc[..., :Ctot], (0, 3, 1, 2))      # -> NCHW


# -----------------------------------------------------------------------------
# Deterministic parameter construction (conv weight + folded BatchNorm)
# -----------------------------------------------------------------------------
def make_bnconv_params(key, cin, cout, ksize, eps=1e-5):
    k1, k2, k3, k4, k5 = jax.random.split(key, 5)
    w = jax.random.normal(k1, (cout, cin, ksize, ksize), jnp.float32) * 0.1  # OIHW
    gamma = jax.random.uniform(k2, (cout,), minval=0.5, maxval=1.5)
    beta = jax.random.normal(k3, (cout,)) * 0.1
    mean = jax.random.normal(k4, (cout,)) * 0.1
    var = jax.random.uniform(k5, (cout,), minval=0.5, maxval=1.5)
    scale = gamma / jnp.sqrt(var + eps)
    if ksize == 1:
        wf = (w[:, :, 0, 0] * scale[:, None]).T                    # (Cin, Cout)
    else:
        wf = jnp.transpose(w, (2, 3, 1, 0)) * scale                 # (kh,kw,Cin,Cout)
    bf = (beta - mean * scale).reshape(1, cout)
    return wf.astype(jnp.float32), bf.astype(jnp.float32)


# -----------------------------------------------------------------------------
# Pure-JAX reference (same folded, UNFUSED params) for verification
# -----------------------------------------------------------------------------
def ref_forward(x_nchw, P):
    x = jnp.transpose(x_nchw, (0, 2, 3, 1)).astype(jnp.float32)

    def c1x1(t, w, b):
        return jax.nn.relu(jnp.einsum("nhwc,co->nhwo", t, w) + b.reshape(1, 1, 1, -1))

    def c3x3(t, w, b):
        y = lax.conv_general_dilated(t, w, (1, 1), ((1, 1), (1, 1)),
                                     dimension_numbers=("NHWC", "HWIO", "NHWC"))
        return jax.nn.relu(y + b.reshape(1, 1, 1, -1))

    pool = lax.reduce_window(x, 0.0, lax.add, (1, 3, 3, 1), (1, 1, 1, 1),
                             ((0, 0), (1, 1), (1, 1), (0, 0))) / 9.0
    o1 = c1x1(pool, P["w1"], P["c1"])
    o2 = c1x1(x, P["w2"], P["c2"])
    o3 = c3x3(c1x1(x, P["w3a"], P["c3a"]), P["w3b"], P["c3b"])
    t = c1x1(x, P["w4a"], P["c4a"])
    t = c3x3(t, P["w4b"], P["c4b"])
    o4 = c3x3(t, P["w4c"], P["c4c"])
    out = jnp.concatenate([o1, o2, o3, o4], axis=-1)
    return jnp.transpose(out, (0, 3, 1, 2))


if __name__ == "__main__":
    # Small shapes consistent with the module: N=2, Cin=8, 8x8 spatial.
    N, Cin, H, W = 2, 8, 8, 8
    b1, b2, b3_n1, b3_n3, b4_n1, b4_n3 = 8, 8, 8, 12, 8, 12

    root = jax.random.PRNGKey(0)
    kx, k1, k2, k3a, k3b, k4a, k4b, k4c = jax.random.split(root, 8)

    x = jax.random.normal(kx, (N, Cin, H, W), jnp.float32)

    P = {}
    P["w1"], P["c1"] = make_bnconv_params(k1, Cin, b1, 1)
    P["w2"], P["c2"] = make_bnconv_params(k2, Cin, b2, 1)
    P["w3a"], P["c3a"] = make_bnconv_params(k3a, Cin, b3_n1, 1)
    P["w3b"], P["c3b"] = make_bnconv_params(k3b, b3_n1, b3_n3, 3)
    P["w4a"], P["c4a"] = make_bnconv_params(k4a, Cin, b4_n1, 1)
    P["w4b"], P["c4b"] = make_bnconv_params(k4b, b4_n1, b4_n3, 3)
    P["w4c"], P["c4c"] = make_bnconv_params(k4c, b4_n3, b4_n3, 3)

    # f32 matmul inputs so the strict 1e-4 check vs. the f32 reference holds;
    # pass compute_dtype=jnp.bfloat16 for native-MXU throughput at ~1e-2 accuracy.
    out = inception_a_pallas(x, P, compute_dtype=jnp.float32)
    out = jax.block_until_ready(out)

    ref = jax.block_until_ready(ref_forward(x, P))
    assert out.shape == (N, b1 + b2 + b3_n3 + b4_n3, H, W), out.shape
    assert jnp.allclose(out, ref, atol=1e-4, rtol=1e-4), float(jnp.max(jnp.abs(out - ref)))

    print("KERNEL_OK")
</pallas_src>

<mosaic_0001>
module attributes {stable_mosaic.version = 11 : i64} {
  func.func @_inception_a_kernel(%arg0: i32, %arg1: memref<2x8x8x8xf32, #tpu.memory_space<vmem>>, %arg2: memref<72x32xf32, #tpu.memory_space<vmem>>, %arg3: memref<1x32xf32, #tpu.memory_space<vmem>>, %arg4: memref<72x12xf32, #tpu.memory_space<vmem>>, %arg5: memref<1x12xf32, #tpu.memory_space<vmem>>, %arg6: memref<72x12xf32, #tpu.memory_space<vmem>>, %arg7: memref<1x12xf32, #tpu.memory_space<vmem>>, %arg8: memref<108x12xf32, #tpu.memory_space<vmem>>, %arg9: memref<1x12xf32, #tpu.memory_space<vmem>>, %arg10: memref<2x8x8x128xf32, #tpu.memory_space<vmem>>) attributes {dimension_semantics = [#tpu.dimension_semantics<parallel>], iteration_bounds = array<i64: 1>, scalar_prefetch = 0 : i64, scratch_operands = 0 : i64, tpu.core_type = #tpu.core_type<tc>, window_params = [{transform_indices = @transform_0, window_bounds = array<i64: 2, 8, 8, 8>}, {pipeline_mode = #tpu.pipeline_mode<synchronous>, transform_indices = @transform_1, window_bounds = array<i64: 72, 32>}, {pipeline_mode = #tpu.pipeline_mode<synchronous>, transform_indices = @transform_2, window_bounds = array<i64: 1, 32>}, {pipeline_mode = #tpu.pipeline_mode<synchronous>, transform_indices = @transform_3, window_bounds = array<i64: 72, 12>}, {pipeline_mode = #tpu.pipeline_mode<synchronous>, transform_indices = @transform_4, window_bounds = array<i64: 1, 12>}, {pipeline_mode = #tpu.pipeline_mode<synchronous>, transform_indices = @transform_5, window_bounds = array<i64: 72, 12>}, {pipeline_mode = #tpu.pipeline_mode<synchronous>, transform_indices = @transform_6, window_bounds = array<i64: 1, 12>}, {pipeline_mode = #tpu.pipeline_mode<synchronous>, transform_indices = @transform_7, window_bounds = array<i64: 108, 12>}, {pipeline_mode = #tpu.pipeline_mode<synchronous>, transform_indices = @transform_8, window_bounds = array<i64: 1, 12>}, {transform_indices = @transform_9, window_bounds = array<i64: 2, 8, 8, 128>}]} {
    %c0 = arith.constant 0 : index
    %c0_0 = arith.constant 0 : index
    %c0_1 = arith.constant 0 : index
    %c0_2 = arith.constant 0 : index
    %0 = vector.load %arg1[%c0, %c0_0, %c0_1, %c0_2] : memref<2x8x8x8xf32, #tpu.memory_space<vmem>>, vector<2x8x8x8xf32>
    %c0_i32 = arith.constant 0 : i32
    %1 = arith.sitofp %c0_i32 : i32 to f32
    %2 = vector.broadcast %1 : f32 to vector<2x1x8x8xf32>
    %3 = tpu.concatenate %2, %0 in 1 : vector<2x1x8x8xf32>, vector<2x8x8x8xf32> -> vector<2x9x8x8xf32>
    %4 = vector.broadcast %1 : f32 to vector<2x1x8x8xf32>
    %5 = tpu.concatenate %3, %4 in 1 : vector<2x9x8x8xf32>, vector<2x1x8x8xf32> -> vector<2x10x8x8xf32>
    %6 = vector.broadcast %1 : f32 to vector<2x10x1x8xf32>
    %7 = tpu.concatenate %6, %5 in 2 : vector<2x10x1x8xf32>, vector<2x10x8x8xf32> -> vector<2x10x9x8xf32>
    %8 = vector.broadcast %1 : f32 to vector<2x10x1x8xf32>
    %9 = tpu.concatenate %7, %8 in 2 : vector<2x10x9x8xf32>, vector<2x10x1x8xf32> -> vector<2x10x10x8xf32>
    %10 = vector.extract_strided_slice %9 {offsets = [0, 0, 0, 0], sizes = [2, 8, 8, 8], strides = [1, 1, 1, 1]} : vector<2x10x10x8xf32> to vector<2x8x8x8xf32>
    %11 = vector.extract_strided_slice %9 {offsets = [0, 0, 1, 0], sizes = [2, 8, 8, 8], strides = [1, 1, 1, 1]} : vector<2x10x10x8xf32> to vector<2x8x8x8xf32>
    %12 = vector.extract_strided_slice %9 {offsets = [0, 0, 2, 0], sizes = [2, 8, 8, 8], strides = [1, 1, 1, 1]} : vector<2x10x10x8xf32> to vector<2x8x8x8xf32>
    %13 = vector.extract_strided_slice %9 {offsets = [0, 1, 0, 0], sizes = [2, 8, 8, 8], strides = [1, 1, 1, 1]} : vector<2x10x10x8xf32> to vector<2x8x8x8xf32>
    %14 = vector.extract_strided_slice %9 {offsets = [0, 1, 1, 0], sizes = [2, 8, 8, 8], strides = [1, 1, 1, 1]} : vector<2x10x10x8xf32> to vector<2x8x8x8xf32>
    %15 = vector.extract_strided_slice %9 {offsets = [0, 1, 2, 0], sizes = [2, 8, 8, 8], strides = [1, 1, 1, 1]} : vector<2x10x10x8xf32> to vector<2x8x8x8xf32>
    %16 = vector.extract_strided_slice %9 {offsets = [0, 2, 0, 0], sizes = [2, 8, 8, 8], strides = [1, 1, 1, 1]} : vector<2x10x10x8xf32> to vector<2x8x8x8xf32>
    %17 = vector.extract_strided_slice %9 {offsets = [0, 2, 1, 0], sizes = [2, 8, 8, 8], strides = [1, 1, 1, 1]} : vector<2x10x10x8xf32> to vector<2x8x8x8xf32>
    %18 = vector.extract_strided_slice %9 {offsets = [0, 2, 2, 0], sizes = [2, 8, 8, 8], strides = [1, 1, 1, 1]} : vector<2x10x10x8xf32> to vector<2x8x8x8xf32>
    %19 = tpu.concatenate %10, %11, %12, %13, %14, %15, %16, %17, %18 in 3 : vector<2x8x8x8xf32>, vector<2x8x8x8xf32>, vector<2x8x8x8xf32>, vector<2x8x8x8xf32>, vector<2x8x8x8xf32>, vector<2x8x8x8xf32>, vector<2x8x8x8xf32>, vector<2x8x8x8xf32>, vector<2x8x8x8xf32> -> vector<2x8x8x72xf32>
    %20 = vector.shape_cast %19 : vector<2x8x8x72xf32> to vector<128x72xf32>
    %c0_3 = arith.constant 0 : index
    %c0_4 = arith.constant 0 : index
    %21 = vector.load %arg2[%c0_3, %c0_4] : memref<72x32xf32, #tpu.memory_space<vmem>>, vector<72x32xf32>
    %cst = arith.constant dense<0.000000e+00> : vector<128x32xf32>
    %22 = tpu.matmul %20, %21, %cst {dimension_numbers = #tpu.dot_dimension_numbers<[1], [0], [0], [1], [0, 0, 1, 1], [], []>} : vector<128x72xf32>, vector<72x32xf32>, vector<128x32xf32> -> vector<128x32xf32>
    %c0_5 = arith.constant 0 : index
    %c0_6 = arith.constant 0 : index
    %23 = vector.load %arg3[%c0_5, %c0_6] : memref<1x32xf32, #tpu.memory_space<vmem>>, vector<1x32xf32>
    %24 = vector.broadcast %23 : vector<1x32xf32> to vector<128x32xf32>
    %25 = arith.addf %22, %24 : vector<128x32xf32>
    %cst_7 = arith.constant 0.000000e+00 : f32
    %26 = vector.broadcast %cst_7 : f32 to vector<128x32xf32>
    %27 = arith.maximumf %25, %26 : vector<128x32xf32>
    %28 = vector.extract_strided_slice %27 {offsets = [0, 0], sizes = [128, 16], strides = [1, 1]} : vector<128x32xf32> to vector<128x16xf32>
    %29 = vector.extract_strided_slice %27 {offsets = [0, 16], sizes = [128, 8], strides = [1, 1]} : vector<128x32xf32> to vector<128x8xf32>
    %30 = vector.extract_strided_slice %27 {offsets = [0, 24], sizes = [128, 8], strides = [1, 1]} : vector<128x32xf32> to vector<128x8xf32>
    %31 = vector.shape_cast %29 : vector<128x8xf32> to vector<2x8x8x8xf32>
    %c0_i32_8 = arith.constant 0 : i32
    %32 = arith.sitofp %c0_i32_8 : i32 to f32
    %33 = vector.broadcast %32 : f32 to vector<2x1x8x8xf32>
    %34 = tpu.concatenate %33, %31 in 1 : vector<2x1x8x8xf32>, vector<2x8x8x8xf32> -> vector<2x9x8x8xf32>
    %35 = vector.broadcast %32 : f32 to vector<2x1x8x8xf32>
    %36 = tpu.concatenate %34, %35 in 1 : vector<2x9x8x8xf32>, vector<2x1x8x8xf32> -> vector<2x10x8x8xf32>
    %37 = vector.broadcast %32 : f32 to vector<2x10x1x8xf32>
    %38 = tpu.concatenate %37, %36 in 2 : vector<2x10x1x8xf32>, vector<2x10x8x8xf32> -> vector<2x10x9x8xf32>
    %39 = vector.broadcast %32 : f32 to vector<2x10x1x8xf32>
    %40 = tpu.concatenate %38, %39 in 2 : vector<2x10x9x8xf32>, vector<2x10x1x8xf32> -> vector<2x10x10x8xf32>
    %41 = vector.extract_strided_slice %40 {offsets = [0, 0, 0, 0], sizes = [2, 8, 8, 8], strides = [1, 1, 1, 1]} : vector<2x10x10x8xf32> to vector<2x8x8x8xf32>
    %42 = vector.extract_strided_slice %40 {offsets = [0, 0, 1, 0], sizes = [2, 8, 8, 8], strides = [1, 1, 1, 1]} : vector<2x10x10x8xf32> to vector<2x8x8x8xf32>
    %43 = vector.extract_strided_slice %40 {offsets = [0, 0, 2, 0], sizes = [2, 8, 8, 8], strides = [1, 1, 1, 1]} : vector<2x10x10x8xf32> to vector<2x8x8x8xf32>
    %44 = vector.extract_strided_slice %40 {offsets = [0, 1, 0, 0], sizes = [2, 8, 8, 8], strides = [1, 1, 1, 1]} : vector<2x10x10x8xf32> to vector<2x8x8x8xf32>
    %45 = vector.extract_strided_slice %40 {offsets = [0, 1, 1, 0], sizes = [2, 8, 8, 8], strides = [1, 1, 1, 1]} : vector<2x10x10x8xf32> to vector<2x8x8x8xf32>
    %46 = vector.extract_strided_slice %40 {offsets = [0, 1, 2, 0], sizes = [2, 8, 8, 8], strides = [1, 1, 1, 1]} : vector<2x10x10x8xf32> to vector<2x8x8x8xf32>
    %47 = vector.extract_strided_slice %40 {offsets = [0, 2, 0, 0], sizes = [2, 8, 8, 8], strides = [1, 1, 1, 1]} : vector<2x10x10x8xf32> to vector<2x8x8x8xf32>
    %48 = vector.extract_strided_slice %40 {offsets = [0, 2, 1, 0], sizes = [2, 8, 8, 8], strides = [1, 1, 1, 1]} : vector<2x10x10x8xf32> to vector<2x8x8x8xf32>
    %49 = vector.extract_strided_slice %40 {offsets = [0, 2, 2, 0], sizes = [2, 8, 8, 8], strides = [1, 1, 1, 1]} : vector<2x10x10x8xf32> to vector<2x8x8x8xf32>
    %50 = tpu.concatenate %41, %42, %43, %44, %45, %46, %47, %48, %49 in 3 : vector<2x8x8x8xf32>, vector<2x8x8x8xf32>, vector<2x8x8x8xf32>, vector<2x8x8x8xf32>, vector<2x8x8x8xf32>, vector<2x8x8x8xf32>, vector<2x8x8x8xf32>, vector<2x8x8x8xf32>, vector<2x8x8x8xf32> -> vector<2x8x8x72xf32>
    %51 = vector.shape_cast %50 : vector<2x8x8x72xf32> to vector<128x72xf32>
    %c0_9 = arith.constant 0 : index
    %c0_10 = arith.constant 0 : index
    %52 = vector.load %arg4[%c0_9, %c0_10] : memref<72x12xf32, #tpu.memory_space<vmem>>, vector<72x12xf32>
    %cst_11 = arith.constant dense<0.000000e+00> : vector<128x12xf32>
    %53 = tpu.matmul %51, %52, %cst_11 {dimension_numbers = #tpu.dot_dimension_numbers<[1], [0], [0], [1], [0, 0, 1, 1], [], []>} : vector<128x72xf32>, vector<72x12xf32>, vector<128x12xf32> -> vector<128x12xf32>
    %c0_12 = arith.constant 0 : index
    %c0_13 = arith.constant 0 : index
    %54 = vector.load %arg5[%c0_12, %c0_13] : memref<1x12xf32, #tpu.memory_space<vmem>>, vector<1x12xf32>
    %55 = vector.broadcast %54 : vector<1x12xf32> to vector<128x12xf32>
    %56 = arith.addf %53, %55 : vector<128x12xf32>
    %cst_14 = arith.constant 0.000000e+00 : f32
    %57 = vector.broadcast %cst_14 : f32 to vector<128x12xf32>
    %58 = arith.maximumf %56, %57 : vector<128x12xf32>
    %59 = vector.shape_cast %30 : vector<128x8xf32> to vector<2x8x8x8xf32>
    %c0_i32_15 = arith.constant 0 : i32
    %60 = arith.sitofp %c0_i32_15 : i32 to f32
    %61 = vector.broadcast %60 : f32 to vector<2x1x8x8xf32>
    %62 = tpu.concatenate %61, %59 in 1 : vector<2x1x8x8xf32>, vector<2x8x8x8xf32> -> vector<2x9x8x8xf32>
    %63 = vector.broadcast %60 : f32 to vector<2x1x8x8xf32>
    %64 = tpu.concatenate %62, %63 in 1 : vector<2x9x8x8xf32>, vector<2x1x8x8xf32> -> vector<2x10x8x8xf32>
    %65 = vector.broadcast %60 : f32 to vector<2x10x1x8xf32>
    %66 = tpu.concatenate %65, %64 in 2 : vector<2x10x1x8xf32>, vector<2x10x8x8xf32> -> vector<2x10x9x8xf32>
    %67 = vector.broadcast %60 : f32 to vector<2x10x1x8xf32>
    %68 = tpu.concatenate %66, %67 in 2 : vector<2x10x9x8xf32>, vector<2x10x1x8xf32> -> vector<2x10x10x8xf32>
    %69 = vector.extract_strided_slice %68 {offsets = [0, 0, 0, 0], sizes = [2, 8, 8, 8], strides = [1, 1, 1, 1]} : vector<2x10x10x8xf32> to vector<2x8x8x8xf32>
    %70 = vector.extract_strided_slice %68 {offsets = [0, 0, 1, 0], sizes = [2, 8, 8, 8], strides = [1, 1, 1, 1]} : vector<2x10x10x8xf32> to vector<2x8x8x8xf32>
    %71 = vector.extract_strided_slice %68 {offsets = [0, 0, 2, 0], sizes = [2, 8, 8, 8], strides = [1, 1, 1, 1]} : vector<2x10x10x8xf32> to vector<2x8x8x8xf32>
    %72 = vector.extract_strided_slice %68 {offsets = [0, 1, 0, 0], sizes = [2, 8, 8, 8], strides = [1, 1, 1, 1]} : vector<2x10x10x8xf32> to vector<2x8x8x8xf32>
    %73 = vector.extract_strided_slice %68 {offsets = [0, 1, 1, 0], sizes = [2, 8, 8, 8], strides = [1, 1, 1, 1]} : vector<2x10x10x8xf32> to vector<2x8x8x8xf32>
    %74 = vector.extract_strided_slice %68 {offsets = [0, 1, 2, 0], sizes = [2, 8, 8, 8], strides = [1, 1, 1, 1]} : vector<2x10x10x8xf32> to vector<2x8x8x8xf32>
    %75 = vector.extract_strided_slice %68 {offsets = [0, 2, 0, 0], sizes = [2, 8, 8, 8], strides = [1, 1, 1, 1]} : vector<2x10x10x8xf32> to vector<2x8x8x8xf32>
    %76 = vector.extract_strided_slice %68 {offsets = [0, 2, 1, 0], sizes = [2, 8, 8, 8], strides = [1, 1, 1, 1]} : vector<2x10x10x8xf32> to vector<2x8x8x8xf32>
    %77 = vector.extract_strided_slice %68 {offsets = [0, 2, 2, 0], sizes = [2, 8, 8, 8], strides = [1, 1, 1, 1]} : vector<2x10x10x8xf32> to vector<2x8x8x8xf32>
    %78 = tpu.concatenate %69, %70, %71, %72, %73, %74, %75, %76, %77 in 3 : vector<2x8x8x8xf32>, vector<2x8x8x8xf32>, vector<2x8x8x8xf32>, vector<2x8x8x8xf32>, vector<2x8x8x8xf32>, vector<2x8x8x8xf32>, vector<2x8x8x8xf32>, vector<2x8x8x8xf32>, vector<2x8x8x8xf32> -> vector<2x8x8x72xf32>
    %79 = vector.shape_cast %78 : vector<2x8x8x72xf32> to vector<128x72xf32>
    %c0_16 = arith.constant 0 : index
    %c0_17 = arith.constant 0 : index
    %80 = vector.load %arg6[%c0_16, %c0_17] : memref<72x12xf32, #tpu.memory_space<vmem>>, vector<72x12xf32>
    %cst_18 = arith.constant dense<0.000000e+00> : vector<128x12xf32>
    %81 = tpu.matmul %79, %80, %cst_18 {dimension_numbers = #tpu.dot_dimension_numbers<[1], [0], [0], [1], [0, 0, 1, 1], [], []>} : vector<128x72xf32>, vector<72x12xf32>, vector<128x12xf32> -> vector<128x12xf32>
    %c0_19 = arith.constant 0 : index
    %c0_20 = arith.constant 0 : index
    %82 = vector.load %arg7[%c0_19, %c0_20] : memref<1x12xf32, #tpu.memory_space<vmem>>, vector<1x12xf32>
    %83 = vector.broadcast %82 : vector<1x12xf32> to vector<128x12xf32>
    %84 = arith.addf %81, %83 : vector<128x12xf32>
    %cst_21 = arith.constant 0.000000e+00 : f32
    %85 = vector.broadcast %cst_21 : f32 to vector<128x12xf32>
    %86 = arith.maximumf %84, %85 : vector<128x12xf32>
    %87 = vector.shape_cast %86 : vector<128x12xf32> to vector<2x8x8x12xf32>
    %c0_i32_22 = arith.constant 0 : i32
    %88 = arith.sitofp %c0_i32_22 : i32 to f32
    %89 = vector.broadcast %88 : f32 to vector<2x1x8x12xf32>
    %90 = tpu.concatenate %89, %87 in 1 : vector<2x1x8x12xf32>, vector<2x8x8x12xf32> -> vector<2x9x8x12xf32>
    %91 = vector.broadcast %88 : f32 to vector<2x1x8x12xf32>
    %92 = tpu.concatenate %90, %91 in 1 : vector<2x9x8x12xf32>, vector<2x1x8x12xf32> -> vector<2x10x8x12xf32>
    %93 = vector.broadcast %88 : f32 to vector<2x10x1x12xf32>
    %94 = tpu.concatenate %93, %92 in 2 : vector<2x10x1x12xf32>, vector<2x10x8x12xf32> -> vector<2x10x9x12xf32>
    %95 = vector.broadcast %88 : f32 to vector<2x10x1x12xf32>
    %96 = tpu.concatenate %94, %95 in 2 : vector<2x10x9x12xf32>, vector<2x10x1x12xf32> -> vector<2x10x10x12xf32>
    %97 = vector.extract_strided_slice %96 {offsets = [0, 0, 0, 0], sizes = [2, 8, 8, 12], strides = [1, 1, 1, 1]} : vector<2x10x10x12xf32> to vector<2x8x8x12xf32>
    %98 = vector.extract_strided_slice %96 {offsets = [0, 0, 1, 0], sizes = [2, 8, 8, 12], strides = [1, 1, 1, 1]} : vector<2x10x10x12xf32> to vector<2x8x8x12xf32>
    %99 = vector.extract_strided_slice %96 {offsets = [0, 0, 2, 0], sizes = [2, 8, 8, 12], strides = [1, 1, 1, 1]} : vector<2x10x10x12xf32> to vector<2x8x8x12xf32>
    %100 = vector.extract_strided_slice %96 {offsets = [0, 1, 0, 0], sizes = [2, 8, 8, 12], strides = [1, 1, 1, 1]} : vector<2x10x10x12xf32> to vector<2x8x8x12xf32>
    %101 = vector.extract_strided_slice %96 {offsets = [0, 1, 1, 0], sizes = [2, 8, 8, 12], strides = [1, 1, 1, 1]} : vector<2x10x10x12xf32> to vector<2x8x8x12xf32>
    %102 = vector.extract_strided_slice %96 {offsets = [0, 1, 2, 0], sizes = [2, 8, 8, 12], strides = [1, 1, 1, 1]} : vector<2x10x10x12xf32> to vector<2x8x8x12xf32>
    %103 = vector.extract_strided_slice %96 {offsets = [0, 2, 0, 0], sizes = [2, 8, 8, 12], strides = [1, 1, 1, 1]} : vector<2x10x10x12xf32> to vector<2x8x8x12xf32>
    %104 = vector.extract_strided_slice %96 {offsets = [0, 2, 1, 0], sizes = [2, 8, 8, 12], strides = [1, 1, 1, 1]} : vector<2x10x10x12xf32> to vector<2x8x8x12xf32>
    %105 = vector.extract_strided_slice %96 {offsets = [0, 2, 2, 0], sizes = [2, 8, 8, 12], strides = [1, 1, 1, 1]} : vector<2x10x10x12xf32> to vector<2x8x8x12xf32>
    %106 = tpu.concatenate %97, %98, %99, %100, %101, %102, %103, %104, %105 in 3 : vector<2x8x8x12xf32>, vector<2x8x8x12xf32>, vector<2x8x8x12xf32>, vector<2x8x8x12xf32>, vector<2x8x8x12xf32>, vector<2x8x8x12xf32>, vector<2x8x8x12xf32>, vector<2x8x8x12xf32>, vector<2x8x8x12xf32> -> vector<2x8x8x108xf32>
    %107 = vector.shape_cast %106 : vector<2x8x8x108xf32> to vector<128x108xf32>
    %c0_23 = arith.constant 0 : index
    %c0_24 = arith.constant 0 : index
    %108 = vector.load %arg8[%c0_23, %c0_24] : memref<108x12xf32, #tpu.memory_space<vmem>>, vector<108x12xf32>
    %cst_25 = arith.constant dense<0.000000e+00> : vector<128x12xf32>
    %109 = tpu.matmul %107, %108, %cst_25 {dimension_numbers = #tpu.dot_dimension_numbers<[1], [0], [0], [1], [0, 0, 1, 1], [], []>} : vector<128x108xf32>, vector<108x12xf32>, vector<128x12xf32> -> vector<128x12xf32>
    %c0_26 = arith.constant 0 : index
    %c0_27 = arith.constant 0 : index
    %110 = vector.load %arg9[%c0_26, %c0_27] : memref<1x12xf32, #tpu.memory_space<vmem>>, vector<1x12xf32>
    %111 = vector.broadcast %110 : vector<1x12xf32> to vector<128x12xf32>
    %112 = arith.addf %109, %111 : vector<128x12xf32>
    %cst_28 = arith.constant 0.000000e+00 : f32
    %113 = vector.broadcast %cst_28 : f32 to vector<128x12xf32>
    %114 = arith.maximumf %112, %113 : vector<128x12xf32>
    %115 = tpu.concatenate %28, %58, %114 in 1 : vector<128x16xf32>, vector<128x12xf32>, vector<128x12xf32> -> vector<128x40xf32>
    %c0_i32_29 = arith.constant 0 : i32
    %116 = arith.sitofp %c0_i32_29 : i32 to f32
    %117 = vector.broadcast %116 : f32 to vector<128x88xf32>
    %118 = tpu.concatenate %115, %117 in 1 : vector<128x40xf32>, vector<128x88xf32> -> vector<128x128xf32>
    %119 = vector.shape_cast %118 : vector<128x128xf32> to vector<2x8x8x128xf32>
    %c0_30 = arith.constant 0 : index
    %c0_31 = arith.constant 0 : index
    %c0_32 = arith.constant 0 : index
    %c0_33 = arith.constant 0 : index
    %120 = vector.load %arg10[%c0_30, %c0_31, %c0_32, %c0_33] : memref<2x8x8x128xf32, #tpu.memory_space<vmem>>, vector<2x8x8x128xf32>
    tpu.vector_store %arg10[%c0_30, %c0_31, %c0_32, %c0_33], %119 {strides = array<i32>} : memref<2x8x8x128xf32, #tpu.memory_space<vmem>>, vector<2x8x8x128xf32>,
    return
  }
  func.func @transform_0(%arg0: i32) -> (i32, i32, i32, i32) {
    %c0_i32 = arith.constant 0 : i32
    %c0_i32_0 = arith.constant 0 : i32
    %c0_i32_1 = arith.constant 0 : i32
    %c0_i32_2 = arith.constant 0 : i32
    return %arg0, %c0_i32, %c0_i32_0, %c0_i32_1 : i32, i32, i32, i32
  }
  func.func @transform_1(%arg0: i32) -> (i32, i32) {
    %c0_i32 = arith.constant 0 : i32
    %c0_i32_0 = arith.constant 0 : i32
    %c0_i32_1 = arith.constant 0 : i32
    return %c0_i32, %c0_i32_0 : i32, i32
  }
  func.func @transform_2(%arg0: i32) -> (i32, i32) {
    %c0_i32 = arith.constant 0 : i32
    %c0_i32_0 = arith.constant 0 : i32
    %c0_i32_1 = arith.constant 0 : i32
    return %c0_i32, %c0_i32_0 : i32, i32
  }
  func.func @transform_3(%arg0: i32) -> (i32, i32) {
    %c0_i32 = arith.constant 0 : i32
    %c0_i32_0 = arith.constant 0 : i32
    %c0_i32_1 = arith.constant 0 : i32
    return %c0_i32, %c0_i32_0 : i32, i32
  }
  func.func @transform_4(%arg0: i32) -> (i32, i32) {
    %c0_i32 = arith.constant 0 : i32
    %c0_i32_0 = arith.constant 0 : i32
    %c0_i32_1 = arith.constant 0 : i32
    return %c0_i32, %c0_i32_0 : i32, i32
  }
  func.func @transform_5(%arg0: i32) -> (i32, i32) {
    %c0_i32 = arith.constant 0 : i32
    %c0_i32_0 = arith.constant 0 : i32
    %c0_i32_1 = arith.constant 0 : i32
    return %c0_i32, %c0_i32_0 : i32, i32
  }
  func.func @transform_6(%arg0: i32) -> (i32, i32) {
    %c0_i32 = arith.constant 0 : i32
    %c0_i32_0 = arith.constant 0 : i32
    %c0_i32_1 = arith.constant 0 : i32
    return %c0_i32, %c0_i32_0 : i32, i32
  }
  func.func @transform_7(%arg0: i32) -> (i32, i32) {
    %c0_i32 = arith.constant 0 : i32
    %c0_i32_0 = arith.constant 0 : i32
    %c0_i32_1 = arith.constant 0 : i32
    return %c0_i32, %c0_i32_0 : i32, i32
  }
  func.func @transform_8(%arg0: i32) -> (i32, i32) {
    %c0_i32 = arith.constant 0 : i32
    %c0_i32_0 = arith.constant 0 : i32
    %c0_i32_1 = arith.constant 0 : i32
    return %c0_i32, %c0_i32_0 : i32, i32
  }
  func.func @transform_9(%arg0: i32) -> (i32, i32, i32, i32) {
    %c0_i32 = arith.constant 0 : i32
    %c0_i32_0 = arith.constant 0 : i32
    %c0_i32_1 = arith.constant 0 : i32
    %c0_i32_2 = arith.constant 0 : i32
    return %arg0, %c0_i32, %c0_i32_0, %c0_i32_1 : i32, i32, i32, i32
  }
}

</mosaic_0001>

<bundles_post_ra>
// kernel: tpu_custom_call.1
= control target key start
LH: loop header
LB: loop body
LE: loop exit
PB: predicated region body
PF: predicated region fallthrough
CT: control target
= control target key end

     0   :  { %vm100_vm0 = vcmask 1040384   ;;  %v4500_v2 = vmov 0.0   ;;  %vm165_vm1 = vcmask 1046528   ;;  %s4501_s21 = smov 8   ;;  %s7938_s0 = inlined_call_operand.vmem [shape: f32[2,8,8,8], index: 0, kind: input, shape index: {}]   ;;  %s7939_s1 = inlined_call_operand.vmem [shape: f32[72,32], index: 1, kind: input, shape index: {}]   ;;  %s7940_s2 = inlined_call_operand.vmem [shape: f32[1,32], index: 2, kind: input, shape index: {}]   ;;  %s7941_s3 = inlined_call_operand.vmem [shape: f32[72,12], index: 3, kind: input, shape index: {}]   ;;  %s7942_s4 = inlined_call_operand.vmem [shape: f32[1,12], index: 4, kind: input, shape index: {}]   ;;  %s7943_s5 = inlined_call_operand.vmem [shape: f32[72,12], index: 5, kind: input, shape index: {}]   ;;  %s7944_s6 = inlined_call_operand.vmem [shape: f32[1,12], index: 6, kind: input, shape index: {}]   ;;  %s7945_s7 = inlined_call_operand.vmem [shape: f32[108,12], index: 7, kind: input, shape index: {}]   ;;  %s7946_s8 = inlined_call_operand.vmem [shape: f32[1,12], index: 8, kind: input, shape index: {}]   ;;  %s7947_s9 = inlined_call_operand.hbm [shape: f32[2,8,8,128], index: 9, kind: output, shape index: {}]  }
   0x1   :  { %v34_v0 = vld [vmem:[%s7938_s0 + $0x8] sm:$0xff]  ;;  %v35_v1 = vld [vmem:[%s7938_s0 + $0x10] sm:$0xff]  ;;  %v66_v3 = vrot.slane %v4500_v2, 7  ;;  %v33_v6 = vld [vmem:[%s7938_s0] sm:$0xff] }
   0x2   :  { %v68_v4 = vrot.slane %v34_v0, 7  ;;  %v69_v5 = vrot.slane %v35_v1, 7  ;;  %v37_v7 = vld [vmem:[%s7938_s0 + $0x20] sm:$0xff]  ;;  %v36_v8 = vld [vmem:[%s7938_s0 + $0x18] sm:$0xff]  ;;  %v67_v9 = vrot.slane %v33_v6, 7  ;;  %v39_v28 = vld [vmem:[%s7938_s0 + $0x30] sm:$0xff] }
   0x3   :  { %v71_v10 = vrot.slane %v37_v7, 7  ;;  %v70_v11 = vrot.slane %v36_v8, 7  ;;  %v4587_v12 = vsel %vm100_vm0, 0.0, %v66_v3  ;;  %v4590_v13 = vsel %vm100_vm0, %v66_v3, 0.0  ;;  %v38_v33 = vld [vmem:[%s7938_s0 + $0x28] sm:$0xff]  ;;  %v41_v39 = vld [vmem:[%s7938_s0 + $0x40] sm:$0xff] }
   0x4   :  { %8026 = vst [vmem:[#allocation5_spill] sm:$0xff] %v4587_v12  ;;  %v4593_v14 = vsel %vm100_vm0, 0.0, %v68_v4  ;;  %v4596_v15 = vsel %vm100_vm0, %v68_v4, 0.0  ;;  %v166_v16 = vrot.slane %v4587_v12, 1  ;;  %v167_v17 = vrot.slane %v4590_v13, 1  ;;  %v42_v34 = vld [vmem:[%s7938_s0 + $0x48] sm:$0xff] }
   0x5   :  { %v172_v18 = vrot.slane %v4593_v14, 1  ;;  %v173_v19 = vrot.slane %v4596_v15, 1  ;;  %v4603_v20 = vsel %vm100_vm0, 0.0, %v69_v5  ;;  %v4606_v21 = vsel %vm100_vm0, %v69_v5, 0.0  ;;  %v44_v40 = vld [vmem:[%s7938_s0 + $0x58] sm:$0xff] }
   0x6   :  { %v4609_v22 = vsel %vm100_vm0, 0.0, %v67_v9  ;;  %v4612_v23 = vsel %vm100_vm0, %v67_v9, 0.0  ;;  %v4615_v24 = vsel %vm165_vm1, %v166_v16, %v167_v17  ;;  %v175_v26 = vrot.slane %v4603_v20, 1 }
   0x7   :  { %8027 = vst [vmem:[#allocation6_spill] sm:$0xff] %v4615_v24  ;;  %v4618_v25 = vsel %vm165_vm1, %v172_v18, %v173_v19  ;;  %v176_v27 = vrot.slane %v4606_v21, 1  ;;  %211 = vrot.lane.b32.xlu0 %v4615_v24, %s4501_s21  ;;  %v169_v29 = vrot.slane %v4609_v22, 1  ;;  %v170_v30 = vrot.slane %v4612_v23, 1 }
   0x8   :  { %215 = vrot.lane.b32.xlu1 %v4618_v25, %s4501_s21  ;;  %v4632_v31 = vsel %vm100_vm0, 0.0, %v71_v10  ;;  %v4635_v32 = vsel %vm100_vm0, %v71_v10, 0.0  ;;  %v4649_v38 = vsel %vm100_vm0, 0.0, %v70_v11  ;;  %v4661_v42 = vsel %vm100_vm0, %v70_v11, 0.0 }
   0x9   :  { %v4644_v35 = vsel %vm165_vm1, %v175_v26, %v176_v27  ;;  %v181_v36 = vrot.slane %v4632_v31, 1  ;;  %v182_v37 = vrot.slane %v4635_v32, 1  ;;  %v4658_v41 = vsel %vm165_vm1, %v169_v29, %v170_v30 }
   0xa   :  { %v178_v43 = vrot.slane %v4649_v38, 1  ;;  %v73_v44 = vrot.slane %v39_v28, 7 }
   0xb   :  { %14 = vsyncpa [#allocation3], 0  ;;  %v4665_v45 = vsel %vm165_vm1, %v181_v36, %v182_v37  ;;  %v179_v46 = vrot.slane %v4661_v42, 1  ;;  %v72_v47 = vrot.slane %v38_v33, 7  ;;  %v76_v48 = vrot.slane %v42_v34, 7  ;;  %213 = vrot.lane.b32.xlu0 %v4658_v41, %s4501_s21  ;;  %v43_v0 = vld [vmem:[%s7938_s0 + $0x50] sm:$0xff] }
   0xc   :  { %217 = vrot.lane.b32.xlu1 %v4644_v35, %s4501_s21  ;;  %v4673_v49 = vsel %vm100_vm0, 0.0, %v73_v44  ;;  %v4676_v50 = vsel %vm100_vm0, %v73_v44, 0.0  ;;  %v75_v51 = vrot.slane %v41_v39, 7  ;;  %v78_v52 = vrot.slane %v44_v40, 7  ;;  %v46_v1 = vld [vmem:[%s7938_s0 + $0x68] sm:$0xff]  ;;  %v45_v6 = vld [vmem:[%s7938_s0 + $0x60] sm:$0xff] }
   0xd   :  { %v4679_v53 = vsel %vm165_vm1, %v178_v43, %v179_v46  ;;  %v187_v54 = vrot.slane %v4673_v49, 1  ;;  %v188_v55 = vrot.slane %v4676_v50, 1  ;;  %v4684_v56 = vsel %vm100_vm0, 0.0, %v72_v47  ;;  %v47_v29 = vld [vmem:[%s7938_s0 + $0x70] sm:$0xff]  ;;  %s4502_s17 = smov 16   ;;  %s4503_s18 = smov 24  }
   0xe   :  { %v4687_v57 = vsel %vm100_vm0, %v72_v47, 0.0  ;;  %v184_v58 = vrot.slane %v4684_v56, 1  ;;  %v4691_v59 = vsel %vm100_vm0, 0.0, %v76_v48  ;;  %v4694_v60 = vsel %vm100_vm0, %v76_v48, 0.0  ;;  %s4504_s13 = smov 32   ;;  %s4505_s20 = smov 40  }
   0xf   :  { %v185_v61 = vrot.slane %v4687_v57, 1  ;;  %v193_v62 = vrot.slane %v4691_v59, 1  ;;  %v194_v63 = vrot.slane %v4694_v60, 1  ;;  %219 = vrot.lane.b32.xlu0 %v4679_v53, %s4501_s21  ;;  %v4710_v2 = vsel %vm165_vm1, %v187_v54, %v188_v55  ;;  %s4506_s22 = smov 48   ;;  %s4507_s25 = smov 56  }
  0x10   :  { %221 = vrot.lane.b32.xlu1 %v4665_v45, %s4501_s21  ;;  %v4713_v3 = vsel %vm100_vm0, 0.0, %v75_v51  ;;  %v4716_v4 = vsel %vm100_vm0, %v75_v51, 0.0  ;;  %v4719_v5 = vsel %vm100_vm0, 0.0, %v78_v52  ;;  %v4730_v10 = vsel %vm100_vm0, %v78_v52, 0.0  ;;  %s4508_s26 = smov 64   ;;  %s4509_s29 = smov 104  }
  0x11   :  { %8028 = vst [vmem:[#allocation7_spill] sm:$0xff] %v4719_v5  ;;  %v4725_v7 = vsel %vm165_vm1, %v184_v58, %v185_v61  ;;  %v190_v8 = vrot.slane %v4713_v3, 1  ;;  %v191_v9 = vrot.slane %v4716_v4, 1  ;;  %v77_v11 = vrot.slane %v43_v0, 7  ;;  %s4510_s30 = smov 112   ;;  %s4515_s11 = smov 84  }
  0x12   :  { %v80_v16 = vrot.slane %v46_v1, 7  ;;  %v4733_v17 = vsel %vm165_vm1, %v193_v62, %v194_v63  ;;  %v79_v18 = vrot.slane %v45_v6, 7  ;;  %v199_v19 = vrot.slane %v4719_v5, 1 }
  0x13   :  { %223 = vrot.lane.b32.xlu0 %v4725_v7, %s4501_s21  ;;  %v200_v26 = vrot.slane %v4730_v10, 1  ;;  %v4742_v27 = vsel %vm100_vm0, 0.0, %v77_v11  ;;  %v4745_v28 = vsel %vm100_vm0, %v77_v11, 0.0  ;;  %v4751_v30 = vsel %vm165_vm1, %v190_v8, %v191_v9 }
  0x14   :  { %225 = vrot.lane.b32.xlu1 %v4710_v2, %s4501_s21  ;;  %v196_v33 = vrot.slane %v4742_v27, 1  ;;  %v197_v34 = vrot.slane %v4745_v28, 1  ;;  %v4756_v36 = vsel %vm100_vm0, 0.0, %v80_v16  ;;  %v4759_v37 = vsel %vm100_vm0, %v80_v16, 0.0 }
  0x15   :  { %8029 = vst [vmem:[#allocation8_spill] sm:$0xff] %v4756_v36  ;;  %v4762_v39 = vsel %vm100_vm0, 0.0, %v79_v18  ;;  %v4765_v40 = vsel %vm100_vm0, %v79_v18, 0.0  ;;  %v81_v43 = vrot.slane %v47_v29, 7  ;;  %v4772_v44 = vsel %vm165_vm1, %v199_v19, %v200_v26 }
  0x16   :  { %8030 = vst [vmem:[#allocation9_spill] sm:$0xff] %v4762_v39  ;;  %v205_v46 = vrot.slane %v4756_v36, 1  ;;  %v4776_v47 = vsel %vm165_vm1, %v196_v33, %v197_v34  ;;  %v206_v48 = vrot.slane %v4759_v37, 1  ;;  %v202_v51 = vrot.slane %v4762_v39, 1 }
  0x17   :  { %227 = vrot.lane.b32.xlu0 %v4751_v30, %s4501_s21  ;;  %v203_v52 = vrot.slane %v4765_v40, 1  ;;  %v4782_v54 = vsel %vm100_vm0, 0.0, %v81_v43  ;;  %v4785_v55 = vsel %vm100_vm0, %v81_v43, 0.0  ;;  %v257_v58 = vrot.slane %v4587_v12, 2 }
  0x18   :  { %229 = vrot.lane.b32.xlu1 %v4733_v17, %s4501_s21  ;;  %v258_v61 = vrot.slane %v4590_v13, 2  ;;  %v4794_v62 = vsel %vm165_vm1, %v205_v46, %v206_v48  ;;  %v208_v0 = vrot.slane %v4782_v54, 1  ;;  %v209_v1 = vrot.slane %v4785_v55, 1 }
  0x19   :  { %v4797_v63 = vsel %vm165_vm1, %v202_v51, %v203_v52  ;;  %vm256_vm2 = vcmask 1045504   ;;  %v263_v6 = vrot.slane %v4593_v14, 2  ;;  %v264_v13 = vrot.slane %v4596_v15, 2 }
  0x1a   :  { %v4808_v8 = vsel %vm256_vm2, %v257_v58, %v258_v61  ;;  %v4811_v9 = vsel %vm165_vm1, %v208_v0, %v209_v1  ;;  %v260_v11 = vrot.slane %v4609_v22, 2  ;;  %v261_v16 = vrot.slane %v4612_v23, 2 }
  0x1b   :  { %231 = vrot.lane.b32.xlu0 %v4776_v47, %s4501_s21  ;;  %8031 = vst [vmem:[#allocation10_spill] sm:$0xff] %v4808_v8  ;;  %v4820_v18 = vsel %vm256_vm2, %v263_v6, %v264_v13  ;;  %v269_v15 = vrot.slane %v4649_v38, 2  ;;  %v270_v26 = vrot.slane %v4661_v42, 2  ;;  %v266_v29 = vrot.slane %v4603_v20, 2 }
  0x1c   :  { %233 = vrot.lane.b32.xlu1 %v4772_v44, %s4501_s21  ;;  %v4824_v19 = vsel %vm256_vm2, %v260_v11, %v261_v16  ;;  %v267_v23 = vrot.slane %v4606_v21, 2  ;;  %v275_v33 = vrot.slane %v4684_v56, 2  ;;  %v276_v34 = vrot.slane %v4687_v57, 2 }
  0x1d   :  { %v4836_v43 = vsel %vm256_vm2, %v269_v15, %v270_v26  ;;  %v272_v42 = vrot.slane %v4632_v31, 2  ;;  %v273_v21 = vrot.slane %v4635_v32, 2  ;;  %v281_v57 = vrot.slane %v4713_v3, 2 }
  0x1e   :  { %v4839_v46 = vsel %vm256_vm2, %v266_v29, %v267_v23  ;;  %v4848_v48 = vsel %vm256_vm2, %v275_v33, %v276_v34  ;;  %v282_v52 = vrot.slane %v4716_v4, 2  ;;  %v278_v58 = vrot.slane %v4673_v49, 2 }
  0x1f   :  { %235 = vrot.lane.b32.xlu0 %v4797_v63, %s4501_s21  ;;  %v4852_v51 = vsel %vm256_vm2, %v272_v42, %v273_v21  ;;  %v279_v32 = vrot.slane %v4676_v50, 2  ;;  %v287_v61 = vrot.slane %v4742_v27, 2  ;;  %v288_v0 = vrot.slane %v4745_v28, 2 }
  0x20   :  { %237 = vrot.lane.b32.xlu1 %v4794_v62, %s4501_s21  ;;  %v4864_v1 = vsel %vm256_vm2, %v281_v57, %v282_v52  ;;  %v284_v4 = vrot.slane %v4691_v59, 2  ;;  %v285_v50 = vrot.slane %v4694_v60, 2  ;;  %v293_v28 = vrot.slane %v4762_v39, 2  ;;  %v776_v57 = vld [vmem:[%s7939_s1] sm:$0xff]  ;;  %v777_v52 = vld [vmem:[%s7939_s1 + $0x8] sm:$0xff] }
  0x21   :  { %v4867_v6 = vsel %vm256_vm2, %v278_v58, %v279_v32  ;;  %v4876_v13 = vsel %vm256_vm2, %v287_v61, %v288_v0  ;;  %v294_v16 = vrot.slane %v4765_v40, 2  ;;  %v290_v15 = vrot.slane %v4719_v5, 2  ;;  %v778_v32 = vld [vmem:[%s7939_s1 + $0x10] sm:$0xff]  ;;  %v779_v61 = vld [vmem:[%s7939_s1 + $0x18] sm:$0xff] }
  0x22   :  { %v4880_v11 = vsel %vm256_vm2, %v284_v4, %v285_v50  ;;  %v291_v60 = vrot.slane %v4730_v10, 2  ;;  %v299_v26 = vrot.slane %v4782_v54, 2  ;;  %v300_v29 = vrot.slane %v4785_v55, 2  ;;  %v780_v4 = vld [vmem:[%s7939_s1 + $0x20] sm:$0xff]  ;;  %v781_v50 = vld [vmem:[%s7939_s1 + $0x28] sm:$0xff] }
  0x23   :  { %239 = vrot.lane.b32.xlu0 %v4811_v9, %s4501_s21  ;;  %v4892_v23 = vsel %vm256_vm2, %v293_v28, %v294_v16  ;;  %v296_v40 = vrot.slane %v4756_v36, 2  ;;  %v297_v10 = vrot.slane %v4759_v37, 2  ;;  %v4920_v37 = vld [vmem:[%s7938_s0 + $0x38] sm:$0xff]  ;;  %v4376_v58 = vpack.c.bf16 %v777_v52, %v776_v57  ;;  %v782_v16 = vld [vmem:[%s7939_s1 + $0x30] sm:$0xff] }
  0x24   :  { %302 = vrot.lane.b32.xlu1 %v4808_v8, %s4502_s17  ;;  %v4895_v33 = vsel %vm256_vm2, %v290_v15, %v291_v60  ;;  %v4904_v34 = vsel %vm256_vm2, %v299_v26, %v300_v29  ;;  %v74_v42 = vrot.slane %v4920_v37, 7  ;;  %v4380_v0 = vpack.c.bf16 %v779_v61, %v778_v32  ;;  %v783_v15 = vld [vmem:[%s7939_s1 + $0x38] sm:$0xff]  ;;  %v784_v60 = vld [vmem:[%s7939_s1 + $0x40] sm:$0xff] }
  0x25   :  { %v4907_v55 = vsel %vm256_vm2, %v296_v40, %v297_v10  ;;  %4377 = vmatprep.subr.bf16.mxu0 %v4376_v58  ;;  %v4384_v28 = vpack.c.bf16 %v781_v50, %v780_v4  ;;  %vm642_vm3 = vcmask 64512   ;;  %vm658_vm4 = vcmask 130048  }
  0x26   :  { %v4934_v21 = vsel %vm100_vm0, 0.0, %v74_v42  ;;  %4379 = vmatpush3.bf16.msra.mxu0 %v4376_v58  ;;  %v126_v57 = vsel %vm100_vm0, %v74_v42, 0.0  ;;  %vm674_vm5 = vcmask 195584   ;;  %vm691_vm6 = vcmask 261120  }
  0x27   :  { %304 = vrot.lane.b32.xlu0 %v4824_v19, %s4502_s17  ;;  %4381 = vmatprep.subr.bf16.mxu0 %v4380_v0  ;;  %v400_v52 = vrot.slane %v126_v57, 1  ;;  %v453_v61 = vrot.slane %v4934_v21, 2  ;;  %vm708_vm7 = vcmask 326656   ;;  %vm725_vm8 = vcmask 392192  }
  0x28   :  { %306 = vrot.lane.b32.xlu1 %v4820_v18, %s4502_s17  ;;  %vm742_vm9 = vcmask 457728   ;;  %vm759_vm10 = vcmask 523264   ;;  %vm792_vm11 = vcmask 588800   ;;  %vm3650_vm12 = vcmask 1043456  }
  0x29   :  { %vm4516_vm13 = vmmov 1   ;;  %vm3449_vm15 = vcmask 97280  }
  0x2a   :  { %4383 = vmatpush3.bf16.msra.mxu0 %v4380_v0  ;;  %v454_v0 = vrot.slane %v126_v57, 2  ;;  %vm7091_vm14 = vmpackc.low %vm3650_vm12, %vm4516_vm13  ;;  %vm3601_vm12 = vcmask 883712  }
  0x2b   :  { %308 = vrot.lane.b32.xlu0 %v4839_v46, %s4502_s17  ;;  %4385 = vmatprep.subr.bf16.mxu0 %v4384_v28 }
  0x2c   :  { %310 = vrot.lane.b32.xlu1 %v4836_v43, %s4502_s17 }
  0x2e   :  { %4387 = vmatpush3.bf16.msra.mxu0 %v4384_v28 }
  0x2f   :  { %312 = vrot.lane.b32.xlu0 %v4852_v51, %s4502_s17 }
  0x30   :  { %314 = vrot.lane.b32.xlu1 %v4848_v48, %s4502_s17 }
  0x33   :  { %316 = vrot.lane.b32.xlu0 %v4867_v6, %s4502_s17 }
  0x34   :  { %318 = vrot.lane.b32.xlu1 %v4864_v1, %s4502_s17 }
  0x37   :  { %320 = vrot.lane.b32.xlu0 %v4880_v11, %s4502_s17 }
  0x38   :  { %322 = vrot.lane.b32.xlu1 %v4876_v13, %s4502_s17 }
  0x3b   :  { %324 = vrot.lane.b32.xlu0 %v4895_v33, %s4502_s17 }
  0x3c   :  { %326 = vrot.lane.b32.xlu1 %v4892_v23, %s4502_s17 }
  0x3f   :  { %328 = vrot.lane.b32.xlu0 %v4907_v55, %s4502_s17 }
  0x40   :  { %330 = vrot.lane.b32.xlu1 %v4904_v34, %s4502_s17 }
  0x43   :  { %349 = vrot.lane.b32.xlu0 %v4609_v22, %s4503_s18 }
  0x44   :  { %351 = vrot.lane.b32.xlu1 %v4593_v14, %s4503_s18 }
  0x47   :  { %353 = vrot.lane.b32.xlu0 %v4603_v20, %s4503_s18 }
  0x48   :  { %355 = vrot.lane.b32.xlu1 %v4649_v38, %s4503_s18 }
  0x4b   :  { %357 = vrot.lane.b32.xlu0 %v4632_v31, %s4503_s18 }
  0x4c   :  { %359 = vrot.lane.b32.xlu1 %v4684_v56, %s4503_s18 }
  0x4f   :  { %361 = vrot.lane.b32.xlu0 %v4673_v49, %s4503_s18 }
  0x50   :  { %363 = vrot.lane.b32.xlu1 %v4934_v21, %s4503_s18 }
  0x53   :  { %365 = vrot.lane.b32.xlu0 %v4713_v3, %s4503_s18 }
  0x54   :  { %367 = vrot.lane.b32.xlu1 %v4691_v59, %s4503_s18 }
  0x57   :  { %369 = vrot.lane.b32.xlu0 %v4742_v27, %s4503_s18 }
  0x58   :  { %371 = vrot.lane.b32.xlu1 %v4719_v5, %s4503_s18 }
  0x5b   :  { %373 = vrot.lane.b32.xlu0 %v4762_v39, %s4503_s18 }
  0x5c   :  { %405 = vrot.lane.b32.xlu1 %v4658_v41, %s4504_s13  ;;  %v4388_v41 = vpack.c.bf16 %v783_v15, %v782_v16 }
  0x5e   :  { %4389 = vmatprep.subr.bf16.mxu0 %v4388_v41 }
  0x5f   :  { %407 = vrot.lane.b32.xlu0 %v4618_v25, %s4504_s13  ;;  %4391 = vmatpush3.bf16.msra.mxu0 %v4388_v41 }
  0x60   :  { %459 = vrot.lane.b32.xlu1 %v4824_v19, %s4505_s20  ;;  %4214 = vmatprep.subr.mxu0 %v784_v60 }
  0x63   :  { %461 = vrot.lane.b32.xlu0 %v4820_v18, %s4505_s20  ;;  %4215 = vmatpush3.msra.mxu0 %v784_v60 }
  0x64   :  { %507 = vrot.lane.b32.xlu1 %v4593_v14, %s4506_s22 }
  0x67   :  { %509 = vrot.lane.b32.xlu0 %v4603_v20, %s4506_s22 }
  0x68   :  { %552 = vrot.lane.b32.xlu1 %v4618_v25, %s4507_s25 }
  0x6b   :  { %409 = vrot.lane.b32.xlu0 %v4644_v35, %s4504_s13 }
  0x6c   :  { %554 = vrot.lane.b32.xlu1 %v4644_v35, %s4507_s25 }
  0x6f   :  { %597 = vrot.lane.b32.xlu0 %v4820_v18, %s4508_s26 }
  0x70   :  { %411 = vrot.lane.b32.xlu1 %v4679_v53, %s4504_s13 }
  0x73   :  { %463 = vrot.lane.b32.xlu0 %v4839_v46, %s4505_s20 }
  0x74   :  { %599 = vrot.lane.b32.xlu1 %v4839_v46, %s4508_s26 }
  0x77   :  { %465 = vrot.lane.b32.xlu0 %v4836_v43, %s4505_s20 }
  0x78   :  { %511 = vrot.lane.b32.xlu1 %v4649_v38, %s4506_s22 }
  0x79   :  { %v5007_v25 = vpop.permute.xlu0 %211 }
  0x7a   :  { %v5009_v35 = vpop.permute.xlu1 %215 }
  0x7b   :  { %513 = vrot.lane.b32.xlu0 %v4632_v31, %s4506_s22 }
  0x7c   :  { %556 = vrot.lane.b32.xlu1 %v4679_v53, %s4507_s25 }
  0x7d   :  { %v5017_v19 = vpop.permute.xlu0 %213 }
  0x7e   :  { %v5015_v18 = vpop.permute.xlu1 %217 }
  0x7f   :  { %413 = vrot.lane.b32.xlu0 %v4665_v45, %s4504_s13 }
  0x80   :  { %558 = vrot.lane.b32.xlu1 %v4665_v45, %s4507_s25 }
  0x81   :  { %v5025_v26 = vpop.permute.xlu0 %219 }
  0x82   :  { %v5023_v46 = vpop.permute.xlu1 %221 }
  0x83   :  { %601 = vrot.lane.b32.xlu0 %v4836_v43, %s4508_s26 }
  0x84   :  { %415 = vrot.lane.b32.xlu1 %v4725_v7, %s4504_s13 }
  0x85   :  { %v5033_v29 = vpop.permute.xlu0 %223 }
  0x86   :  { %v5031_v53 = vpop.permute.xlu1 %225 }
  0x87   :  { %467 = vrot.lane.b32.xlu0 %v4852_v51, %s4505_s20 }
  0x88   :  { %603 = vrot.lane.b32.xlu1 %v4852_v51, %s4508_s26  ;;  %v399_v51 = vrot.slane %v4934_v21, 1 }
  0x89   :  { %v5041_v40 = vpop.permute.xlu0 %227 }
  0x8a   :  { %v5039_v45 = vpop.permute.xlu1 %229  ;;  %v401_v37 = vsel %vm165_vm1, %v399_v51, %v400_v52 }
  0x8b   :  { %469 = vrot.lane.b32.xlu0 %v4848_v48, %s4505_s20 }
  0x8c   :  { %515 = vrot.lane.b32.xlu1 %v4684_v56, %s4506_s22 }
  0x8d   :  { %v5049_v10 = vpop.permute.xlu0 %231 }
  0x8e   :  { %v5047_v43 = vpop.permute.xlu1 %233 }
  0x8f   :  { %8032 = vst [vmem:[#allocation11_spill] sm:$0xff] %v5047_v43  ;;  %517 = vrot.lane.b32.xlu0 %v4673_v49, %s4506_s22 }
  0x90   :  { %560 = vrot.lane.b32.xlu1 %v4725_v7, %s4507_s25 }
  0x91   :  { %v5061_v32 = vpop.permute.xlu0 %235 }
  0x92   :  { %v5059_v58 = vpop.permute.xlu1 %237  ;;  %8034 = vst [vmem:[#allocation13_spill] sm:$0xff] %v5061_v32 }
  0x93   :  { %8033 = vst [vmem:[#allocation12_spill] sm:$0xff] %v5059_v58  ;;  %417 = vrot.lane.b32.xlu0 %v4710_v2, %s4504_s13 }
  0x94   :  { %562 = vrot.lane.b32.xlu1 %v4710_v2, %s4507_s25  ;;  %v455_v2 = vsel %vm256_vm2, %v453_v61, %v454_v0 }
  0x95   :  { %v5070_v7 = vpop.permute.xlu0 %239 }
  0x96   :  { %v5068_v42 = vpop.permute.xlu1 %302  ;;  %8035 = vst [vmem:[#allocation14_spill] sm:$0xff] %v5070_v7 }
  0x97   :  { %605 = vrot.lane.b32.xlu0 %v4848_v48, %s4508_s26 }
  0x98   :  { %419 = vrot.lane.b32.xlu1 %v401_v37, %s4504_s13 }
  0x99   :  { %v5078_v50 = vpop.permute.xlu0 %304 }
  0x9a   :  { %v5076_v4 = vpop.permute.xlu1 %306 }
  0x9b   :  { %471 = vrot.lane.b32.xlu0 %v4867_v6, %s4505_s20 }
  0x9c   :  { %607 = vrot.lane.b32.xlu1 %v4867_v6, %s4508_s26 }
  0x9d   :  { %v5087_v16 = vpop.permute.xlu0 %308 }
  0x9e   :  { %v5085_v28 = vpop.permute.xlu1 %310 }
  0x9f   :  { %473 = vrot.lane.b32.xlu0 %v455_v2, %s4505_s20 }
  0xa0   :  { %519 = vrot.lane.b32.xlu1 %v4934_v21, %s4506_s22 }
  0xa1   :  { %v5094_v15 = vpop.permute.xlu0 %312 }
  0xa2   :  { %v5092_v48 = vpop.permute.xlu1 %314 }
  0xa3   :  { %521 = vrot.lane.b32.xlu0 %v4587_v12, %s4506_s22 }
  0xa4   :  { %564 = vrot.lane.b32.xlu1 %v401_v37, %s4507_s25 }
  0xa5   :  { %v5101_v41 = vpop.permute.xlu0 %316 }
  0xa6   :  { %v5099_v6 = vpop.permute.xlu1 %318 }
  0xa7   :  { %421 = vrot.lane.b32.xlu0 %v4751_v30, %s4504_s13 }
  0xa8   :  { %566 = vrot.lane.b32.xlu1 %v4615_v24, %s4507_s25 }
  0xa9   :  { %v5109_v60 = vpop.permute.xlu0 %320 }
  0xaa   :  { %v5107_v21 = vpop.permute.xlu1 %322 }
  0xab   :  { %609 = vrot.lane.b32.xlu0 %v455_v2, %s4508_s26 }
  0xac   :  { %423 = vrot.lane.b32.xlu1 %v4733_v17, %s4504_s13 }
  0xad   :  { %v5116_v51 = vpop.permute.xlu0 %324 }
  0xae   :  { %v5114_v57 = vpop.permute.xlu1 %326  ;;  %8037 = vst [vmem:[#allocation16_spill] sm:$0xff] %v5116_v51 }
  0xaf   :  { %8036 = vst [vmem:[#allocation15_spill] sm:$0xff] %v5114_v57  ;;  %475 = vrot.lane.b32.xlu0 %v4864_v1, %s4505_s20 }
  0xb0   :  { %611 = vrot.lane.b32.xlu1 %v4808_v8, %s4508_s26 }
  0xb1   :  { %v5124_v52 = vpop.permute.xlu0 %328 }
  0xb2   :  { %v5122_v30 = vpop.permute.xlu1 %330  ;;  %8039 = vst [vmem:[#allocation18_spill] sm:$0xff] %v5124_v52 }
  0xb3   :  { %8038 = vst [vmem:[#allocation17_spill] sm:$0xff] %v5122_v30  ;;  %477 = vrot.lane.b32.xlu0 %v4880_v11, %s4505_s20 }
  0xb4   :  { %523 = vrot.lane.b32.xlu1 %v4691_v59, %s4506_s22 }
  0xb5   :  { %v350_v61 = vpop.permute.xlu0 %349 }
  0xb6   :  { %v5130_v37 = vpop.permute.xlu1 %351 }
  0xb7   :  { %525 = vrot.lane.b32.xlu0 %v4742_v27, %s4506_s22 }
  0xb8   :  { %568 = vrot.lane.b32.xlu1 %v4733_v17, %s4507_s25 }
  0xb9   :  { %v5138_v0 = vpop.permute.xlu0 %353 }
  0xba   :  { %v5136_v1 = vpop.permute.xlu1 %355 }
  0xbb   :  { %425 = vrot.lane.b32.xlu0 %v4776_v47, %s4504_s13 }
  0xbc   :  { %570 = vrot.lane.b32.xlu1 %v4776_v47, %s4507_s25 }
  0xbd   :  { %v5146_v8 = vpop.permute.xlu0 %357 }
  0xbe   :  { %v5144_v2 = vpop.permute.xlu1 %359 }
  0xbf   :  { %613 = vrot.lane.b32.xlu0 %v4880_v11, %s4508_s26 }
  0xc0   :  { %427 = vrot.lane.b32.xlu1 %v4772_v44, %s4504_s13 }
  0xc1   :  { %v5154_v24 = vpop.permute.xlu0 %361 }
  0xc2   :  { %v5152_v17 = vpop.permute.xlu1 %363 }
  0xc3   :  { %479 = vrot.lane.b32.xlu0 %v4876_v13, %s4505_s20 }
  0xc4   :  { %615 = vrot.lane.b32.xlu1 %v4876_v13, %s4508_s26 }
  0xc5   :  { %v5162_v52 = vpop.permute.xlu0 %365 }
  0xc6   :  { %v5160_v47 = vpop.permute.xlu1 %367 }
  0xc7   :  { %481 = vrot.lane.b32.xlu0 %v4895_v33, %s4505_s20 }
  0xc8   :  { %527 = vrot.lane.b32.xlu1 %v4719_v5, %s4506_s22 }
  0xc9   :  { %v5170_v58 = vpop.permute.xlu0 %369 }
  0xca   :  { %v5168_v11 = vpop.permute.xlu1 %371 }
  0xcb   :  { %8040 = vst [vmem:[#allocation19_spill] sm:$0xff] %v5168_v11  ;;  %529 = vrot.lane.b32.xlu0 %v4762_v39, %s4506_s22 }
  0xcc   :  { %572 = vrot.lane.b32.xlu1 %v4772_v44, %s4507_s25 }
  0xcd   :  { %v5176_v30 = vpop.permute.xlu0 %373 }
  0xce   :  { %v406_v13 = vpop.permute.xlu1 %405  ;;  %8041 = vst [vmem:[#allocation20_spill] sm:$0xff] %v5176_v30 }
  0xcf   :  { %375 = vrot.lane.b32.xlu0 %v4756_v36, %s4503_s18 }
  0xd0   :  { %429 = vrot.lane.b32.xlu1 %v4797_v63, %s4504_s13 }
  0xd1   :  { %v408_v57 = vpop.permute.xlu0 %407 }
  0xd2   :  { %v460_v7 = vpop.permute.xlu1 %459 }
  0xd3   :  { %574 = vrot.lane.b32.xlu0 %v4797_v63, %s4507_s25 }
  0xd4   :  { %617 = vrot.lane.b32.xlu1 %v4895_v33, %s4508_s26  ;;  %v643_v33 = vsel %vm642_vm3, %v4587_v12, %v5007_v25  ;;  %v48_v25 = vld [vmem:[%s7938_s0 + $0x78] sm:$0xff] }
  0xd5   :  { %v462_v32 = vpop.permute.xlu0 %461  ;;  %v5199_v63 = vsel %vm658_vm4, %v643_v33, %v5068_v42 }
  0xd6   :  { %v508_v44 = vpop.permute.xlu1 %507  ;;  %v675_v51 = vsel %vm674_vm5, %v5199_v63, %v350_v61 }
  0xd7   :  { %431 = vrot.lane.b32.xlu0 %v4794_v62, %s4504_s13  ;;  %v692_v12 = vsel %vm691_vm6, %v675_v51, %v406_v13  ;;  %v82_v51 = vrot.slane %v48_v25, 7 }
  0xd8   :  { %483 = vrot.lane.b32.xlu1 %v4892_v23, %s4505_s20  ;;  %v709_v42 = vsel %vm708_vm7, %v692_v12, %v460_v7 }
  0xd9   :  { %v510_v30 = vpop.permute.xlu0 %509  ;;  %v726_v33 = vsel %vm725_vm8, %v709_v42, %v508_v44  ;;  %v134_v25 = vsel %vm100_vm0, %v82_v51, 0.0 }
  0xda   :  { %v553_v39 = vpop.permute.xlu1 %552  ;;  %v457_v42 = vrot.slane %v134_v25, 2 }
  0xdb   :  { %619 = vrot.lane.b32.xlu0 %v4892_v23, %s4508_s26  ;;  %v644_v23 = vsel %vm642_vm3, %v4609_v22, %v5017_v19  ;;  %v743_v22 = vsel %vm742_vm9, %v726_v33, %v553_v39  ;;  %v117_v39 = vsel %vm100_vm0, 0.0, %v82_v51  ;;  %v645_v51 = vsel %vm642_vm3, %v4593_v14, %v5009_v35 }
  0xdc   :  { %485 = vrot.lane.b32.xlu1 %v4907_v55, %s4505_s20  ;;  %v660_v61 = vsel %vm658_vm4, %v644_v23, %v5078_v50  ;;  %v646_v14 = vsel %vm642_vm3, %v4603_v20, %v5015_v18 }
  0xdd   :  { %v410_v43 = vpop.permute.xlu0 %409  ;;  %v676_v13 = vsel %vm674_vm5, %v660_v61, %v5130_v37 }
  0xde   :  { %v555_v5 = vpop.permute.xlu1 %554  ;;  %v693_v7 = vsel %vm691_vm6, %v676_v13, %v408_v57 }
  0xdf   :  { %531 = vrot.lane.b32.xlu0 %v4756_v36, %s4506_s22  ;;  %v710_v36 = vsel %vm708_vm7, %v693_v7, %v462_v32 }
  0xe0   :  { %377 = vrot.lane.b32.xlu1 %v4782_v54, %s4503_s18  ;;  %v727_v50 = vsel %vm725_vm8, %v710_v36, %v510_v30  ;;  %v403_v36 = vrot.slane %v134_v25, 1 }
  0xe1   :  { %v598_v12 = vpop.permute.xlu0 %597  ;;  %v744_v37 = vsel %vm742_vm9, %v727_v50, %v555_v5  ;;  %v456_v5 = vrot.slane %v117_v39, 2 }
  0xe2   :  { %v412_v19 = vpop.permute.xlu1 %411  ;;  %v760_v11 = vsel %vm759_vm10, %v743_v22, %v598_v12 }
  0xe3   :  { %533 = vrot.lane.b32.xlu0 %v4782_v54, %s4506_s22  ;;  %4216 = vmatprep.mubr.msk.f32.mxu0 %vm792_vm11, %v760_v11 }
  0xe4   :  { %576 = vrot.lane.b32.xlu1 %v4794_v62, %s4507_s25  ;;  %v402_v62 = vrot.slane %v117_v39, 1 }
  0xe5   :  { %v464_v57 = vpop.permute.xlu0 %463 }
  0xe6   :  { %v600_v44 = vpop.permute.xlu1 %599  ;;  %v404_v23 = vsel %vm165_vm1, %v402_v62, %v403_v36 }
  0xe7   :  { %v761_v32 = vsel %vm759_vm10, %v744_v37, %v600_v44  ;;  %379 = vrot.lane.b32.xlu0 %v117_v39, %s4503_s18 }
  0xe8   :  { %433 = vrot.lane.b32.xlu1 %v4811_v9, %s4504_s13  ;;  %4217 = vmatmul.mubr.msk.f32.vlgmr.msra.gmra.mrb[0].mxu0 %vm792_vm11, %v761_v32 }
  0xe9   :  { %v466_v11 = vpop.permute.xlu0 %465 }
  0xea   :  { %v512_v30 = vpop.permute.xlu1 %511 }
  0xeb   :  { %578 = vrot.lane.b32.xlu0 %v4811_v9, %s4507_s25  ;;  %v458_v9 = vsel %vm256_vm2, %v456_v5, %v457_v42 }
  0xec   :  { %621 = vrot.lane.b32.xlu1 %v4907_v55, %s4508_s26  ;;  %v661_v55 = vsel %vm658_vm4, %v645_v51, %v5076_v4  ;;  %v662_v4 = vsel %vm658_vm4, %v646_v14, %v5087_v16 }
  0xed   :  { %v514_v33 = vpop.permute.xlu0 %513  ;;  %v677_v13 = vsel %vm674_vm5, %v661_v55, %v5138_v0  ;;  %v678_v50 = vsel %vm674_vm5, %v662_v4, %v5136_v1 }
  0xee   :  { %v557_v61 = vpop.permute.xlu1 %556  ;;  %v694_v7 = vsel %vm691_vm6, %v677_v13, %v410_v43  ;;  %v695_v20 = vsel %vm691_vm6, %v678_v50, %v412_v19  ;;  %v649_v50 = vsel %vm642_vm3, %v4684_v56, %v5033_v29 }
  0xef   :  { %435 = vrot.lane.b32.xlu0 %v404_v23, %s4504_s13  ;;  %v711_v35 = vsel %vm708_vm7, %v694_v7, %v464_v57  ;;  %v712_v57 = vsel %vm708_vm7, %v695_v20, %v466_v11 }
  0xf0   :  { %487 = vrot.lane.b32.xlu1 %v4904_v34, %s4505_s20  ;;  %v728_v0 = vsel %vm725_vm8, %v711_v35, %v512_v30  ;;  %v647_v30 = vsel %vm642_vm3, %v4649_v38, %v5025_v26 }
  0xf1   :  { %v414_v12 = vpop.permute.xlu0 %413  ;;  %v745_v43 = vsel %vm742_vm9, %v728_v0, %v557_v61  ;;  %v663_v11 = vsel %vm658_vm4, %v647_v30, %v5085_v28 }
  0xf2   :  { %v559_v22 = vpop.permute.xlu1 %558  ;;  %v679_v5 = vsel %vm674_vm5, %v663_v11, %v5146_v8 }
  0xf3   :  { %623 = vrot.lane.b32.xlu0 %v4904_v34, %s4508_s26  ;;  %v729_v34 = vsel %vm725_vm8, %v712_v57, %v514_v33  ;;  %v696_v61 = vsel %vm691_vm6, %v679_v5, %v414_v12  ;;  %v648_v33 = vsel %vm642_vm3, %v4632_v31, %v5023_v46  ;;  %v650_v57 = vsel %vm642_vm3, %v4673_v49, %v5031_v53 }
  0xf4   :  { %489 = vrot.lane.b32.xlu1 %v458_v9, %s4505_s20  ;;  %v746_v16 = vsel %vm742_vm9, %v729_v34, %v559_v22  ;;  %v664_v55 = vsel %vm658_vm4, %v648_v33, %v5094_v15  ;;  %v666_v56 = vsel %vm658_vm4, %v650_v57, %v5101_v41  ;;  %v683_v5 = vsel %vm674_vm5, %v5199_v63, %v5162_v52 }
  0xf5   :  { %v602_v44 = vpop.permute.xlu0 %601  ;;  %v680_v26 = vsel %vm674_vm5, %v664_v55, %v5144_v2  ;;  %v651_v33 = vsel %vm642_vm3, %v4713_v3, %v5041_v40 }
  0xf6   :  { %v416_v37 = vpop.permute.xlu1 %415  ;;  %v762_v18 = vsel %vm759_vm10, %v745_v43, %v602_v44  ;;  %v665_v43 = vsel %vm658_vm4, %v649_v50, %v5092_v48  ;;  %v682_v48 = vsel %vm674_vm5, %v666_v56, %v5152_v17  ;;  %v667_v55 = vsel %vm658_vm4, %v651_v33, %v5099_v6 }
  0xf7   :  { %535 = vrot.lane.b32.xlu0 %v117_v39, %s4506_s22  ;;  %4219 = vmatprep.mubr.msk.f32.mxu0 %vm792_vm11, %v762_v18  ;;  %v697_v13 = vsel %vm691_vm6, %v680_v26, %v416_v37  ;;  %v681_v37 = vsel %vm674_vm5, %v665_v43, %v5154_v24  ;;  %v684_v26 = vsel %vm674_vm5, %v667_v55, %v5160_v47 }
  0xf8   :  { %580 = vrot.lane.b32.xlu1 %v404_v23, %s4507_s25 }
  0xf9   :  { %v468_v25 = vpop.permute.xlu0 %467 }
  0xfa   :  { %v604_v1 = vpop.permute.xlu1 %603  ;;  %v713_v51 = vsel %vm708_vm7, %v696_v61, %v468_v25 }
  0xfb   :  { %v763_v32 = vsel %vm759_vm10, %v746_v16, %v604_v1  ;;  %625 = vrot.lane.b32.xlu0 %v458_v9, %s4508_s26 }
  0xfc   :  { %4220 = vmatmul.mubr.msk.f32.gmra.mrb[2].mxu0 %vm792_vm11, %v763_v32 }
  0xfd   :  { %v470_v62 = vpop.permute.xlu0 %469 }
  0xfe   :  { %v516_v19 = vpop.permute.xlu1 %515  ;;  %v714_v31 = vsel %vm708_vm7, %v697_v13, %v470_v62 }
  0xff   :  { %v730_v38 = vsel %vm725_vm8, %v713_v51, %v516_v19 }
 0x101   :  { %v518_v39 = vpop.permute.xlu0 %517 }
 0x102   :  { %v561_v36 = vpop.permute.xlu1 %560  ;;  %v731_v46 = vsel %vm725_vm8, %v714_v31, %v518_v39 }
 0x103   :  { %v747_v8 = vsel %vm742_vm9, %v730_v38, %v561_v36 }
 0x105   :  { %v418_v42 = vpop.permute.xlu0 %417 }
 0x106   :  { %v563_v23 = vpop.permute.xlu1 %562  ;;  %v698_v18 = vsel %vm691_vm6, %v681_v37, %v418_v42 }
 0x107   :  { %v748_v15 = vsel %vm742_vm9, %v731_v46, %v563_v23 }
 0x109   :  { %v606_v9 = vpop.permute.xlu0 %605 }
 0x10a   :  { %v420_v28 = vpop.permute.xlu1 %419  ;;  %v764_v22 = vsel %vm759_vm10, %v747_v8, %v606_v9 }
 0x10b   :  { %4222 = vmatprep.mubr.msk.f32.mxu0 %vm792_vm11, %v764_v22  ;;  %v699_v25 = vsel %vm691_vm6, %v682_v48, %v420_v28 }
 0x10d   :  { %v472_v7 = vpop.permute.xlu0 %471 }
 0x10e   :  { %v608_v12 = vpop.permute.xlu1 %607  ;;  %v715_v34 = vsel %vm708_vm7, %v698_v18, %v472_v7 }
 0x10f   :  { %v765_v2 = vsel %vm759_vm10, %v748_v15, %v608_v12 }
 0x110   :  { %4223 = vmatmul.mubr.msk.f32.gmra.mrb[4].mxu0 %vm792_vm11, %v765_v2  ;;  %v652_v2 = vsel %vm642_vm3, %v4691_v59, %v5039_v45  ;;  %v653_v45 = vsel %vm642_vm3, %v4742_v27, %v5049_v10 }
 0x111   :  { %v474_v35 = vpop.permute.xlu0 %473 }
 0x112   :  { %v520_v14 = vpop.permute.xlu1 %519  ;;  %v716_v49 = vsel %vm708_vm7, %v699_v25, %v474_v35 }
 0x113   :  { %v732_v29 = vsel %vm725_vm8, %v715_v34, %v520_v14  ;;  %v668_v14 = vsel %vm658_vm4, %v652_v2, %v5109_v60  ;;  %v8042_v60 = vld [vmem:[#allocation19_spill] sm:$0xff] }
 0x114   :  { %v685_v35 = vsel %vm674_vm5, %v668_v14, %v5170_v58  ;;  %v669_v58 = vsel %vm658_vm4, %v653_v45, %v5107_v21 }
 0x115   :  { %v5305_v0 = vpop.permute.xlu0 %521  ;;  %v686_v56 = vsel %vm674_vm5, %v669_v58, %v8042_v60 }
 0x116   :  { %v565_v4 = vpop.permute.xlu1 %564  ;;  %v733_v53 = vsel %vm725_vm8, %v716_v49, %v5305_v0 }
 0x117   :  { %v749_v24 = vsel %vm742_vm9, %v732_v29, %v565_v4 }
 0x119   :  { %v422_v20 = vpop.permute.xlu0 %421 }
 0x11a   :  { %v5314_v44 = vpop.permute.xlu1 %566  ;;  %v700_v61 = vsel %vm691_vm6, %v683_v5, %v422_v20 }
 0x11b   :  { %v750_v17 = vsel %vm742_vm9, %v733_v53, %v5314_v44 }
 0x11d   :  { %v610_v1 = vpop.permute.xlu0 %609 }
 0x11e   :  { %v424_v16 = vpop.permute.xlu1 %423  ;;  %v766_v32 = vsel %vm759_vm10, %v749_v24, %v610_v1 }
 0x11f   :  { %4225 = vmatprep.mubr.msk.f32.mxu0 %vm792_vm11, %v766_v32  ;;  %v701_v9 = vsel %vm691_vm6, %v684_v26, %v424_v16 }
 0x121   :  { %v476_v19 = vpop.permute.xlu0 %475 }
 0x122   :  { %v5333_v41 = vpop.permute.xlu1 %611  ;;  %v717_v51 = vsel %vm708_vm7, %v700_v61, %v476_v19 }
 0x123   :  { %v767_v62 = vsel %vm759_vm10, %v750_v17, %v5333_v41  ;;  %v8043_v17 = vld [vmem:[#allocation11_spill] sm:$0xff] }
 0x124   :  { %4226 = vmatmul.mubr.msk.f32.gmra.mrb[6].mxu0 %vm792_vm11, %v767_v62  ;;  %v8044_v62 = vld [vmem:[#allocation7_spill] sm:$0xff] }
 0x125   :  { %v478_v39 = vpop.permute.xlu0 %477 }
 0x126   :  { %v524_v36 = vpop.permute.xlu1 %523  ;;  %v718_v3 = vsel %vm708_vm7, %v701_v9, %v478_v39  ;;  %v8045_v39 = vld [vmem:[#allocation16_spill] sm:$0xff] }
 0x127   :  { %v734_v38 = vsel %vm725_vm8, %v717_v51, %v524_v36  ;;  %v654_v36 = vsel %vm642_vm3, %v8044_v62, %v8043_v17 }
 0x129   :  { %v526_v11 = vpop.permute.xlu0 %525 }
 0x12a   :  { %v569_v30 = vpop.permute.xlu1 %568  ;;  %v735_v40 = vsel %vm725_vm8, %v718_v3, %v526_v11  ;;  %v8046_v11 = vld [vmem:[#allocation20_spill] sm:$0xff] }
 0x12b   :  { %v751_v52 = vsel %vm742_vm9, %v734_v38, %v569_v30  ;;  %v670_v30 = vsel %vm658_vm4, %v654_v36, %v8045_v39 }
 0x12c   :  { %v687_v5 = vsel %vm674_vm5, %v670_v30, %v8046_v11 }
 0x12d   :  { %v426_v42 = vpop.permute.xlu0 %425 }
 0x12e   :  { %v571_v23 = vpop.permute.xlu1 %570  ;;  %v702_v43 = vsel %vm691_vm6, %v685_v35, %v426_v42  ;;  %v8052_v35 = vld [vmem:[#allocation12_spill] sm:$0xff] }
 0x12f   :  { %v752_v6 = vsel %vm742_vm9, %v735_v40, %v571_v23 }
 0x131   :  { %v614_v28 = vpop.permute.xlu0 %613 }
 0x132   :  { %v428_v8 = vpop.permute.xlu1 %427  ;;  %v768_v13 = vsel %vm759_vm10, %v751_v52, %v614_v28  ;;  %v8048_v28 = vld [vmem:[#allocation9_spill] sm:$0xff] }
 0x133   :  { %4228 = vmatprep.mubr.msk.f32.mxu0 %vm792_vm11, %v768_v13  ;;  %v703_v24 = vsel %vm691_vm6, %v686_v56, %v428_v8  ;;  %v8047_v8 = vld [vmem:[#allocation13_spill] sm:$0xff]  ;;  %v8049_v13 = vld [vmem:[#allocation15_spill] sm:$0xff] }
 0x134   :  { %v655_v9 = vsel %vm642_vm3, %v8048_v28, %v8047_v8 }
 0x135   :  { %v480_v31 = vpop.permute.xlu0 %479  ;;  %v671_v3 = vsel %vm658_vm4, %v655_v9, %v8049_v13 }
 0x136   :  { %v616_v22 = vpop.permute.xlu1 %615  ;;  %v719_v37 = vsel %vm708_vm7, %v702_v43, %v480_v31  ;;  %v8050_v31 = vld [vmem:[#allocation14_spill] sm:$0xff] }
 0x137   :  { %v769_v47 = vsel %vm759_vm10, %v752_v6, %v616_v22 }
 0x138   :  { %4229 = vmatmul.mubr.msk.f32.gmra.mrb[8].mxu0 %vm792_vm11, %v769_v47  ;;  %v657_v47 = vsel %vm642_vm3, %v4782_v54, %v8050_v31 }
 0x139   :  { %v482_v15 = vpop.permute.xlu0 %481 }
 0x13a   :  { %v528_v46 = vpop.permute.xlu1 %527  ;;  %v720_v16 = vsel %vm708_vm7, %v703_v24, %v482_v15  ;;  %v8051_v15 = vld [vmem:[#allocation17_spill] sm:$0xff] }
 0x13b   :  { %v736_v20 = vsel %vm725_vm8, %v719_v37, %v528_v46 }
 0x13d   :  { %v530_v7 = vpop.permute.xlu0 %529 }
 0x13e   :  { %v573_v12 = vpop.permute.xlu1 %572  ;;  %v737_v1 = vsel %vm725_vm8, %v720_v16, %v530_v7 }
 0x13f   :  { %v753_v18 = vsel %vm742_vm9, %v736_v20, %v573_v12  ;;  %v673_v12 = vsel %vm658_vm4, %v657_v47, %v8051_v15 }
 0x141   :  { %v376_v50 = vpop.permute.xlu0 %375 }
 0x142   :  { %v430_v4 = vpop.permute.xlu1 %429  ;;  %v688_v40 = vsel %vm674_vm5, %v671_v3, %v376_v50 }
 0x143   :  { %v704_v61 = vsel %vm691_vm6, %v687_v5, %v430_v4  ;;  %v8053_v4 = vld [vmem:[#allocation8_spill] sm:$0xff] }
 0x144   :  { %v656_v50 = vsel %vm642_vm3, %v8053_v4, %v8052_v35 }
 0x145   :  { %v575_v34 = vpop.permute.xlu0 %574 }
 0x146   :  { %v618_v57 = vpop.permute.xlu1 %617  ;;  %v754_v25 = vsel %vm742_vm9, %v737_v1, %v575_v34 }
 0x147   :  { %v770_v59 = vsel %vm759_vm10, %v753_v18, %v618_v57  ;;  %v8054_v18 = vld [vmem:[#allocation18_spill] sm:$0xff] }
 0x148   :  { %4231 = vmatprep.mubr.msk.f32.mxu0 %vm792_vm11, %v770_v59  ;;  %v672_v57 = vsel %vm658_vm4, %v656_v50, %v8054_v18 }
 0x149   :  { %v432_v48 = vpop.permute.xlu0 %431 }
 0x14a   :  { %v484_v29 = vpop.permute.xlu1 %483  ;;  %v705_v46 = vsel %vm691_vm6, %v688_v40, %v432_v48 }
 0x14b   :  { %v721_v33 = vsel %vm708_vm7, %v704_v61, %v484_v29 }
 0x14d   :  { %v620_v27 = vpop.permute.xlu0 %619 }
 0x14e   :  { %v486_v32 = vpop.permute.xlu1 %485  ;;  %v771_v10 = vsel %vm759_vm10, %v754_v25, %v620_v27 }
 0x14f   :  { %4232 = vmatmul.mubr.msk.f32.gmra.mrb[10].mxu0 %vm792_vm11, %v771_v10  ;;  %v722_v7 = vsel %vm708_vm7, %v705_v46, %v486_v32  ;;  %v5443_v10 = vld [vmem:[%s7940_s2] ss:$0 sm:$0xff] }
 0x151   :  { %v532_v49 = vpop.permute.xlu0 %531 }
 0x152   :  { %v378_v21 = vpop.permute.xlu1 %377  ;;  %v738_v51 = vsel %vm725_vm8, %v721_v33, %v532_v49 }
 0x153   :  { %v689_v45 = vsel %vm674_vm5, %v672_v57, %v378_v21 }
 0x155   :  { %v534_v19 = vpop.permute.xlu0 %533 }
 0x156   :  { %v577_v53 = vpop.permute.xlu1 %576  ;;  %v739_v2 = vsel %vm725_vm8, %v722_v7, %v534_v19 }
 0x157   :  { %v755_v55 = vsel %vm742_vm9, %v738_v51, %v577_v53 }
 0x159   :  { %v380_v42 = vpop.permute.xlu0 %379 }
 0x15a   :  { %v434_v23 = vpop.permute.xlu1 %433  ;;  %v690_v14 = vsel %vm674_vm5, %v673_v12, %v380_v42 }
 0x15b   :  { %v706_v58 = vsel %vm691_vm6, %v689_v45, %v434_v23 }
 0x15d   :  { %v579_v26 = vpop.permute.xlu0 %578 }
 0x15e   :  { %v622_v38 = vpop.permute.xlu1 %621  ;;  %v756_v43 = vsel %vm742_vm9, %v739_v2, %v579_v26 }
 0x15f   :  { %v772_v52 = vsel %vm759_vm10, %v755_v55, %v622_v38 }
 0x160   :  { %4234 = vmatprep.mubr.msk.f32.mxu0 %vm792_vm11, %v772_v52 }
 0x161   :  { %v436_v22 = vpop.permute.xlu0 %435 }
 0x162   :  { %v488_v6 = vpop.permute.xlu1 %487  ;;  %v707_v37 = vsel %vm691_vm6, %v690_v14, %v436_v22 }
 0x163   :  { %v723_v60 = vsel %vm708_vm7, %v706_v58, %v488_v6 }
 0x165   :  { %v624_v20 = vpop.permute.xlu0 %623 }
 0x166   :  { %v490_v54 = vpop.permute.xlu1 %489  ;;  %v773_v59 = vsel %vm759_vm10, %v756_v43, %v624_v20 }
 0x167   :  { %v724_v34 = vsel %vm708_vm7, %v707_v37, %v490_v54  ;;  %4235 = vmatmul.mubr.msk.f32.gmra.mrb[12].mxu0 %vm792_vm11, %v773_v59 }
 0x168   :  { %v741_v56 = vsel %vm725_vm8, %v724_v34, %v5305_v0 }
 0x169   :  { %v536_v29 = vpop.permute.xlu0 %535  ;;  %v758_v16 = vsel %vm742_vm9, %v741_v56, %v5314_v44 }
 0x16a   :  { %v740_v48 = vsel %vm725_vm8, %v723_v60, %v536_v29  ;;  %v581_v24 = vpop.permute.xlu1 %580  ;;  %v775_v27 = vsel %vm759_vm10, %v758_v16, %v5333_v41 }
 0x16b   :  { %v757_v1 = vsel %vm742_vm9, %v740_v48, %v581_v24 }
 0x16d   :  { %v626_v25 = vpop.permute.xlu0 %625 }
 0x16e   :  { %v774_v32 = vsel %vm759_vm10, %v757_v1, %v626_v25 }
 0x16f   :  { %4237 = vmatprep.mubr.msk.f32.mxu0 %vm792_vm11, %v774_v32 }
 0x170   :  { %4238 = vmatmul.mubr.msk.f32.gmra.mrb[14].mxu0 %vm792_vm11, %v775_v27 }
 0x1bb   :  { %v4218_v21 = vpop.f32.mrb[0].mxu0 }
 0x1bc   :  { %v913_v49 = vadd.f32 %v4218_v21, %v5443_v10  ;;  %v907_v53 = vpop.f32.mrb[1].mxu0 }
 0x1bd   :  { %v908_v17 = vadd.f32 %v5443_v10, %v907_v53 }
 0x1be   :  { %v5446_v19 = vmax.f32 %v913_v49, 0.0 }
 0x1bf   :  { %v5453_v62 = vmax.f32 %v908_v17, 0.0 }
 0x1c0   :  { %8055 = vst [vmem:[#allocation19_spill] sm:$0xff] %v5446_v19  ;;  %1947 = vrot.lane.b32.xlu1 %v5446_v19, %s4509_s29  ;;  %1020 = vrot.lane.b32.xlu0 %v5446_v19, %s4510_s30 }
 0x1c1   :  { %8056 = vst [vmem:[#allocation11_spill] sm:$0xff] %v5453_v62 }
 0x1c4   :  { %1945 = vrot.lane.b32.xlu0 %v5453_v62, %s4509_s29  ;;  %1018 = vrot.lane.b32.xlu1 %v5453_v62, %s4510_s30 }
 0x1cf   :  { %v4221_v36 = vpop.f32.mrb[2].mxu0 }
 0x1d0   :  { %v923_v39 = vadd.f32 %v4221_v36, %v5443_v10  ;;  %v917_v30 = vpop.f32.mrb[3].mxu0 }
 0x1d1   :  { %v918_v5 = vadd.f32 %v5443_v10, %v917_v30 }
 0x1d2   :  { %v5460_v11 = vmax.f32 %v923_v39, 0.0 }
 0x1d3   :  { %v5467_v23 = vmax.f32 %v918_v5, 0.0 }
 0x1d4   :  { %8057 = vst [vmem:[#allocation7_spill] sm:$0xff] %v5460_v11  ;;  %1951 = vrot.lane.b32.xlu1 %v5460_v11, %s4509_s29  ;;  %1024 = vrot.lane.b32.xlu0 %v5460_v11, %s4510_s30 }
 0x1d5   :  { %8058 = vst [vmem:[#allocation16_spill] sm:$0xff] %v5467_v23 }
 0x1d8   :  { %1949 = vrot.lane.b32.xlu0 %v5467_v23, %s4509_s29  ;;  %1022 = vrot.lane.b32.xlu1 %v5467_v23, %s4510_s30 }
 0x1e3   :  { %v4224_v42 = vpop.f32.mrb[4].mxu0 }
 0x1e4   :  { %v933_v61 = vadd.f32 %v4224_v42, %v5443_v10  ;;  %v927_v33 = vpop.f32.mrb[5].mxu0 }
 0x1e5   :  { %v928_v55 = vadd.f32 %v5443_v10, %v927_v33 }
 0x1e6   :  { %v5474_v51 = vmax.f32 %v933_v61, 0.0 }
 0x1e7   :  { %v5481_v38 = vmax.f32 %v928_v55, 0.0 }
 0x1e8   :  { %8059 = vst [vmem:[#allocation20_spill] sm:$0xff] %v5474_v51  ;;  %1955 = vrot.lane.b32.xlu1 %v5474_v51, %s4509_s29  ;;  %1028 = vrot.lane.b32.xlu0 %v5474_v51, %s4510_s30 }
 0x1e9   :  { %8060 = vst [vmem:[#allocation13_spill] sm:$0xff] %v5481_v38 }
 0x1ec   :  { %1953 = vrot.lane.b32.xlu0 %v5481_v38, %s4509_s29  ;;  %1026 = vrot.lane.b32.xlu1 %v5481_v38, %s4510_s30 }
 0x1f7   :  { %v4227_v26 = vpop.f32.mrb[6].mxu0 }
 0x1f8   :  { %v943_v52 = vadd.f32 %v4227_v26, %v5443_v10  ;;  %v937_v8 = vpop.f32.mrb[7].mxu0 }
 0x1f9   :  { %v938_v9 = vadd.f32 %v5443_v10, %v937_v8 }
 0x1fa   :  { %v5488_v28 = vmax.f32 %v943_v52, 0.0 }
 0x1fb   :  { %v5495_v13 = vmax.f32 %v938_v9, 0.0 }
 0x1fc   :  { %8061 = vst [vmem:[#allocation9_spill] sm:$0xff] %v5488_v28  ;;  %1959 = vrot.lane.b32.xlu1 %v5488_v28, %s4509_s29  ;;  %1032 = vrot.lane.b32.xlu0 %v5488_v28, %s4510_s30 }
 0x1fd   :  { %8062 = vst [vmem:[#allocation15_spill] sm:$0xff] %v5495_v13 }
 0x200   :  { %1957 = vrot.lane.b32.xlu0 %v5495_v13, %s4509_s29  ;;  %1030 = vrot.lane.b32.xlu1 %v5495_v13, %s4510_s30 }
 0x20b   :  { %v4230_v3 = vpop.f32.mrb[8].mxu0 }
 0x20c   :  { %v953_v40 = vadd.f32 %v4230_v3, %v5443_v10  ;;  %v947_v6 = vpop.f32.mrb[9].mxu0 }
 0x20d   :  { %v948_v31 = vadd.f32 %v5443_v10, %v947_v6 }
 0x20e   :  { %v5502_v22 = vmax.f32 %v953_v40, 0.0 }
 0x20f   :  { %v5509_v47 = vmax.f32 %v948_v31, 0.0 }
 0x210   :  { %8063 = vst [vmem:[#allocation14_spill] sm:$0xff] %v5502_v22  ;;  %1963 = vrot.lane.b32.xlu1 %v5502_v22, %s4509_s29  ;;  %1036 = vrot.lane.b32.xlu0 %v5502_v22, %s4510_s30 }
 0x211   :  { %8064 = vst [vmem:[#allocation17_spill] sm:$0xff] %v5509_v47 }
 0x214   :  { %1961 = vrot.lane.b32.xlu0 %v5509_v47, %s4509_s29  ;;  %1034 = vrot.lane.b32.xlu1 %v5509_v47, %s4510_s30 }
 0x222   :  { %v4233_v46 = vpop.f32.mrb[10].mxu0 }
 0x223   :  { %v963_v15 = vadd.f32 %v4233_v46, %v5443_v10  ;;  %v957_v12 = vpop.f32.mrb[11].mxu0 }
 0x224   :  { %v958_v2 = vadd.f32 %v5443_v10, %v957_v12 }
 0x225   :  { %v5516_v7 = vmax.f32 %v963_v15, 0.0 }
 0x226   :  { %v5523_v14 = vmax.f32 %v958_v2, 0.0 }
 0x227   :  { %8065 = vst [vmem:[#allocation12_spill] sm:$0xff] %v5516_v7  ;;  %1967 = vrot.lane.b32.xlu1 %v5516_v7, %s4509_s29  ;;  %1040 = vrot.lane.b32.xlu0 %v5516_v7, %s4510_s30 }
 0x228   :  { %8066 = vst [vmem:[#allocation8_spill] sm:$0xff] %v5523_v14 }
 0x22b   :  { %1965 = vrot.lane.b32.xlu0 %v5523_v14, %s4509_s29  ;;  %1038 = vrot.lane.b32.xlu1 %v5523_v14, %s4510_s30 }
 0x232   :  { %v1021_v34 = vpop.permute.xlu0 %1020  ;;  %v1948_v58 = vpop.permute.xlu1 %1947 }
 0x233   :  { %v1978_v56 = vrot.slane %v1948_v58, 7  ;;  %v1051_v29 = vrot.slane %v1021_v34, 7 }
 0x235   :  { %v5558_v24 = vsel %vm100_vm0, 0.0, %v1978_v56  ;;  %v5561_v16 = vsel %vm100_vm0, 0.0, %v1051_v29  ;;  %v1099_v25 = vsel %vm100_vm0, %v1051_v29, 0.0  ;;  %v2026_v27 = vsel %vm100_vm0, %v1978_v56, 0.0 }
 0x236   :  { %v1946_v48 = vpop.permute.xlu0 %1945  ;;  %8071 = vst [vmem:[#allocation24_spill] sm:$0xff] %v5561_v16  ;;  %v1019_v32 = vpop.permute.xlu1 %1018  ;;  %v1145_v53 = vrot.slane %v5561_v16, 1  ;;  %v2073_v17 = vrot.slane %v2026_v27, 1  ;;  %v1230_v36 = vrot.slane %v1099_v25, 2  ;;  %v2072_v5 = vrot.slane %v5558_v24, 1 }
 0x237   :  { %v1977_v1 = vrot.slane %v1946_v48, 7  ;;  %v1050_v21 = vrot.slane %v1019_v32, 7  ;;  %v1229_v42 = vrot.slane %v5561_v16, 2  ;;  %v2157_v61 = vrot.slane %v2026_v27, 2 }
 0x238   :  { %v2074_v33 = vsel %vm165_vm1, %v2072_v5, %v2073_v17  ;;  %v2156_v26 = vrot.slane %v5558_v24, 2 }
 0x239   :  { %v5570_v49 = vsel %vm100_vm0, 0.0, %v1977_v1  ;;  %v5578_v39 = vsel %vm100_vm0, 0.0, %v1050_v21  ;;  %v5591_v55 = vsel %vm256_vm2, %v1229_v42, %v1230_v36  ;;  %v1098_v8 = vsel %vm100_vm0, %v1050_v21, 0.0 }
 0x23a   :  { %v4236_v35 = vpop.f32.mrb[12].mxu0  ;;  %8072 = vst [vmem:[#allocation25_spill] sm:$0xff] %v5578_v39  ;;  %v2158_v52 = vsel %vm256_vm2, %v2156_v26, %v2157_v61  ;;  %v1143_v3 = vrot.slane %v1098_v8, 1  ;;  %v2025_v40 = vsel %vm100_vm0, %v1977_v1, 0.0  ;;  %v1142_v31 = vrot.slane %v5578_v39, 1 }
 0x23b   :  { %v973_v4 = vadd.f32 %v4236_v35, %v5443_v10  ;;  %v967_v50 = vpop.f32.mrb[13].mxu0  ;;  %v1227_v46 = vrot.slane %v1098_v8, 2  ;;  %v2070_v15 = vrot.slane %v2025_v40, 1  ;;  %v2069_v2 = vrot.slane %v5570_v49, 1 }
 0x23c   :  { %v968_v37 = vadd.f32 %v5443_v10, %v967_v50  ;;  %v1226_v35 = vrot.slane %v5578_v39, 2  ;;  %v2154_v34 = vrot.slane %v2025_v40, 2  ;;  %v2153_v56 = vrot.slane %v5570_v49, 2  ;;  %v2647_v40 = vld [vmem:[%s7943_s5] sm:$0xff] }
 0x23d   :  { %v5530_v43 = vmax.f32 %v973_v4, 0.0  ;;  %v1144_v4 = vsel %vm165_vm1, %v1142_v31, %v1143_v3 }
 0x23e   :  { %v5537_v54 = vmax.f32 %v968_v37, 0.0  ;;  %v1228_v50 = vsel %vm256_vm2, %v1226_v35, %v1227_v46  ;;  %v2071_v37 = vsel %vm165_vm1, %v2069_v2, %v2070_v15 }
 0x23f   :  { %8067 = vst [vmem:[#allocation18_spill] sm:$0xff] %v5530_v43  ;;  %1971 = vrot.lane.b32.xlu1 %v5530_v43, %s4509_s29  ;;  %1044 = vrot.lane.b32.xlu0 %v5530_v43, %s4510_s30 }
 0x240   :  { %8068 = vst [vmem:[#allocation21_spill] sm:$0xff] %v5537_v54 }
 0x243   :  { %1969 = vrot.lane.b32.xlu0 %v5537_v54, %s4509_s29  ;;  %1042 = vrot.lane.b32.xlu1 %v5537_v54, %s4510_s30  ;;  %v4239_v20 = vpop.f32.mrb[14].mxu0 }
 0x244   :  { %v983_v18 = vadd.f32 %v4239_v20, %v5443_v10  ;;  %v977_v57 = vpop.f32.mrb[15].mxu0 }
 0x245   :  { %v978_v45 = vadd.f32 %v5443_v10, %v977_v57  ;;  %v1146_v10 = vrot.slane %v1099_v25, 1  ;;  %v2155_v25 = vsel %vm256_vm2, %v2153_v56, %v2154_v34 }
 0x246   :  { %v5544_v59 = vmax.f32 %v983_v18, 0.0  ;;  %v1025_v9 = vpop.permute.xlu0 %1024  ;;  %v1952_v20 = vpop.permute.xlu1 %1951 }
 0x247   :  { %v5551_v60 = vmax.f32 %v978_v45, 0.0  ;;  %v5581_v30 = vsel %vm165_vm1, %v1145_v53, %v1146_v10  ;;  %v1053_v6 = vrot.slane %v1025_v9, 7  ;;  %v1980_v18 = vrot.slane %v1952_v20, 7 }
 0x248   :  { %8069 = vst [vmem:[#allocation22_spill] sm:$0xff] %v5544_v59  ;;  %1975 = vrot.lane.b32.xlu1 %v5544_v59, %s4509_s29  ;;  %1048 = vrot.lane.b32.xlu0 %v5544_v59, %s4510_s30  ;;  %8073 = vst [vmem:[#allocation26_spill] sm:$0xff] %v5581_v30 }
 0x249   :  { %8070 = vst [vmem:[#allocation23_spill] sm:$0xff] %v5551_v60  ;;  %v5609_v12 = vsel %vm100_vm0, 0.0, %v1053_v6  ;;  %v5624_v45 = vsel %vm100_vm0, 0.0, %v1980_v18  ;;  %v1101_v29 = vsel %vm100_vm0, %v1053_v6, 0.0  ;;  %v2028_v5 = vsel %vm100_vm0, %v1980_v18, 0.0  ;;  %v2648_v6 = vld [vmem:[%s7943_s5 + $0x8] sm:$0xff] }
 0x24a   :  { %8074 = vst [vmem:[#allocation27_spill] sm:$0xff] %v5609_v12  ;;  %v1950_v57 = vpop.permute.xlu0 %1949  ;;  %v1152_v48 = vrot.slane %v1101_v29, 1  ;;  %v1151_v32 = vrot.slane %v5609_v12, 1  ;;  %v1236_v27 = vrot.slane %v1101_v29, 2  ;;  %v1235_v21 = vrot.slane %v5609_v12, 2  ;;  %v1023_v53 = vpop.permute.xlu1 %1022 }
 0x24b   :  { %v1979_v58 = vrot.slane %v1950_v57, 7  ;;  %v1052_v17 = vrot.slane %v1023_v53, 7  ;;  %v2079_v42 = vrot.slane %v2028_v5, 1  ;;  %v2163_v8 = vrot.slane %v2028_v5, 2 }
 0x24c   :  { %1973 = vrot.lane.b32.xlu0 %v5551_v60, %s4509_s29  ;;  %1046 = vrot.lane.b32.xlu1 %v5551_v60, %s4510_s30  ;;  %v5640_v10 = vsel %vm165_vm1, %v1151_v32, %v1152_v48  ;;  %v5647_v36 = vsel %vm256_vm2, %v1235_v21, %v1236_v27  ;;  %v2162_v3 = vrot.slane %v5624_v45, 2  ;;  %v4408_v31 = vpack.c.bf16 %v2648_v6, %v2647_v40  ;;  %v2651_v48 = vld [vmem:[%s7943_s5 + $0x20] sm:$0xff] }
 0x24d   :  { %v5632_v1 = vsel %vm100_vm0, 0.0, %v1979_v58  ;;  %8075 = vst [vmem:[#allocation28_spill] sm:$0xff] %v5640_v10  ;;  %v5655_v61 = vsel %vm100_vm0, 0.0, %v1052_v17  ;;  %v1100_v18 = vsel %vm100_vm0, %v1052_v17, 0.0 }
 0x24e   :  { %8076 = vst [vmem:[#allocation29_spill] sm:$0xff] %v5655_v61  ;;  %v5683_v35 = vsel %vm256_vm2, %v2162_v3, %v2163_v8  ;;  %4409 = vmatprep.subr.bf16.mxu0 %v4408_v31  ;;  %v2075_v29 = vrot.slane %v5632_v1, 1  ;;  %v1149_v27 = vrot.slane %v1100_v18, 1  ;;  %v1148_v17 = vrot.slane %v5655_v61, 1 }
 0x24f   :  { %4411 = vmatpush3.bf16.msra.mxu0 %v4408_v31  ;;  %v2159_v5 = vrot.slane %v5632_v1, 2  ;;  %v1233_v6 = vrot.slane %v1100_v18, 2 }
 0x250   :  { %2241 = vrot.lane.b32.xlu1 %v5558_v24, %s4503_s18  ;;  %1314 = vrot.lane.b32.xlu0 %v5561_v16, %s4503_s18  ;;  %v5732_v31 = vsel %vm165_vm1, %v1148_v17, %v1149_v27 }
 0x251   :  { %8078 = vst [vmem:[#allocation31_spill] sm:$0xff] %v5732_v31 }
 0x254   :  { %2397 = vrot.lane.b32.xlu1 %v5558_v24, %s4506_s22  ;;  %2239 = vrot.lane.b32.xlu0 %v5570_v49, %s4503_s18 }
 0x258   :  { %1312 = vrot.lane.b32.xlu1 %v5578_v39, %s4503_s18  ;;  %1186 = vrot.lane.b32.xlu0 %v5581_v30, %s4501_s21 }
 0x25a   :  { %v5662_v26 = vpop.permute.xlu1 %1955 }
 0x25c   :  { %2113 = vrot.lane.b32.xlu1 %v2074_v33, %s4501_s21  ;;  %1270 = vrot.lane.b32.xlu0 %v5591_v55, %s4502_s17 }
 0x25e   :  { %v5678_v15 = vpop.permute.xlu1 %1026 }
 0x260   :  { %2197 = vrot.lane.b32.xlu1 %v2158_v52, %s4502_s17  ;;  %1370 = vrot.lane.b32.xlu0 %v5581_v30, %s4504_s13 }
 0x264   :  { %2439 = vrot.lane.b32.xlu1 %v2074_v33, %s4507_s25  ;;  %2297 = vrot.lane.b32.xlu0 %v2074_v33, %s4504_s13  ;;  %v2078_v33 = vrot.slane %v5624_v45, 1 }
 0x266   :  { %v2080_v9 = vsel %vm165_vm1, %v2078_v33, %v2079_v42  ;;  %v2653_v42 = vld [vmem:[%s7943_s5 + $0x30] sm:$0xff]  ;;  %v2654_v33 = vld [vmem:[%s7943_s5 + $0x38] sm:$0xff] }
 0x267   :  { %v4420_v40 = vpack.c.bf16 %v2654_v33, %v2653_v42  ;;  %v1054_v42 = vrot.slane %v5678_v15, 7 }
 0x268   :  { %2481 = vrot.lane.b32.xlu1 %v2158_v52, %s4508_s26  ;;  %2351 = vrot.lane.b32.xlu0 %v2158_v52, %s4505_s20  ;;  %v5664_v52 = vpop.permute.xlu0 %1028 }
 0x269   :  { %v1055_v46 = vrot.slane %v5664_v52, 7 }
 0x26b   :  { %v5699_v34 = vsel %vm100_vm0, 0.0, %v1055_v46  ;;  %v1103_v17 = vsel %vm100_vm0, %v1055_v46, 0.0 }
 0x26c   :  { %1184 = vrot.lane.b32.xlu1 %v1144_v4, %s4501_s21  ;;  %1318 = vrot.lane.b32.xlu0 %v5609_v12, %s4503_s18  ;;  %v5680_v2 = vpop.permute.xlu0 %1953  ;;  %8077 = vst [vmem:[#allocation30_spill] sm:$0xff] %v5699_v34 }
 0x270   :  { %1268 = vrot.lane.b32.xlu1 %v1228_v50, %s4502_s17  ;;  %2111 = vrot.lane.b32.xlu0 %v2071_v37, %s4501_s21  ;;  %v5703_v56 = vpop.permute.xlu0 %1032 }
 0x271   :  { %v1057_v59 = vrot.slane %v5703_v56, 7 }
 0x274   :  { %1368 = vrot.lane.b32.xlu1 %v1144_v4, %s4504_s13  ;;  %2295 = vrot.lane.b32.xlu0 %v2071_v37, %s4504_s13  ;;  %v2027_v4 = vsel %vm100_vm0, %v1979_v58, 0.0  ;;  %v2650_v37 = vld [vmem:[%s7943_s5 + $0x18] sm:$0xff]  ;;  %v5701_v58 = vpop.permute.xlu1 %1959  ;;  %v5729_v3 = vpop.permute.xlu0 %1957 }
 0x275   :  { %v2076_v57 = vrot.slane %v2027_v4, 1  ;;  %v2160_v21 = vrot.slane %v2027_v4, 2  ;;  %v1232_v4 = vrot.slane %v5655_v61, 2 }
 0x277   :  { %v2077_v53 = vsel %vm165_vm1, %v2075_v29, %v2076_v57  ;;  %v5747_v18 = vsel %vm256_vm2, %v1232_v4, %v1233_v6  ;;  %v7957_v57 = vrot.slane %v5662_v26, 7  ;;  %v1241_v6 = vrot.slane %v5699_v34, 2 }
 0x278   :  { %1422 = vrot.lane.b32.xlu1 %v1228_v50, %s4505_s20  ;;  %2245 = vrot.lane.b32.xlu0 %v5624_v45, %s4503_s18  ;;  %v2649_v50 = vld [vmem:[%s7943_s5 + $0x10] sm:$0xff]  ;;  %v5727_v8 = vpop.permute.xlu1 %1030  ;;  %v1102_v4 = vsel %vm100_vm0, %v1054_v42, 0.0 }
 0x279   :  { %v4412_v20 = vpack.c.bf16 %v2650_v37, %v2649_v50  ;;  %v2655_v50 = vld [vmem:[%s7943_s5 + $0x40] sm:$0xff]  ;;  %v1239_v60 = vrot.slane %v1102_v4, 2  ;;  %v1056_v13 = vrot.slane %v5727_v8, 7 }
 0x27b   :  { %4413 = vmatprep.subr.bf16.mxu0 %v4412_v20  ;;  %v1104_v8 = vsel %vm100_vm0, %v1056_v13, 0.0 }
 0x27c   :  { %2195 = vrot.lane.b32.xlu1 %v2155_v25, %s4502_s17  ;;  %2399 = vrot.lane.b32.xlu0 %v5632_v1, %s4506_s22  ;;  %v1161_v62 = vrot.slane %v1104_v8, 1 }
 0x27d   :  { %4415 = vmatpush3.bf16.msra.mxu0 %v4412_v20 }
 0x280   :  { %2349 = vrot.lane.b32.xlu1 %v2155_v25, %s4505_s20  ;;  %1190 = vrot.lane.b32.xlu0 %v5640_v10, %s4501_s21  ;;  %v2652_v25 = vld [vmem:[%s7943_s5 + $0x28] sm:$0xff] }
 0x281   :  { %v4416_v32 = vpack.c.bf16 %v2652_v25, %v2651_v48  ;;  %v5763_v25 = vsel %vm100_vm0, 0.0, %v7957_v57 }
 0x282   :  { %v5742_v37 = vpop.permute.xlu1 %1963  ;;  %v5744_v20 = vpop.permute.xlu0 %1036 }
 0x283   :  { %4417 = vmatprep.subr.bf16.mxu0 %v4416_v32  ;;  %v1059_v51 = vrot.slane %v5744_v20, 7 }
 0x284   :  { %2401 = vrot.lane.b32.xlu1 %v5624_v45, %s4506_s22  ;;  %1274 = vrot.lane.b32.xlu0 %v5647_v36, %s4502_s17 }
 0x285   :  { %4419 = vmatpush3.bf16.msra.mxu0 %v4416_v32  ;;  %v1981_v32 = vrot.slane %v5680_v2, 7  ;;  %v1157_v2 = vrot.slane %v5699_v34, 1  ;;  %v1107_v20 = vsel %vm100_vm0, %v1059_v51, 0.0 }
 0x286   :  { %4421 = vmatprep.subr.bf16.mxu0 %v4420_v40  ;;  %v5753_v29 = vpop.permute.xlu1 %1034  ;;  %v5755_v48 = vpop.permute.xlu0 %1961 }
 0x287   :  { %v5778_v33 = vsel %vm100_vm0, 0.0, %v1981_v32  ;;  %v1058_v19 = vrot.slane %v5753_v29, 7 }
 0x288   :  { %1316 = vrot.lane.b32.xlu1 %v5655_v61, %s4503_s18  ;;  %1374 = vrot.lane.b32.xlu0 %v5640_v10, %s4504_s13 }
 0x289   :  { %4423 = vmatpush3.bf16.msra.mxu0 %v4420_v40  ;;  %v5789_v40 = vsel %vm100_vm0, 0.0, %v1054_v42  ;;  %v5902_v29 = vsel %vm100_vm0, 0.0, %v1058_v19 }
 0x28a   :  { %4298 = vmatprep.subr.mxu0 %v2655_v50  ;;  %8079 = vst [vmem:[#allocation32_spill] sm:$0xff] %v5789_v40  ;;  %8090 = vst [vmem:[#allocation43_spill] sm:$0xff] %v5902_v29 }
 0x28c   :  { %2117 = vrot.lane.b32.xlu0 %v2080_v9, %s4501_s21  ;;  %2243 = vrot.lane.b32.xlu1 %v5632_v1, %s4503_s18 }
 0x28d   :  { %4299 = vmatpush3.msra.mxu0 %v2655_v50 }
 0x290   :  { %2355 = vrot.lane.b32.xlu0 %v5683_v35, %s4505_s20  ;;  %2301 = vrot.lane.b32.xlu1 %v2080_v9, %s4504_s13 }
 0x294   :  { %2201 = vrot.lane.b32.xlu1 %v5683_v35, %s4502_s17  ;;  %1322 = vrot.lane.b32.xlu0 %v5699_v34, %s4503_s18 }
 0x298   :  { %2443 = vrot.lane.b32.xlu1 %v2080_v9, %s4507_s25  ;;  %2115 = vrot.lane.b32.xlu0 %v2077_v53, %s4501_s21  ;;  %v2161_v9 = vsel %vm256_vm2, %v2159_v5, %v2160_v21  ;;  %v1158_v5 = vrot.slane %v1103_v17, 1 }
 0x299   :  { %v5766_v27 = vpop.permute.xlu1 %1967  ;;  %v5768_v21 = vpop.permute.xlu0 %1040 }
 0x29a   :  { %v5792_v15 = vsel %vm165_vm1, %v1157_v2, %v1158_v5  ;;  %v1154_v5 = vrot.slane %v5789_v40, 1 }
 0x29b   :  { %8080 = vst [vmem:[#allocation33_spill] sm:$0xff] %v5792_v15 }
 0x29c   :  { %1188 = vrot.lane.b32.xlu1 %v5732_v31, %s4501_s21  ;;  %2199 = vrot.lane.b32.xlu0 %v2161_v9, %s4502_s17 }
 0x29d   :  { %v5784_v52 = vpop.permute.xlu1 %1038  ;;  %v5786_v46 = vpop.permute.xlu0 %1965 }
 0x2a0   :  { %1272 = vrot.lane.b32.xlu1 %v5747_v18, %s4502_s17  ;;  %2441 = vrot.lane.b32.xlu0 %v2077_v53, %s4507_s25 }
 0x2a4   :  { %1372 = vrot.lane.b32.xlu1 %v5732_v31, %s4504_s13  ;;  %2353 = vrot.lane.b32.xlu0 %v2161_v9, %s4505_s20 }
 0x2a8   :  { %2299 = vrot.lane.b32.xlu1 %v2077_v53, %s4504_s13  ;;  %2249 = vrot.lane.b32.xlu0 %v5763_v25, %s4503_s18  ;;  %v1242_v53 = vrot.slane %v1103_v17, 2  ;;  %v1155_v17 = vrot.slane %v1102_v4, 1 }
 0x2aa   :  { %v5805_v57 = vsel %vm256_vm2, %v1241_v6, %v1242_v53  ;;  %v5818_v54 = vsel %vm165_vm1, %v1154_v5, %v1155_v17  ;;  %v1238_v53 = vrot.slane %v5789_v40, 2  ;;  %v2029_v6 = vsel %vm100_vm0, %v1981_v32, 0.0 }
 0x2ab   :  { %8081 = vst [vmem:[#allocation34_spill] sm:$0xff] %v5805_v57  ;;  %8082 = vst [vmem:[#allocation35_spill] sm:$0xff] %v5818_v54  ;;  %v2082_v4 = vrot.slane %v2029_v6, 1  ;;  %v5834_v17 = vsel %vm100_vm0, 0.0, %v1057_v59  ;;  %v2081_v5 = vrot.slane %v5778_v33, 1  ;;  %v2166_v47 = vrot.slane %v2029_v6, 2 }
 0x2ac   :  { %2483 = vrot.lane.b32.xlu1 %v2161_v9, %s4508_s26  ;;  %2403 = vrot.lane.b32.xlu0 %v5778_v33, %s4506_s22  ;;  %v5831_v56 = vsel %vm256_vm2, %v1238_v53, %v1239_v60  ;;  %v2165_v60 = vrot.slane %v5778_v33, 2  ;;  %v5850_v53 = vsel %vm100_vm0, %v1057_v59, 0.0  ;;  %v5867_v59 = vsel %vm100_vm0, 0.0, %v1056_v13 }
 0x2ad   :  { %v5846_v22 = vsel %vm165_vm1, %v2081_v5, %v2082_v4  ;;  %v1363_v6 = vrot.slane %v5850_v53, 1  ;;  %v1362_v4 = vrot.slane %v5834_v17, 1  ;;  %8084 = vst [vmem:[#allocation37_spill] sm:$0xff] %v5867_v59  ;;  %v5884_v13 = vsel %vm100_vm0, 0.0, %v1059_v51 }
 0x2ae   :  { %v5864_v5 = vsel %vm256_vm2, %v2165_v60, %v2166_v47  ;;  %v1160_v60 = vrot.slane %v5867_v59, 1  ;;  %8086 = vst [vmem:[#allocation39_spill] sm:$0xff] %v5884_v13  ;;  %v1244_v34 = vrot.slane %v5867_v59, 2  ;;  %v1166_v51 = vrot.slane %v5884_v13, 1 }
 0x2af   :  { %v5880_v47 = vsel %vm165_vm1, %v1362_v4, %v1363_v6  ;;  %v1167_v4 = vrot.slane %v1107_v20, 1 }
 0x2b0   :  { %1320 = vrot.lane.b32.xlu1 %v5789_v40, %s4503_s18  ;;  %1194 = vrot.lane.b32.xlu0 %v5792_v15, %s4501_s21  ;;  %8085 = vst [vmem:[#allocation38_spill] sm:$0xff] %v5880_v47 }
 0x2b1   :  { %v5800_v9 = vpop.permute.xlu1 %1971  ;;  %v5802_v50 = vpop.permute.xlu0 %1044 }
 0x2b4   :  { %1278 = vrot.lane.b32.xlu0 %v5805_v57, %s4502_s17  ;;  %2247 = vrot.lane.b32.xlu1 %v5778_v33, %s4503_s18 }
 0x2b5   :  { %v5812_v42 = vpop.permute.xlu1 %1042  ;;  %v5814_v2 = vpop.permute.xlu0 %1969 }
 0x2b8   :  { %1378 = vrot.lane.b32.xlu0 %v5792_v15, %s4504_s13  ;;  %1192 = vrot.lane.b32.xlu1 %v5818_v54, %s4501_s21  ;;  %v5897_v15 = vsel %vm165_vm1, %v1160_v60, %v1161_v62  ;;  %v1163_v62 = vrot.slane %v5902_v29, 1 }
 0x2b9   :  { %8089 = vst [vmem:[#allocation42_spill] sm:$0xff] %v5897_v15 }
 0x2ba   :  { %v5826_v43 = vpop.permute.xlu1 %1975  ;;  %v5828_v14 = vpop.permute.xlu0 %1048 }
 0x2bc   :  { %1276 = vrot.lane.b32.xlu1 %v5831_v56, %s4502_s17  ;;  %1326 = vrot.lane.b32.xlu0 %v5834_v17, %s4503_s18 }
 0x2be   :  { %v5841_v32 = vpop.permute.xlu1 %1046  ;;  %v5843_v7 = vpop.permute.xlu0 %1973 }
 0x2c0   :  { %1376 = vrot.lane.b32.xlu1 %v5818_v54, %s4504_s13  ;;  %2119 = vrot.lane.b32.xlu0 %v5846_v22, %s4501_s21  ;;  %v1106_v54 = vsel %vm100_vm0, %v1058_v19, 0.0 }
 0x2c1   :  { %v1164_v60 = vrot.slane %v1106_v54, 1  ;;  %v1248_v10 = vrot.slane %v1106_v54, 2 }
 0x2c2   :  { %v5857_v28 = vpop.permute.xlu1 %2241  ;;  %v5859_v38 = vpop.permute.xlu0 %1314 }
 0x2c3   :  { %8083 = vst [vmem:[#allocation36_spill] sm:$0xff] %v5859_v38  ;;  %v1245_v38 = vrot.slane %v1104_v8, 2  ;;  %v1165_v40 = vsel %vm165_vm1, %v1163_v62, %v1164_v60  ;;  %v1060_v62 = vrot.slane %v5784_v52, 7 }
 0x2c4   :  { %2303 = vrot.lane.b32.xlu1 %v5846_v22, %s4504_s13  ;;  %2203 = vrot.lane.b32.xlu0 %v5864_v5, %s4502_s17 }
 0x2c5   :  { %v1108_v52 = vsel %vm100_vm0, %v1060_v62, 0.0 }
 0x2c6   :  { %v5875_v23 = vpop.permute.xlu1 %2397  ;;  %v5877_v11 = vpop.permute.xlu0 %2239 }
 0x2c8   :  { %1324 = vrot.lane.b32.xlu1 %v5867_v59, %s4503_s18  ;;  %1382 = vrot.lane.b32.xlu0 %v5880_v47, %s4504_s13  ;;  %v5918_v47 = vsel %vm165_vm1, %v1166_v51, %v1167_v4 }
 0x2c9   :  { %8093 = vst [vmem:[#allocation46_spill] sm:$0xff] %v5918_v47 }
 0x2ca   :  { %v5892_v39 = vpop.permute.xlu1 %1312  ;;  %v5894_v6 = vpop.permute.xlu0 %1186 }
 0x2cb   :  { %8087 = vst [vmem:[#allocation40_spill] sm:$0xff] %v5892_v39  ;;  %8088 = vst [vmem:[#allocation41_spill] sm:$0xff] %v5894_v6  ;;  %v5915_v39 = vsel %vm256_vm2, %v1244_v34, %v1245_v38  ;;  %v1061_v38 = vrot.slane %v5768_v21, 7 }
 0x2cc   :  { %1196 = vrot.lane.b32.xlu1 %v5897_v15, %s4501_s21  ;;  %1330 = vrot.lane.b32.xlu0 %v5884_v13, %s4503_s18  ;;  %8092 = vst [vmem:[#allocation45_spill] sm:$0xff] %v5915_v39 }
 0x2cd   :  { %v1109_v54 = vsel %vm100_vm0, %v1061_v38, 0.0 }
 0x2ce   :  { %v5909_v8 = vpop.permute.xlu1 %2113  ;;  %v5911_v6 = vpop.permute.xlu0 %1270 }
 0x2cf   :  { %8091 = vst [vmem:[#allocation44_spill] sm:$0xff] %v5911_v6  ;;  %v1247_v6 = vrot.slane %v5902_v29, 2 }
 0x2d0   :  { %1280 = vrot.lane.b32.xlu1 %v5915_v39, %s4502_s17  ;;  %1386 = vrot.lane.b32.xlu0 %v5918_v47, %s4504_s13  ;;  %v1065_v39 = vrot.slane %v5828_v14, 7 }
 0x2d1   :  { %v5939_v51 = vsel %vm256_vm2, %v1247_v6, %v1248_v10  ;;  %v1173_v10 = vrot.slane %v1109_v54, 1  ;;  %v1250_v6 = vrot.slane %v5884_v13, 2 }
 0x2d2   :  { %v5924_v19 = vpop.permute.xlu1 %2197  ;;  %v5926_v59 = vpop.permute.xlu0 %1370  ;;  %8095 = vst [vmem:[#allocation48_spill] sm:$0xff] %v5939_v51  ;;  %v6065_v14 = vsel %vm100_vm0, %v1065_v39, 0.0 }
 0x2d3   :  { %8094 = vst [vmem:[#allocation47_spill] sm:$0xff] %v5926_v59  ;;  %v5942_v59 = vsel %vm100_vm0, 0.0, %v1061_v38  ;;  %v5957_v38 = vsel %vm100_vm0, 0.0, %v1060_v62  ;;  %8111 = vst [vmem:[#allocation64_spill] sm:$0xff] %v6065_v14 }
 0x2d4   :  { %1380 = vrot.lane.b32.xlu1 %v5897_v15, %s4504_s13  ;;  %1198 = vrot.lane.b32.xlu0 %v1165_v40, %s4501_s21  ;;  %8096 = vst [vmem:[#allocation49_spill] sm:$0xff] %v5942_v59  ;;  %v1251_v15 = vrot.slane %v1107_v20, 2  ;;  %v1172_v12 = vrot.slane %v5942_v59, 1  ;;  %8097 = vst [vmem:[#allocation50_spill] sm:$0xff] %v5957_v38  ;;  %v1170_v20 = vrot.slane %v1108_v52, 1  ;;  %v1169_v61 = vrot.slane %v5957_v38, 1 }
 0x2d6   :  { %v5934_v34 = vpop.permute.xlu1 %2439  ;;  %v5936_v4 = vpop.permute.xlu0 %2297  ;;  %v5969_v13 = vsel %vm256_vm2, %v1250_v6, %v1251_v15  ;;  %v5972_v30 = vsel %vm165_vm1, %v1172_v12, %v1173_v10  ;;  %v1253_v15 = vrot.slane %v5957_v38, 2  ;;  %v1063_v12 = vrot.slane %v5802_v50, 7 }
 0x2d7   :  { %8100 = vst [vmem:[#allocation53_spill] sm:$0xff] %v5969_v13  ;;  %8101 = vst [vmem:[#allocation54_spill] sm:$0xff] %v5972_v30 }
 0x2d8   :  { %1328 = vrot.lane.b32.xlu1 %v5902_v29, %s4503_s18  ;;  %1282 = vrot.lane.b32.xlu0 %v5939_v51, %s4502_s17 }
 0x2da   :  { %v5950_v21 = vpop.permute.xlu1 %2481  ;;  %v5952_v60 = vpop.permute.xlu0 %2351 }
 0x2dc   :  { %1200 = vrot.lane.b32.xlu1 %v5918_v47, %s4501_s21  ;;  %1334 = vrot.lane.b32.xlu0 %v5942_v59, %s4503_s18  ;;  %v5984_v47 = vsel %vm165_vm1, %v1169_v61, %v1170_v20  ;;  %v1111_v61 = vsel %vm100_vm0, %v1063_v12, 0.0  ;;  %v1062_v20 = vrot.slane %v5812_v42, 7 }
 0x2de   :  { %v5964_v29 = vpop.permute.xlu1 %1184  ;;  %v5966_v31 = vpop.permute.xlu0 %1318  ;;  %v1110_v42 = vsel %vm100_vm0, %v1062_v20, 0.0 }
 0x2df   :  { %8098 = vst [vmem:[#allocation51_spill] sm:$0xff] %v5964_v29  ;;  %8099 = vst [vmem:[#allocation52_spill] sm:$0xff] %v5966_v31  ;;  %v1254_v31 = vrot.slane %v1108_v52, 2  ;;  %v5997_v52 = vsel %vm100_vm0, 0.0, %v1063_v12  ;;  %v6012_v12 = vsel %vm100_vm0, 0.0, %v1062_v20  ;;  %v2551_v20 = vsel %vm674_vm5, %v5199_v63, %v5877_v11 }
 0x2e0   :  { %1284 = vrot.lane.b32.xlu1 %v5969_v13, %s4502_s17  ;;  %1390 = vrot.lane.b32.xlu0 %v5972_v30, %s4504_s13  ;;  %8105 = vst [vmem:[#allocation58_spill] sm:$0xff] %v5997_v52  ;;  %v1178_v16 = vrot.slane %v5997_v52, 1  ;;  %v1175_v13 = vrot.slane %v6012_v12, 1 }
 0x2e2   :  { %v5979_v62 = vpop.permute.xlu1 %1268  ;;  %v5981_v29 = vpop.permute.xlu0 %2111 }
 0x2e3   :  { %8102 = vst [vmem:[#allocation55_spill] sm:$0xff] %v5979_v62  ;;  %v5994_v62 = vsel %vm256_vm2, %v1253_v15, %v1254_v31  ;;  %v1179_v31 = vrot.slane %v1111_v61, 1  ;;  %v1256_v15 = vrot.slane %v5942_v59, 2 }
 0x2e4   :  { %1384 = vrot.lane.b32.xlu1 %v1165_v40, %s4504_s13  ;;  %1202 = vrot.lane.b32.xlu0 %v5984_v47, %s4501_s21  ;;  %8104 = vst [vmem:[#allocation57_spill] sm:$0xff] %v5994_v62 }
 0x2e6   :  { %v5991_v10 = vpop.permute.xlu1 %1368  ;;  %v2296_v6 = vpop.permute.xlu0 %2295 }
 0x2e7   :  { %8103 = vst [vmem:[#allocation56_spill] sm:$0xff] %v5991_v10  ;;  %v1257_v10 = vrot.slane %v1109_v54, 2  ;;  %v1176_v54 = vrot.slane %v1110_v42, 1 }
 0x2e8   :  { %1332 = vrot.lane.b32.xlu1 %v5957_v38, %s4503_s18  ;;  %1286 = vrot.lane.b32.xlu0 %v5994_v62, %s4502_s17  ;;  %v6027_v62 = vsel %vm165_vm1, %v1178_v16, %v1179_v31 }
 0x2e9   :  { %v6024_v59 = vsel %vm256_vm2, %v1256_v15, %v1257_v10  ;;  %8108 = vst [vmem:[#allocation61_spill] sm:$0xff] %v6027_v62  ;;  %v1260_v15 = vrot.slane %v1110_v42, 2  ;;  %v6042_v31 = vsel %vm165_vm1, %v1175_v13, %v1176_v54  ;;  %v1366_v42 = vrot.slane %v6065_v14, 1 }
 0x2ea   :  { %v6005_v40 = vpop.permute.xlu1 %1422  ;;  %v6007_v50 = vpop.permute.xlu0 %2245  ;;  %8107 = vst [vmem:[#allocation60_spill] sm:$0xff] %v6024_v59 }
 0x2eb   :  { %8106 = vst [vmem:[#allocation59_spill] sm:$0xff] %v6005_v40 }
 0x2ec   :  { %1204 = vrot.lane.b32.xlu1 %v5972_v30, %s4501_s21  ;;  %1338 = vrot.lane.b32.xlu0 %v5997_v52, %s4503_s18  ;;  %v2567_v30 = vsel %vm691_vm6, %v2551_v20, %v2296_v6  ;;  %v1064_v6 = vrot.slane %v5841_v32, 7  ;;  %v1262_v32 = vrot.slane %v5997_v52, 2  ;;  %v1986_v52 = vrot.slane %v5742_v37, 7 }
 0x2ee   :  { %v6019_v40 = vpop.permute.xlu1 %2195  ;;  %v6021_v38 = vpop.permute.xlu0 %2399  ;;  %v6083_v20 = vsel %vm100_vm0, 0.0, %v1064_v6 }
 0x2ef   :  { %8115 = vst [vmem:[#allocation68_spill] sm:$0xff] %v6083_v20 }
 0x2f0   :  { %1288 = vrot.lane.b32.xlu1 %v6024_v59, %s4502_s17  ;;  %1394 = vrot.lane.b32.xlu0 %v6027_v62, %s4504_s13  ;;  %v1259_v59 = vrot.slane %v6012_v12, 2 }
 0x2f2   :  { %v2350_v51 = vpop.permute.xlu1 %2349  ;;  %v6038_v10 = vpop.permute.xlu0 %1190 }
 0x2f3   :  { %8109 = vst [vmem:[#allocation62_spill] sm:$0xff] %v6038_v10  ;;  %v2583_v16 = vsel %vm708_vm7, %v2567_v30, %v2350_v51 }
 0x2f4   :  { %v2599_v57 = vsel %vm725_vm8, %v2583_v16, %v5875_v23  ;;  %1388 = vrot.lane.b32.xlu1 %v5984_v47, %s4504_s13  ;;  %1206 = vrot.lane.b32.xlu0 %v6042_v31, %s4501_s21  ;;  %v6062_v23 = vsel %vm256_vm2, %v1259_v59, %v1260_v15  ;;  %v1263_v59 = vrot.slane %v1111_v61, 2  ;;  %v1112_v15 = vsel %vm100_vm0, %v1064_v6, 0.0 }
 0x2f5   :  { %v2615_v11 = vsel %vm742_vm9, %v2599_v57, %v5934_v34  ;;  %v6073_v57 = vsel %vm100_vm0, 0.0, %v1065_v39  ;;  %v1182_v16 = vrot.slane %v1112_v15, 1 }
 0x2f6   :  { %v6054_v30 = vpop.permute.xlu1 %2401  ;;  %v6056_v13 = vpop.permute.xlu0 %1274  ;;  %v2631_v51 = vsel %vm759_vm10, %v2615_v11, %v5950_v21  ;;  %8112 = vst [vmem:[#allocation65_spill] sm:$0xff] %v6073_v57  ;;  %v1365_v54 = vrot.slane %v6073_v57, 1  ;;  %v6095_v11 = vsel %vm256_vm2, %v1262_v32, %v1263_v59  ;;  %v1265_v59 = vrot.slane %v6083_v20, 2 }
 0x2f7   :  { %8110 = vst [vmem:[#allocation63_spill] sm:$0xff] %v6056_v13  ;;  %4300 = vmatprep.mubr.msk.f32.mxu0 %vm792_vm11, %v2631_v51  ;;  %v1181_v13 = vrot.slane %v6083_v20, 1 }
 0x2f8   :  { %1336 = vrot.lane.b32.xlu1 %v6012_v12, %s4503_s18  ;;  %1290 = vrot.lane.b32.xlu0 %v6062_v23, %s4502_s17  ;;  %v6098_v51 = vsel %vm165_vm1, %v1365_v54, %v1366_v42 }
 0x2f9   :  { %8116 = vst [vmem:[#allocation69_spill] sm:$0xff] %v6098_v51 }
 0x2fa   :  { %v6075_v34 = vpop.permute.xlu1 %1316  ;;  %v6077_v21 = vpop.permute.xlu0 %1374 }
 0x2fb   :  { %8113 = vst [vmem:[#allocation66_spill] sm:$0xff] %v6075_v34  ;;  %8114 = vst [vmem:[#allocation67_spill] sm:$0xff] %v6077_v21  ;;  %v1266_v21 = vrot.slane %v1112_v15, 2  ;;  %v6110_v34 = vsel %vm165_vm1, %v1181_v13, %v1182_v16  ;;  %v8120_v15 = vrot.slane %v5662_v26, 7 }
 0x2fc   :  { %1208 = vrot.lane.b32.xlu1 %v6027_v62, %s4501_s21  ;;  %1342 = vrot.lane.b32.xlu0 %v6073_v57, %s4503_s18  ;;  %8117 = vst [vmem:[#allocation70_spill] sm:$0xff] %v6110_v34 }
 0x2fd   :  { %v6122_v32 = vsel %vm256_vm2, %v1265_v59, %v1266_v21  ;;  %v2030_v13 = vsel %vm100_vm0, %v8120_v15, 0.0  ;;  %v1983_v21 = vrot.slane %v5729_v3, 7  ;;  %v2523_v3 = vsel %vm642_vm3, %v5570_v49, %v5981_v29 }
 0x2fe   :  { %v6090_v39 = vpop.permute.xlu1 %2243  ;;  %v6092_v61 = vpop.permute.xlu0 %2117  ;;  %8119 = vst [vmem:[#allocation72_spill] sm:$0xff] %v6122_v32  ;;  %v2085_v57 = vrot.slane %v2030_v13, 1  ;;  %v2169_v29 = vrot.slane %v2030_v13, 2 }
 0x2ff   :  { %v2031_v14 = vsel %vm100_vm0, %v1983_v21, 0.0 }
 0x300   :  { %1292 = vrot.lane.b32.xlu1 %v6095_v11, %s4502_s17  ;;  %1398 = vrot.lane.b32.xlu0 %v6098_v51, %s4504_s13  ;;  %v2172_v13 = vrot.slane %v2031_v14, 2 }
 0x302   :  { %v6105_v6 = vpop.permute.xlu1 %2301  ;;  %v6107_v10 = vpop.permute.xlu0 %2355 }
 0x304   :  { %1392 = vrot.lane.b32.xlu1 %v6042_v31, %s4504_s13  ;;  %1210 = vrot.lane.b32.xlu0 %v6110_v34, %s4501_s21 }
 0x306   :  { %v6117_v42 = vpop.permute.xlu1 %2201  ;;  %v6119_v54 = vpop.permute.xlu0 %1322 }
 0x307   :  { %8118 = vst [vmem:[#allocation71_spill] sm:$0xff] %v6119_v54  ;;  %v2084_v54 = vrot.slane %v5763_v25, 1 }
 0x308   :  { %1340 = vrot.lane.b32.xlu1 %v6083_v20, %s4503_s18  ;;  %1294 = vrot.lane.b32.xlu0 %v6122_v32, %s4502_s17  ;;  %v6147_v32 = vsel %vm100_vm0, 0.0, %v1983_v21 }
 0x309   :  { %v2086_v15 = vsel %vm165_vm1, %v2084_v54, %v2085_v57  ;;  %v2088_v54 = vrot.slane %v2031_v14, 1 }
 0x30a   :  { %v6131_v16 = vpop.permute.xlu1 %2443  ;;  %v6133_v51 = vpop.permute.xlu0 %2115 }
 0x30c   :  { %1396 = vrot.lane.b32.xlu1 %v6110_v34, %s4504_s13  ;;  %2445 = vrot.lane.b32.xlu0 %v5846_v22, %s4507_s25  ;;  %v2537_v22 = vsel %vm658_vm4, %v2523_v3, %v6019_v40  ;;  %v2087_v34 = vrot.slane %v6147_v32, 1 }
 0x30d   :  { %v2552_v21 = vsel %vm674_vm5, %v2537_v22, %v5857_v28 }
 0x30e   :  { %v6141_v26 = vpop.permute.xlu1 %1188  ;;  %v6143_v59 = vpop.permute.xlu0 %2199  ;;  %v2568_v40 = vsel %vm691_vm6, %v2552_v21, %v5936_v4  ;;  %v2089_v3 = vsel %vm165_vm1, %v2087_v34, %v2088_v54  ;;  %v2171_v4 = vrot.slane %v6147_v32, 2 }
 0x30f   :  { %8121 = vst [vmem:[#allocation73_spill] sm:$0xff] %v6141_v26  ;;  %v2584_v28 = vsel %vm708_vm7, %v2568_v40, %v5952_v60 }
 0x310   :  { %2485 = vrot.lane.b32.xlu1 %v5683_v35, %s4508_s26  ;;  %2121 = vrot.lane.b32.xlu0 %v2086_v15, %s4501_s21  ;;  %v2173_v14 = vsel %vm256_vm2, %v2171_v4, %v2172_v13 }
 0x312   :  { %v6158_v26 = vpop.permute.xlu1 %1272  ;;  %v2442_v57 = vpop.permute.xlu0 %2441 }
 0x313   :  { %8122 = vst [vmem:[#allocation74_spill] sm:$0xff] %v6158_v26  ;;  %v2168_v26 = vrot.slane %v5763_v25, 2 }
 0x314   :  { %2305 = vrot.lane.b32.xlu1 %v2086_v15, %s4504_s13  ;;  %2357 = vrot.lane.b32.xlu0 %v5864_v5, %s4505_s20 }
 0x315   :  { %v2170_v62 = vsel %vm256_vm2, %v2168_v26, %v2169_v29 }
 0x316   :  { %v6166_v49 = vpop.permute.xlu1 %1372  ;;  %v6168_v35 = vpop.permute.xlu0 %2353 }
 0x317   :  { %8123 = vst [vmem:[#allocation75_spill] sm:$0xff] %v6166_v49 }
 0x318   :  { %2487 = vrot.lane.b32.xlu1 %v5864_v5, %s4508_s26  ;;  %2123 = vrot.lane.b32.xlu0 %v2089_v3, %s4501_s21  ;;  %v2600_v5 = vsel %vm725_vm8, %v2584_v28, %v6021_v38  ;;  %v1984_v38 = vrot.slane %v5701_v58, 7 }
 0x319   :  { %v2616_v34 = vsel %vm742_vm9, %v2600_v5, %v2442_v57 }
 0x31a   :  { %v6179_v22 = vpop.permute.xlu1 %2299  ;;  %v6181_v49 = vpop.permute.xlu0 %2249  ;;  %v2016_v28 = vsel %vm100_vm0, 0.0, %v1984_v38  ;;  %v2032_v13 = vsel %vm100_vm0, %v1984_v38, 0.0 }
 0x31b   :  { %v2290_v5 = vrot.slane %v2032_v13, 1 }
 0x31c   :  { %2205 = vrot.lane.b32.xlu1 %v2170_v62, %s4502_s17  ;;  %2359 = vrot.lane.b32.xlu0 %v2170_v62, %s4505_s20 }
 0x31e   :  { %v2484_v54 = vpop.permute.xlu1 %2483  ;;  %v6190_v60 = vpop.permute.xlu0 %2403 }
 0x31f   :  { %v2632_v21 = vsel %vm759_vm10, %v2616_v34, %v2484_v54  ;;  %v2289_v34 = vrot.slane %v2016_v28, 1  ;;  %v1985_v54 = vrot.slane %v5755_v48, 7 }
 0x320   :  { %2405 = vrot.lane.b32.xlu1 %v5763_v25, %s4506_s22  ;;  %2207 = vrot.lane.b32.xlu0 %v2173_v14, %s4502_s17 }
 0x321   :  { %4301 = vmatmul.mubr.msk.f32.vlgmr.msra.gmra.mrb[16].mxu0 %vm792_vm11, %v2632_v21  ;;  %v6228_v38 = vsel %vm100_vm0, 0.0, %v1985_v54 }
 0x322   :  { %v6198_v26 = vpop.permute.xlu1 %1320  ;;  %v6200_v29 = vpop.permute.xlu0 %1194 }
 0x323   :  { %8124 = vst [vmem:[#allocation76_spill] sm:$0xff] %v6198_v26  ;;  %8125 = vst [vmem:[#allocation77_spill] sm:$0xff] %v6200_v29  ;;  %v2033_v29 = vsel %vm100_vm0, %v1985_v54, 0.0  ;;  %v2090_v26 = vrot.slane %v6228_v38, 1 }
 0x324   :  { %2251 = vrot.lane.b32.xlu1 %v6147_v32, %s4503_s18  ;;  %2407 = vrot.lane.b32.xlu0 %v6147_v32, %s4506_s22  ;;  %v2175_v54 = vrot.slane %v2033_v29, 2 }
 0x326   :  { %v6207_v57 = vpop.permute.xlu1 %2247  ;;  %v6209_v40 = vpop.permute.xlu0 %1278 }
 0x327   :  { %8126 = vst [vmem:[#allocation78_spill] sm:$0xff] %v6209_v40 }
 0x328   :  { %2447 = vrot.lane.b32.xlu1 %v2086_v15, %s4507_s25  ;;  %2253 = vrot.lane.b32.xlu0 %v2016_v28, %s4503_s18  ;;  %v2291_v15 = vsel %vm165_vm1, %v2289_v34, %v2290_v5 }
 0x32a   :  { %v6215_v4 = vpop.permute.xlu1 %1192  ;;  %v6217_v58 = vpop.permute.xlu0 %1378 }
 0x32b   :  { %8127 = vst [vmem:[#allocation79_spill] sm:$0xff] %v6215_v4  ;;  %8128 = vst [vmem:[#allocation80_spill] sm:$0xff] %v6217_v58 }
 0x32c   :  { %2307 = vrot.lane.b32.xlu1 %v2089_v3, %s4504_s13  ;;  %2449 = vrot.lane.b32.xlu0 %v2089_v3, %s4507_s25  ;;  %v2344_v3 = vrot.slane %v2032_v13, 2 }
 0x32e   :  { %v6222_v21 = vpop.permute.xlu1 %1276  ;;  %v6224_v40 = vpop.permute.xlu0 %1326 }
 0x32f   :  { %8129 = vst [vmem:[#allocation81_spill] sm:$0xff] %v6222_v21  ;;  %8130 = vst [vmem:[#allocation82_spill] sm:$0xff] %v6224_v40  ;;  %v2091_v21 = vrot.slane %v2033_v29, 1  ;;  %v2343_v40 = vrot.slane %v2016_v28, 2 }
 0x330   :  { %2489 = vrot.lane.b32.xlu1 %v2170_v62, %s4508_s26  ;;  %2309 = vrot.lane.b32.xlu0 %v2291_v15, %s4504_s13  ;;  %v2174_v62 = vrot.slane %v6228_v38, 2 }
 0x331   :  { %v2345_v4 = vsel %vm256_vm2, %v2343_v40, %v2344_v3  ;;  %v6262_v40 = vsel %vm100_vm0, 0.0, %v1986_v52 }
 0x332   :  { %v6233_v48 = vpop.permute.xlu1 %1376  ;;  %v6235_v58 = vpop.permute.xlu0 %2119 }
 0x333   :  { %8131 = vst [vmem:[#allocation83_spill] sm:$0xff] %v6233_v48  ;;  %v2092_v48 = vsel %vm165_vm1, %v2090_v26, %v2091_v21  ;;  %v2034_v21 = vsel %vm100_vm0, %v1986_v52, 0.0 }
 0x334   :  { %2361 = vrot.lane.b32.xlu1 %v2173_v14, %s4505_s20  ;;  %2491 = vrot.lane.b32.xlu0 %v2173_v14, %s4508_s26  ;;  %v2176_v14 = vsel %vm256_vm2, %v2174_v62, %v2175_v54  ;;  %v2093_v62 = vrot.slane %v6262_v40, 1  ;;  %v1987_v54 = vrot.slane %v5786_v46, 7 }
 0x336   :  { %v6240_v5 = vpop.permute.xlu1 %2303  ;;  %v6242_v34 = vpop.permute.xlu0 %2203 }
 0x338   :  { %2125 = vrot.lane.b32.xlu1 %v2092_v48, %s4501_s21  ;;  %2363 = vrot.lane.b32.xlu0 %v2345_v4, %s4505_s20 }
 0x33a   :  { %v6249_v13 = vpop.permute.xlu1 %1324  ;;  %v6251_v20 = vpop.permute.xlu0 %1382 }
 0x33b   :  { %8132 = vst [vmem:[#allocation84_spill] sm:$0xff] %v6249_v13  ;;  %8133 = vst [vmem:[#allocation85_spill] sm:$0xff] %v6251_v20  ;;  %v6283_v13 = vsel %vm100_vm0, 0.0, %v1987_v54 }
 0x33c   :  { %2409 = vrot.lane.b32.xlu1 %v2016_v28, %s4506_s22  ;;  %2209 = vrot.lane.b32.xlu0 %v2176_v14, %s4502_s17  ;;  %v2094_v28 = vrot.slane %v2034_v21, 1 }
 0x33e   :  { %v6257_v29 = vpop.permute.xlu1 %1196  ;;  %v6259_v26 = vpop.permute.xlu0 %1330 }
 0x33f   :  { %8134 = vst [vmem:[#allocation86_spill] sm:$0xff] %v6257_v29  ;;  %8135 = vst [vmem:[#allocation87_spill] sm:$0xff] %v6259_v26  ;;  %v2180_v29 = vrot.slane %v6283_v13, 2 }
 0x340   :  { %2255 = vrot.lane.b32.xlu1 %v6228_v38, %s4503_s18  ;;  %2451 = vrot.lane.b32.xlu0 %v2291_v15, %s4507_s25  ;;  %v2095_v15 = vsel %vm165_vm1, %v2093_v62, %v2094_v28 }
 0x342   :  { %v6268_v3 = vpop.permute.xlu1 %1280  ;;  %v6270_v37 = vpop.permute.xlu0 %1386 }
 0x343   :  { %8136 = vst [vmem:[#allocation88_spill] sm:$0xff] %v6268_v3  ;;  %8137 = vst [vmem:[#allocation89_spill] sm:$0xff] %v6270_v37  ;;  %v2035_v37 = vsel %vm100_vm0, %v1987_v54, 0.0 }
 0x344   :  { %2257 = vrot.lane.b32.xlu1 %v6262_v40, %s4503_s18  ;;  %2311 = vrot.lane.b32.xlu0 %v2092_v48, %s4504_s13  ;;  %v2178_v48 = vrot.slane %v2034_v21, 2  ;;  %v2097_v3 = vrot.slane %v2035_v37, 1 }
 0x346   :  { %v6277_v52 = vpop.permute.xlu1 %1380  ;;  %v6279_v26 = vpop.permute.xlu0 %1198 }
 0x347   :  { %8138 = vst [vmem:[#allocation90_spill] sm:$0xff] %v6277_v52  ;;  %8139 = vst [vmem:[#allocation91_spill] sm:$0xff] %v6279_v26  ;;  %v2096_v52 = vrot.slane %v6283_v13, 1  ;;  %v2177_v26 = vrot.slane %v6262_v40, 2 }
 0x348   :  { %2493 = vrot.lane.b32.xlu1 %v2345_v4, %s4508_s26  ;;  %2127 = vrot.lane.b32.xlu0 %v2095_v15, %s4501_s21 }
 0x349   :  { %v2098_v4 = vsel %vm165_vm1, %v2096_v52, %v2097_v3  ;;  %v2179_v54 = vsel %vm256_vm2, %v2177_v26, %v2178_v48  ;;  %v1988_v48 = vrot.slane %v5766_v27, 7 }
 0x34a   :  { %v6288_v46 = vpop.permute.xlu1 %1328  ;;  %v6290_v20 = vpop.permute.xlu0 %1282 }
 0x34b   :  { %8140 = vst [vmem:[#allocation92_spill] sm:$0xff] %v6288_v46  ;;  %8141 = vst [vmem:[#allocation93_spill] sm:$0xff] %v6290_v20  ;;  %v2181_v20 = vrot.slane %v2035_v37, 2 }
 0x34c   :  { %2313 = vrot.lane.b32.xlu1 %v2095_v15, %s4504_s13  ;;  %2365 = vrot.lane.b32.xlu0 %v2176_v14, %s4505_s20 }
 0x34d   :  { %v2182_v26 = vsel %vm256_vm2, %v2180_v29, %v2181_v20  ;;  %v6333_v20 = vsel %vm100_vm0, 0.0, %v1988_v48  ;;  %v2036_v29 = vsel %vm100_vm0, %v1988_v48, 0.0 }
 0x34e   :  { %v6296_v28 = vpop.permute.xlu1 %1200  ;;  %v6298_v62 = vpop.permute.xlu0 %1334 }
 0x34f   :  { %8142 = vst [vmem:[#allocation94_spill] sm:$0xff] %v6296_v28  ;;  %8143 = vst [vmem:[#allocation95_spill] sm:$0xff] %v6298_v62 }
 0x350   :  { %2129 = vrot.lane.b32.xlu1 %v2098_v4, %s4501_s21  ;;  %2211 = vrot.lane.b32.xlu0 %v2179_v54, %s4502_s17 }
 0x352   :  { %v6304_v21 = vpop.permute.xlu1 %1284  ;;  %v6306_v46 = vpop.permute.xlu0 %1390 }
 0x353   :  { %8144 = vst [vmem:[#allocation96_spill] sm:$0xff] %v6304_v21  ;;  %8145 = vst [vmem:[#allocation97_spill] sm:$0xff] %v6306_v46  ;;  %v2100_v21 = vrot.slane %v2036_v29, 1 }
 0x354   :  { %2367 = vrot.lane.b32.xlu1 %v2179_v54, %s4505_s20  ;;  %2411 = vrot.lane.b32.xlu0 %v6262_v40, %s4506_s22 }
 0x356   :  { %v6312_v14 = vpop.permute.xlu1 %1384  ;;  %v6314_v3 = vpop.permute.xlu0 %1202 }
 0x357   :  { %8146 = vst [vmem:[#allocation98_spill] sm:$0xff] %v6312_v14  ;;  %8147 = vst [vmem:[#allocation99_spill] sm:$0xff] %v6314_v3 }
 0x358   :  { %2213 = vrot.lane.b32.xlu1 %v2182_v26, %s4502_s17  ;;  %2259 = vrot.lane.b32.xlu0 %v6283_v13, %s4503_s18 }
 0x35a   :  { %v6320_v52 = vpop.permute.xlu1 %1332  ;;  %v6322_v37 = vpop.permute.xlu0 %1286 }
 0x35b   :  { %8148 = vst [vmem:[#allocation100_spill] sm:$0xff] %v6320_v52  ;;  %8149 = vst [vmem:[#allocation101_spill] sm:$0xff] %v6322_v37 }
 0x35c   :  { %2413 = vrot.lane.b32.xlu1 %v6283_v13, %s4506_s22  ;;  %2453 = vrot.lane.b32.xlu0 %v2095_v15, %s4507_s25  ;;  %v2099_v15 = vrot.slane %v6333_v20, 1 }
 0x35e   :  { %v6328_v46 = vpop.permute.xlu1 %1204  ;;  %v6330_v62 = vpop.permute.xlu0 %1338  ;;  %v2101_v28 = vsel %vm165_vm1, %v2099_v15, %v2100_v21 }
 0x35f   :  { %8150 = vst [vmem:[#allocation102_spill] sm:$0xff] %v6328_v46  ;;  %8151 = vst [vmem:[#allocation103_spill] sm:$0xff] %v6330_v62  ;;  %v1989_v46 = vrot.slane %v5814_v2, 7 }
 0x360   :  { %2261 = vrot.lane.b32.xlu1 %v6333_v20, %s4503_s18  ;;  %2315 = vrot.lane.b32.xlu0 %v2098_v4, %s4504_s13 }
 0x361   :  { %v6353_v37 = vsel %vm100_vm0, 0.0, %v1989_v46 }
 0x362   :  { %v6339_v27 = vpop.permute.xlu1 %1288  ;;  %v6341_v52 = vpop.permute.xlu0 %1394  ;;  %v2186_v14 = vrot.slane %v6353_v37, 2 }
 0x363   :  { %8152 = vst [vmem:[#allocation104_spill] sm:$0xff] %v6339_v27  ;;  %8153 = vst [vmem:[#allocation105_spill] sm:$0xff] %v6341_v52  ;;  %v2037_v52 = vsel %vm100_vm0, %v1989_v46, 0.0 }
 0x364   :  { %2455 = vrot.lane.b32.xlu1 %v2098_v4, %s4507_s25  ;;  %2495 = vrot.lane.b32.xlu0 %v2179_v54, %s4508_s26  ;;  %v2184_v54 = vrot.slane %v2036_v29, 2  ;;  %v2103_v27 = vrot.slane %v2037_v52, 1  ;;  %v2187_v3 = vrot.slane %v2037_v52, 2 }
 0x366   :  { %v6347_v62 = vpop.permute.xlu1 %1388  ;;  %v6349_v48 = vpop.permute.xlu0 %1206  ;;  %v2188_v52 = vsel %vm256_vm2, %v2186_v14, %v2187_v3 }
 0x367   :  { %8154 = vst [vmem:[#allocation106_spill] sm:$0xff] %v6347_v62  ;;  %8155 = vst [vmem:[#allocation107_spill] sm:$0xff] %v6349_v48  ;;  %v2102_v62 = vrot.slane %v6353_v37, 1  ;;  %v2183_v48 = vrot.slane %v6333_v20, 2 }
 0x368   :  { %2131 = vrot.lane.b32.xlu1 %v2101_v28, %s4501_s21  ;;  %2317 = vrot.lane.b32.xlu0 %v2101_v28, %s4504_s13 }
 0x369   :  { %v2104_v15 = vsel %vm165_vm1, %v2102_v62, %v2103_v27  ;;  %v2524_v62 = vsel %vm642_vm3, %v5558_v24, %v5909_v8 }
 0x36a   :  { %v6358_v2 = vpop.permute.xlu1 %1336  ;;  %v6360_v4 = vpop.permute.xlu0 %1290 }
 0x36b   :  { %8156 = vst [vmem:[#allocation108_spill] sm:$0xff] %v6358_v2  ;;  %8157 = vst [vmem:[#allocation109_spill] sm:$0xff] %v6360_v4  ;;  %v2185_v2 = vsel %vm256_vm2, %v2183_v48, %v2184_v54  ;;  %v2538_v48 = vsel %vm658_vm4, %v2524_v62, %v5924_v19 }
 0x36c   :  { %2369 = vrot.lane.b32.xlu1 %v2182_v26, %s4505_s20  ;;  %2497 = vrot.lane.b32.xlu0 %v2182_v26, %s4508_s26  ;;  %v2553_v54 = vsel %vm674_vm5, %v2538_v48, %v6090_v39  ;;  %v2525_v39 = vsel %vm642_vm3, %v5632_v1, %v6133_v51 }
 0x36d   :  { %v2569_v24 = vsel %vm691_vm6, %v2553_v54, %v6179_v22 }
 0x36e   :  { %v6366_v21 = vpop.permute.xlu1 %1208  ;;  %v6368_v46 = vpop.permute.xlu0 %1342  ;;  %v2585_v19 = vsel %vm708_vm7, %v2569_v24, %v6168_v35 }
 0x36f   :  { %v2601_v35 = vsel %vm725_vm8, %v2585_v19, %v6054_v30 }
 0x370   :  { %2133 = vrot.lane.b32.xlu1 %v2104_v15, %s4501_s21  ;;  %2215 = vrot.lane.b32.xlu0 %v2185_v2, %s4502_s17 }
 0x372   :  { %v6374_v29 = vpop.permute.xlu1 %1292  ;;  %v6376_v4 = vpop.permute.xlu0 %1398 }
 0x373   :  { %8158 = vst [vmem:[#allocation110_spill] sm:$0xff] %v6374_v29  ;;  %8159 = vst [vmem:[#allocation111_spill] sm:$0xff] %v6376_v4  ;;  %v1990_v29 = vrot.slane %v5800_v9, 7  ;;  %v2539_v9 = vsel %vm658_vm4, %v2525_v39, %v6143_v59 }
 0x374   :  { %2371 = vrot.lane.b32.xlu1 %v2185_v2, %s4505_s20  ;;  %2415 = vrot.lane.b32.xlu0 %v6333_v20, %s4506_s22  ;;  %v2554_v1 = vsel %vm674_vm5, %v2539_v9, %v6007_v50 }
 0x375   :  { %v6415_v3 = vsel %vm100_vm0, 0.0, %v1990_v29  ;;  %v2038_v62 = vsel %vm100_vm0, %v1990_v29, 0.0  ;;  %v1991_v29 = vrot.slane %v5843_v7, 7  ;;  %v2570_v50 = vsel %vm691_vm6, %v2554_v1, %v6105_v6 }
 0x376   :  { %v6385_v26 = vpop.permute.xlu1 %1392  ;;  %v6387_v27 = vpop.permute.xlu0 %1210  ;;  %v2106_v59 = vrot.slane %v2038_v62, 1  ;;  %v2105_v30 = vrot.slane %v6415_v3, 1  ;;  %v2586_v7 = vsel %vm708_vm7, %v2570_v50, %v6107_v10  ;;  %v2189_v10 = vrot.slane %v6415_v3, 2 }
 0x377   :  { %v6441_v39 = vsel %vm100_vm0, 0.0, %v1991_v29  ;;  %v2039_v9 = vsel %vm100_vm0, %v1991_v29, 0.0 }
 0x378   :  { %2217 = vrot.lane.b32.xlu1 %v2188_v52, %s4502_s17  ;;  %2263 = vrot.lane.b32.xlu0 %v6353_v37, %s4503_s18  ;;  %v2107_v19 = vsel %vm165_vm1, %v2105_v30, %v2106_v59  ;;  %v2109_v1 = vrot.slane %v2039_v9, 1  ;;  %v2190_v59 = vrot.slane %v2038_v62, 2  ;;  %v2193_v50 = vrot.slane %v2039_v9, 2 }
 0x379   :  { %v1992_v9 = vrot.slane %v5826_v43, 7 }
 0x37a   :  { %v6399_v8 = vpop.permute.xlu1 %1340  ;;  %v6401_v4 = vpop.permute.xlu0 %1294  ;;  %v2191_v30 = vsel %vm256_vm2, %v2189_v10, %v2190_v59  ;;  %v2527_v10 = vsel %vm642_vm3, %v5778_v33, %v6235_v58 }
 0x37c   :  { %2417 = vrot.lane.b32.xlu1 %v6353_v37, %s4506_s22  ;;  %2457 = vrot.lane.b32.xlu0 %v2101_v28, %s4507_s25  ;;  %v2617_v28 = vsel %vm742_vm9, %v2601_v35, %v6131_v16 }
 0x37e   :  { %v6412_v14 = vpop.permute.xlu1 %1396  ;;  %v2446_v22 = vpop.permute.xlu0 %2445 }
 0x380   :  { %2265 = vrot.lane.b32.xlu1 %v6415_v3, %s4503_s18  ;;  %2319 = vrot.lane.b32.xlu0 %v2104_v15, %s4504_s13 }
 0x382   :  { %v2486_v51 = vpop.permute.xlu1 %2485  ;;  %v6429_v48 = vpop.permute.xlu0 %2121 }
 0x383   :  { %v2633_v54 = vsel %vm759_vm10, %v2617_v28, %v2486_v51  ;;  %v2108_v28 = vrot.slane %v6441_v39, 1 }
 0x384   :  { %2459 = vrot.lane.b32.xlu1 %v2104_v15, %s4507_s25  ;;  %4303 = vmatprep.mubr.msk.f32.mxu0 %vm792_vm11, %v2633_v54  ;;  %v2602_v15 = vsel %vm725_vm8, %v2586_v7, %v6190_v60  ;;  %v2192_v7 = vrot.slane %v6441_v39, 2 }
 0x385   :  { %2499 = vrot.lane.b32.xlu0 %v2185_v2, %s4508_s26  ;;  %v2618_v6 = vsel %vm742_vm9, %v2602_v15, %v2446_v22  ;;  %v2110_v54 = vsel %vm165_vm1, %v2108_v28, %v2109_v1 }
 0x386   :  { %v2306_v24 = vpop.permute.xlu1 %2305  ;;  %v2358_v16 = vpop.permute.xlu0 %2357 }
 0x388   :  { %2135 = vrot.lane.b32.xlu1 %v2107_v19, %s4501_s21 }
 0x389   :  { %2321 = vrot.lane.b32.xlu0 %v2107_v19, %s4504_s13 }
 0x38a   :  { %v2488_v2 = vpop.permute.xlu1 %2487  ;;  %v6451_v35 = vpop.permute.xlu0 %2123 }
 0x38b   :  { %v2634_v51 = vsel %vm759_vm10, %v2618_v6, %v2488_v2  ;;  %v2194_v6 = vsel %vm256_vm2, %v2192_v7, %v2193_v50  ;;  %v2024_v7 = vsel %vm100_vm0, 0.0, %v1992_v9 }
 0x38c   :  { %2373 = vrot.lane.b32.xlu1 %v2188_v52, %s4505_s20  ;;  %4304 = vmatmul.mubr.msk.f32.gmra.mrb[18].mxu0 %vm792_vm11, %v2634_v51  ;;  %v2526_v51 = vsel %vm642_vm3, %v5624_v45, %v6092_v61  ;;  %v2541_v61 = vsel %vm658_vm4, %v2527_v10, %v6242_v34 }
 0x38d   :  { %2501 = vrot.lane.b32.xlu0 %v2188_v52, %s4508_s26  ;;  %v2540_v28 = vsel %vm658_vm4, %v2526_v51, %v6117_v42  ;;  %v2040_v42 = vsel %vm100_vm0, %v1992_v9, 0.0  ;;  %v2556_v33 = vsel %vm674_vm5, %v2541_v61, %v6181_v49 }
 0x38e   :  { %v6459_v60 = vpop.permute.xlu1 %2205  ;;  %v2360_v22 = vpop.permute.xlu0 %2359  ;;  %v2555_v59 = vsel %vm674_vm5, %v2540_v28, %v6207_v57  ;;  %v2293_v34 = vrot.slane %v2040_v42, 1  ;;  %v2572_v28 = vsel %vm691_vm6, %v2556_v33, %v2306_v24  ;;  %v2347_v61 = vrot.slane %v2040_v42, 2 }
 0x38f   :  { %v2571_v45 = vsel %vm691_vm6, %v2555_v59, %v6240_v5  ;;  %v2292_v59 = vrot.slane %v2024_v7, 1  ;;  %v2529_v42 = vsel %vm642_vm3, %v6147_v32, %v6451_v35 }
 0x390   :  { %2137 = vrot.lane.b32.xlu1 %v2110_v54, %s4501_s21 }
 0x391   :  { %2219 = vrot.lane.b32.xlu0 %v2191_v30, %s4502_s17  ;;  %v2294_v24 = vsel %vm165_vm1, %v2292_v59, %v2293_v34 }
 0x392   :  { %v2406_v62 = vpop.permute.xlu1 %2405  ;;  %v2208_v29 = vpop.permute.xlu0 %2207 }
 0x394   :  { %2375 = vrot.lane.b32.xlu1 %v2191_v30, %s4505_s20 }
 0x395   :  { %2419 = vrot.lane.b32.xlu0 %v6415_v3, %s4506_s22 }
 0x396   :  { %v6469_v52 = vpop.permute.xlu1 %2251  ;;  %v2408_v15 = vpop.permute.xlu0 %2407 }
 0x398   :  { %2221 = vrot.lane.b32.xlu1 %v2194_v6, %s4502_s17 }
 0x399   :  { %2267 = vrot.lane.b32.xlu0 %v6441_v39, %s4503_s18 }
 0x39a   :  { %v2448_v2 = vpop.permute.xlu1 %2447  ;;  %v2254_v1 = vpop.permute.xlu0 %2253 }
 0x39c   :  { %2421 = vrot.lane.b32.xlu1 %v6441_v39, %s4506_s22 }
 0x39d   :  { %2461 = vrot.lane.b32.xlu0 %v2107_v19, %s4507_s25  ;;  %v2587_v19 = vsel %vm708_vm7, %v2571_v45, %v2358_v16  ;;  %v2588_v16 = vsel %vm708_vm7, %v2572_v28, %v2360_v22  ;;  %v2528_v28 = vsel %vm642_vm3, %v5763_v25, %v6429_v48 }
 0x39e   :  { %v2308_v43 = vpop.permute.xlu1 %2307  ;;  %v2450_v50 = vpop.permute.xlu0 %2449  ;;  %v2603_v57 = vsel %vm725_vm8, %v2587_v19, %v2406_v62  ;;  %v2604_v62 = vsel %vm725_vm8, %v2588_v16, %v2408_v15  ;;  %v2346_v19 = vrot.slane %v2024_v7, 2  ;;  %v2542_v32 = vsel %vm658_vm4, %v2528_v28, %v6459_v60  ;;  %v8162_v28 = vld [vmem:[#allocation48_spill] sm:$0xff] }
 0x39f   :  { %v2619_v58 = vsel %vm742_vm9, %v2603_v57, %v2448_v2  ;;  %v2620_v49 = vsel %vm742_vm9, %v2604_v62, %v2450_v50  ;;  %v2543_v57 = vsel %vm658_vm4, %v2529_v42, %v2208_v29  ;;  %v2557_v35 = vsel %vm674_vm5, %v2542_v32, %v6469_v52  ;;  %v8163_v32 = vld [vmem:[#allocation53_spill] sm:$0xff] }
 0x3a0   :  { %2269 = vrot.lane.b32.xlu1 %v2024_v7, %s4503_s18  ;;  %v2558_v33 = vsel %vm674_vm5, %v2543_v57, %v2254_v1  ;;  %v2573_v25 = vsel %vm691_vm6, %v2557_v35, %v2308_v43  ;;  %v1721_v43 = vld [vmem:[%s7941_s3 + $0x8] sm:$0xff]  ;;  %v1724_v57 = vld [vmem:[%s7941_s3 + $0x20] sm:$0xff]  ;;  %v1726_v35 = vld [vmem:[%s7941_s3 + $0x30] sm:$0xff] }
 0x3a1   :  { %2323 = vrot.lane.b32.xlu0 %v2110_v54, %s4504_s13 }
 0x3a2   :  { %v2490_v5 = vpop.permute.xlu1 %2489  ;;  %v2310_v51 = vpop.permute.xlu0 %2309 }
 0x3a3   :  { %v2635_v9 = vsel %vm759_vm10, %v2619_v58, %v2490_v5 }
 0x3a4   :  { %2463 = vrot.lane.b32.xlu1 %v2110_v54, %s4507_s25  ;;  %4306 = vmatprep.mubr.msk.f32.mxu0 %vm792_vm11, %v2635_v9 }
 0x3a5   :  { %2503 = vrot.lane.b32.xlu0 %v2191_v30, %s4508_s26  ;;  %v2348_v30 = vsel %vm256_vm2, %v2346_v19, %v2347_v61  ;;  %v1722_v61 = vld [vmem:[%s7941_s3 + $0x10] sm:$0xff] }
 0x3a6   :  { %v2362_v2 = vpop.permute.xlu1 %2361  ;;  %v2492_v10 = vpop.permute.xlu0 %2491 }
 0x3a7   :  { %v2636_v45 = vsel %vm759_vm10, %v2620_v49, %v2492_v10  ;;  %v2589_v48 = vsel %vm708_vm7, %v2573_v25, %v2362_v2  ;;  %v1417_v2 = vrot.slane %v5850_v53, 2  ;;  %v1416_v10 = vrot.slane %v5834_v17, 2  ;;  %v1723_v53 = vld [vmem:[%s7941_s3 + $0x18] sm:$0xff] }
 0x3a8   :  { %2325 = vrot.lane.b32.xlu1 %v2294_v24, %s4504_s13  ;;  %4307 = vmatmul.mubr.msk.f32.gmra.mrb[20].mxu0 %vm792_vm11, %v2636_v45  ;;  %s4511_s13 = smov 12  }
 0x3a9   :  { %2377 = vrot.lane.b32.xlu0 %v2194_v6, %s4505_s20  ;;  %v6587_v42 = vsel %vm256_vm2, %v1416_v10, %v1417_v2  ;;  %v8167_v10 = vld [vmem:[#allocation29_spill] sm:$0xff] }
 0x3aa   :  { %v6515_v22 = vpop.permute.xlu1 %2125  ;;  %v2364_v54 = vpop.permute.xlu0 %2363 }
 0x3ac   :  { %2505 = vrot.lane.b32.xlu1 %v2194_v6, %s4508_s26  ;;  %v2574_v6 = vsel %vm691_vm6, %v2558_v33, %v2310_v51  ;;  %v1720_v51 = vld [vmem:[%s7941_s3] sm:$0xff]  ;;  %v1725_v33 = vld [vmem:[%s7941_s3 + $0x28] sm:$0xff] }
 0x3ad   :  { %2379 = vrot.lane.b32.xlu0 %v2348_v30, %s4505_s20  ;;  %v2590_v34 = vsel %vm708_vm7, %v2574_v6, %v2364_v54  ;;  %v4392_v62 = vpack.c.bf16 %v1721_v43, %v1720_v51  ;;  %v8165_v51 = vld [vmem:[#allocation60_spill] sm:$0xff]  ;;  %v1728_v43 = vld [vmem:[%s7941_s3 + $0x40] sm:$0xff] }
 0x3ae   :  { %v2410_v15 = vpop.permute.xlu1 %2409  ;;  %v6520_v50 = vpop.permute.xlu0 %2209  ;;  %v2606_v29 = vsel %vm725_vm8, %v2590_v34, %v5305_v0  ;;  %v4400_v34 = vpack.c.bf16 %v1725_v33, %v1724_v57 }
 0x3af   :  { %v2605_v60 = vsel %vm725_vm8, %v2589_v48, %v2410_v15  ;;  %v2622_v52 = vsel %vm742_vm9, %v2606_v29, %v5314_v44  ;;  %4393 = vmatprep.subr.bf16.mxu1 %v4392_v62  ;;  %v8161_v15 = vld [vmem:[#allocation45_spill] sm:$0xff]  ;;  %v1727_v29 = vld [vmem:[%s7941_s3 + $0x38] sm:$0xff] }
 0x3b0   :  { %2423 = vrot.lane.b32.xlu1 %v2024_v7, %s4506_s22  ;;  %v2638_v45 = vsel %vm759_vm10, %v2622_v52, %v5333_v41  ;;  %4395 = vmatpush3.bf16.msra.mxu1 %v4392_v62  ;;  %v8164_v52 = vld [vmem:[#allocation57_spill] sm:$0xff]  ;;  %v8166_v62 = vld [vmem:[#allocation24_spill] sm:$0xff] }
 0x3b1   :  { %2465 = vrot.lane.b32.xlu0 %v2294_v24, %s4507_s25  ;;  %v8160_v24 = vld [vmem:[#allocation34_spill] sm:$0xff] }
 0x3b2   :  { %v6530_v58 = vpop.permute.xlu1 %2255  ;;  %v2452_v5 = vpop.permute.xlu0 %2451 }
 0x3b3   :  { %v2621_v59 = vsel %vm742_vm9, %v2605_v60, %v2452_v5  ;;  %v4404_v60 = vpack.c.bf16 %v1727_v29, %v1726_v35 }
 0x3b4   :  { %2507 = vrot.lane.b32.xlu1 %v2348_v30, %s4508_s26  ;;  %v4396_v30 = vpack.c.bf16 %v1723_v53, %v1722_v61  ;;  %v2559_v61 = vsel %vm674_vm5, %v5199_v63, %v6530_v58 }
 0x3b5   :  { %1424 = vrot.lane.b32.xlu0 %v5591_v55, %s4505_s20 }
 0x3b6   :  { %v6545_v1 = vpop.permute.xlu1 %2257  ;;  %v6547_v7 = vpop.permute.xlu0 %2311  ;;  %4397 = vmatprep.subr.bf16.mxu1 %v4396_v30 }
 0x3b7   :  { %4399 = vmatpush3.bf16.msra.mxu1 %v4396_v30  ;;  %v2575_v57 = vsel %vm691_vm6, %v2559_v61, %v6547_v7  ;;  %v2530_v7 = vsel %vm642_vm3, %v6228_v38, %v6515_v22 }
 0x3b8   :  { %1426 = vrot.lane.b32.xlu1 %v5747_v18, %s4505_s20  ;;  %4401 = vmatprep.subr.bf16.mxu1 %v4400_v34 }
 0x3b9   :  { %1428 = vrot.lane.b32.xlu0 %v5647_v36, %s4505_s20 }
 0x3ba   :  { %v2494_v9 = vpop.permute.xlu1 %2493  ;;  %v6565_v16 = vpop.permute.xlu0 %2127 }
 0x3bb   :  { %v2637_v49 = vsel %vm759_vm10, %v2621_v59, %v2494_v9  ;;  %4403 = vmatpush3.bf16.msra.mxu1 %v4400_v34  ;;  %v8169_v34 = vld [vmem:[#allocation31_spill] sm:$0xff] }
 0x3bc   :  { %1430 = vrot.lane.b32.xlu1 %v5831_v56, %s4505_s20  ;;  %4309 = vmatprep.mubr.msk.f32.mxu0 %vm792_vm11, %v2637_v49 }
 0x3bd   :  { %1432 = vrot.lane.b32.xlu0 %v8160_v24, %s4505_s20  ;;  %4310 = vmatmul.mubr.msk.f32.gmra.mrb[22].mxu0 %vm792_vm11, %v2638_v45  ;;  %v8168_v45 = vld [vmem:[#allocation26_spill] sm:$0xff] }
 0x3be   :  { %v2314_v19 = vpop.permute.xlu1 %2313  ;;  %v2366_v54 = vpop.permute.xlu0 %2365  ;;  %4405 = vmatprep.subr.bf16.mxu1 %v4404_v60 }
 0x3bf   :  { %4407 = vmatpush3.bf16.msra.mxu1 %v4404_v60  ;;  %v2591_v33 = vsel %vm708_vm7, %v2575_v57, %v2366_v54  ;;  %v2544_v54 = vsel %vm658_vm4, %v2530_v7, %v6520_v50  ;;  %v8172_v50 = vld [vmem:[#allocation28_spill] sm:$0xff]  ;;  %v8177_v7 = vld [vmem:[#allocation42_spill] sm:$0xff] }
 0x3c0   :  { %1434 = vrot.lane.b32.xlu1 %v8161_v15, %s4505_s20  ;;  %4256 = vmatprep.subr.mxu1 %v1728_v43 }
 0x3c1   :  { %1436 = vrot.lane.b32.xlu0 %v6587_v42, %s4505_s20 }
 0x3c2   :  { %v6597_v6 = vpop.permute.xlu1 %2129  ;;  %v6599_v5 = vpop.permute.xlu0 %2211 }
 0x3c3   :  { %4257 = vmatpush3.msra.mxu1 %v1728_v43 }
 0x3c4   :  { %1438 = vrot.lane.b32.xlu1 %v8162_v28, %s4505_s20 }
 0x3c5   :  { %1440 = vrot.lane.b32.xlu0 %v8163_v32, %s4505_s20 }
 0x3c6   :  { %v2368_v25 = vpop.permute.xlu1 %2367  ;;  %v2412_v48 = vpop.permute.xlu0 %2411 }
 0x3c7   :  { %v2607_v28 = vsel %vm725_vm8, %v2591_v33, %v2412_v48  ;;  %v2560_v48 = vsel %vm674_vm5, %v2544_v54, %v6545_v1 }
 0x3c8   :  { %1442 = vrot.lane.b32.xlu1 %v8164_v52, %s4505_s20 }
 0x3c9   :  { %1444 = vrot.lane.b32.xlu0 %v8165_v51, %s4505_s20 }
 0x3ca   :  { %v6618_v59 = vpop.permute.xlu1 %2213  ;;  %v6620_v9 = vpop.permute.xlu0 %2259 }
 0x3cc   :  { %1446 = vrot.lane.b32.xlu1 %v6062_v23, %s4505_s20 }
 0x3cd   :  { %1470 = vrot.lane.b32.xlu0 %v8166_v62, %s4506_s22 }
 0x3ce   :  { %v2414_v49 = vpop.permute.xlu1 %2413  ;;  %v2454_v2 = vpop.permute.xlu0 %2453 }
 0x3cf   :  { %v2623_v35 = vsel %vm742_vm9, %v2607_v28, %v2454_v2 }
 0x3d0   :  { %1472 = vrot.lane.b32.xlu1 %v8167_v10, %s4506_s22 }
 0x3d1   :  { %1512 = vrot.lane.b32.xlu0 %v8168_v45, %s4507_s25  ;;  %v2576_v45 = vsel %vm691_vm6, %v2560_v48, %v2314_v19  ;;  %v2531_v48 = vsel %vm642_vm3, %v6262_v40, %v6565_v16 }
 0x3d2   :  { %v6633_v53 = vpop.permute.xlu1 %2261  ;;  %v2316_v30 = vpop.permute.xlu0 %2315  ;;  %v2592_v38 = vsel %vm708_vm7, %v2576_v45, %v2368_v25  ;;  %v2545_v45 = vsel %vm658_vm4, %v2531_v48, %v6599_v5  ;;  %v8181_v48 = vld [vmem:[#allocation46_spill] sm:$0xff] }
 0x3d3   :  { %v2608_v22 = vsel %vm725_vm8, %v2592_v38, %v2414_v49  ;;  %v8174_v49 = vld [vmem:[#allocation30_spill] sm:$0xff] }
 0x3d4   :  { %1514 = vrot.lane.b32.xlu1 %v8169_v34, %s4507_s25  ;;  %v8173_v34 = vld [vmem:[#allocation35_spill] sm:$0xff] }
 0x3d5   :  { %1554 = vrot.lane.b32.xlu0 %v5591_v55, %s4508_s26  ;;  %v8170_v55 = vld [vmem:[#allocation27_spill] sm:$0xff] }
 0x3d6   :  { %v2456_v29 = vpop.permute.xlu1 %2455  ;;  %v2496_v58 = vpop.permute.xlu0 %2495 }
 0x3d7   :  { %v2639_v60 = vsel %vm759_vm10, %v2623_v35, %v2496_v58  ;;  %v2624_v61 = vsel %vm742_vm9, %v2608_v22, %v2456_v29  ;;  %v8175_v29 = vld [vmem:[#allocation37_spill] sm:$0xff] }
 0x3d8   :  { %1556 = vrot.lane.b32.xlu1 %v5747_v18, %s4508_s26  ;;  %4312 = vmatprep.mubr.msk.f32.mxu0 %vm792_vm11, %v2639_v60  ;;  %v8171_v18 = vld [vmem:[#allocation32_spill] sm:$0xff]  ;;  %v8176_v58 = vld [vmem:[#allocation33_spill] sm:$0xff] }
 0x3d9   :  { %1474 = vrot.lane.b32.xlu0 %v8170_v55, %s4506_s22 }
 0x3da   :  { %v6657_v43 = vpop.permute.xlu1 %2131  ;;  %v2318_v2 = vpop.permute.xlu0 %2317 }
 0x3dc   :  { %1476 = vrot.lane.b32.xlu1 %v8171_v18, %s4506_s22 }
 0x3dd   :  { %1516 = vrot.lane.b32.xlu0 %v8172_v50, %s4507_s25 }
 0x3de   :  { %v2370_v57 = vpop.permute.xlu1 %2369  ;;  %v2498_v33 = vpop.permute.xlu0 %2497 }
 0x3df   :  { %v2640_v1 = vsel %vm759_vm10, %v2624_v61, %v2498_v33 }
 0x3e0   :  { %1518 = vrot.lane.b32.xlu1 %v8173_v34, %s4507_s25  ;;  %4313 = vmatmul.mubr.msk.f32.gmra.mrb[24].mxu0 %vm792_vm11, %v2640_v1  ;;  %v8179_v1 = vld [vmem:[#allocation39_spill] sm:$0xff]  ;;  %v8180_v34 = vld [vmem:[#allocation50_spill] sm:$0xff] }
 0x3e1   :  { %1558 = vrot.lane.b32.xlu0 %v5647_v36, %s4508_s26 }
 0x3e2   :  { %v6673_v19 = vpop.permute.xlu1 %2133  ;;  %v6675_v25 = vpop.permute.xlu0 %2215 }
 0x3e4   :  { %1560 = vrot.lane.b32.xlu1 %v5831_v56, %s4508_s26 }
 0x3e5   :  { %1478 = vrot.lane.b32.xlu0 %v8174_v49, %s4506_s22 }
 0x3e6   :  { %v2372_v28 = vpop.permute.xlu1 %2371  ;;  %v2416_v35 = vpop.permute.xlu0 %2415 }
 0x3e8   :  { %1480 = vrot.lane.b32.xlu1 %v8175_v29, %s4506_s22 }
 0x3e9   :  { %1520 = vrot.lane.b32.xlu0 %v8176_v58, %s4507_s25 }
 0x3ea   :  { %v6685_v60 = vpop.permute.xlu1 %2217  ;;  %v6687_v36 = vpop.permute.xlu0 %2263 }
 0x3ec   :  { %1522 = vrot.lane.b32.xlu1 %v8177_v7, %s4507_s25 }
 0x3ed   :  { %1562 = vrot.lane.b32.xlu0 %v8160_v24, %s4508_s26  ;;  %v2561_v24 = vsel %vm674_vm5, %v2545_v45, %v6620_v9 }
 0x3ee   :  { %v2418_v56 = vpop.permute.xlu1 %2417  ;;  %v2458_v54 = vpop.permute.xlu0 %2457  ;;  %v2577_v50 = vsel %vm691_vm6, %v2561_v24, %v2316_v30 }
 0x3ef   :  { %v2593_v40 = vsel %vm708_vm7, %v2577_v50, %v2370_v57  ;;  %v2532_v57 = vsel %vm642_vm3, %v6283_v13, %v6597_v6 }
 0x3f0   :  { %1564 = vrot.lane.b32.xlu1 %v8161_v15, %s4508_s26  ;;  %v8178_v15 = vld [vmem:[#allocation38_spill] sm:$0xff] }
 0x3f1   :  { %1482 = vrot.lane.b32.xlu0 %v5834_v17, %s4506_s22  ;;  %v2609_v17 = vsel %vm725_vm8, %v2593_v40, %v2416_v35 }
 0x3f2   :  { %v6702_v38 = vpop.permute.xlu1 %2265  ;;  %v2320_v22 = vpop.permute.xlu0 %2319  ;;  %v2625_v33 = vsel %vm742_vm9, %v2609_v17, %v2458_v54 }
 0x3f4   :  { %v6707_v61 = vpop.f32.mrb[16].mxu0  ;;  %1524 = vrot.lane.b32.xlu1 %v8178_v15, %s4507_s25  ;;  %v8183_v15 = vld [vmem:[#allocation54_spill] sm:$0xff] }
 0x3f5   :  { %v6712_v16 = vpop.f32.mrb[17].mxu0  ;;  %1566 = vrot.lane.b32.xlu0 %v6587_v42, %s4508_s26  ;;  %v2546_v42 = vsel %vm658_vm4, %v2532_v57, %v6618_v59  ;;  %v8185_v57 = vld [vmem:[#allocation68_spill] sm:$0xff] }
 0x3f6   :  { %v2460_v5 = vpop.permute.xlu1 %2459  ;;  %v2562_v58 = vsel %vm674_vm5, %v2546_v42, %v6633_v53 }
 0x3f7   :  { %v2500_v9 = vpop.permute.xlu0 %2499  ;;  %v2578_v54 = vsel %vm691_vm6, %v2562_v58, %v2318_v2 }
 0x3f8   :  { %v2641_v30 = vsel %vm759_vm10, %v2625_v33, %v2500_v9  ;;  %1484 = vrot.lane.b32.xlu1 %v8179_v1, %s4506_s22  ;;  %v2594_v13 = vsel %vm708_vm7, %v2578_v54, %v2372_v28  ;;  %v8184_v33 = vld [vmem:[#allocation58_spill] sm:$0xff] }
 0x3f9   :  { %1486 = vrot.lane.b32.xlu0 %v8180_v34, %s4506_s22  ;;  %4315 = vmatprep.mubr.msk.f32.mxu0 %vm792_vm11, %v2641_v30  ;;  %v2610_v6 = vsel %vm725_vm8, %v2594_v13, %v2418_v56 }
 0x3fa   :  { %v6729_v35 = vpop.permute.xlu1 %2135  ;;  %v2626_v59 = vsel %vm742_vm9, %v2610_v6, %v2460_v5  ;;  %v2533_v5 = vsel %vm642_vm3, %v6333_v20, %v6657_v43  ;;  %v8186_v20 = vld [vmem:[#allocation61_spill] sm:$0xff] }
 0x3fb   :  { %v2322_v7 = vpop.permute.xlu0 %2321  ;;  %v6789_v6 = vld [vmem:[%s7944_s6] ss:$0 sm:$0xff] }
 0x3fc   :  { %1526 = vrot.lane.b32.xlu1 %v8181_v48, %s4507_s25  ;;  %v8187_v48 = vld [vmem:[#allocation70_spill] sm:$0xff] }
 0x3fd   :  { %1528 = vrot.lane.b32.xlu0 %v5984_v47, %s4507_s25  ;;  %v8182_v47 = vld [vmem:[#allocation49_spill] sm:$0xff] }
 0x3fe   :  { %v2374_v45 = vpop.permute.xlu1 %2373 }
 0x3ff   :  { %v2502_v24 = vpop.permute.xlu0 %2501 }
 0x400   :  { %v2642_v50 = vsel %vm759_vm10, %v2626_v59, %v2502_v24  ;;  %1568 = vrot.lane.b32.xlu1 %v8163_v32, %s4508_s26 }
 0x401   :  { %1570 = vrot.lane.b32.xlu0 %v8164_v52, %s4508_s26  ;;  %4316 = vmatmul.mubr.msk.f32.gmra.mrb[26].mxu0 %vm792_vm11, %v2642_v50 }
 0x402   :  { %v2138_v53 = vpop.permute.xlu1 %2137 }
 0x403   :  { %v2220_v2 = vpop.permute.xlu0 %2219 }
 0x404   :  { %1488 = vrot.lane.b32.xlu1 %v8182_v47, %s4506_s22 }
 0x405   :  { %1490 = vrot.lane.b32.xlu0 %v6012_v12, %s4506_s22 }
 0x406   :  { %v2376_v28 = vpop.permute.xlu1 %2375 }
 0x407   :  { %v2420_v56 = vpop.permute.xlu0 %2419 }
 0x408   :  { %1530 = vrot.lane.b32.xlu1 %v8183_v15, %s4507_s25  ;;  %v2783_v15 = vadd.f32 %v6707_v61, %v6789_v6 }
 0x409   :  { %1532 = vrot.lane.b32.xlu0 %v6042_v31, %s4507_s25  ;;  %v2547_v31 = vsel %vm658_vm4, %v2533_v5, %v6675_v25  ;;  %v8190_v5 = vld [vmem:[#allocation72_spill] sm:$0xff] }
 0x40a   :  { %v2222_v32 = vpop.permute.xlu1 %2221 }
 0x40b   :  { %v2268_v52 = vpop.permute.xlu0 %2267 }
 0x40c   :  { %1572 = vrot.lane.b32.xlu1 %v8165_v51, %s4508_s26  ;;  %v2563_v51 = vsel %vm674_vm5, %v2547_v31, %v6687_v36  ;;  %v2534_v36 = vsel %vm642_vm3, %v6353_v37, %v6673_v19 }
 0x40d   :  { %1574 = vrot.lane.b32.xlu0 %v6062_v23, %s4508_s26  ;;  %v2579_v30 = vsel %vm691_vm6, %v2563_v51, %v2320_v22  ;;  %v2548_v13 = vsel %vm658_vm4, %v2534_v36, %v6685_v60  ;;  %v8189_v60 = vld [vmem:[#allocation65_spill] sm:$0xff]  ;;  %v2778_v36 = vadd.f32 %v6789_v6, %v6712_v16 }
 0x40e   :  { %v2422_v40 = vpop.permute.xlu1 %2421  ;;  %v2595_v42 = vsel %vm708_vm7, %v2579_v30, %v2374_v45  ;;  %v2564_v37 = vsel %vm674_vm5, %v2548_v13, %v6702_v38  ;;  %v8188_v45 = vld [vmem:[#allocation64_spill] sm:$0xff] }
 0x40f   :  { %v2462_v17 = vpop.permute.xlu0 %2461  ;;  %v2611_v43 = vsel %vm725_vm8, %v2595_v42, %v2420_v56  ;;  %v1420_v59 = vrot.slane %v8188_v45, 2  ;;  %v2580_v24 = vsel %vm691_vm6, %v2564_v37, %v2322_v7  ;;  %v1419_v56 = vrot.slane %v8189_v60, 2 }
 0x410   :  { %1448 = vrot.lane.b32.xlu1 %v6095_v11, %s4505_s20  ;;  %v2627_v25 = vsel %vm742_vm9, %v2611_v43, %v2462_v17  ;;  %v2536_v17 = vsel %vm642_vm3, %v6441_v39, %v2138_v53  ;;  %v2535_v7 = vsel %vm642_vm3, %v6415_v3, %v6729_v35  ;;  %v8191_v3 = vld [vmem:[#allocation6_spill] sm:$0xff] }
 0x411   :  { %1492 = vrot.lane.b32.xlu0 %v8184_v33, %s4506_s22  ;;  %v2550_v38 = vsel %vm658_vm4, %v2536_v17, %v2222_v32  ;;  %v1421_v35 = vsel %vm256_vm2, %v1419_v56, %v1420_v59  ;;  %v2856_v59 = vmax.f32 %v2778_v36, 0.0  ;;  %v8194_v36 = vld [vmem:[#allocation51_spill] sm:$0xff] }
 0x412   :  { %v2270_v9 = vpop.permute.xlu1 %2269 }
 0x413   :  { %v2324_v23 = vpop.permute.xlu0 %2323  ;;  %v2566_v61 = vsel %vm674_vm5, %v2550_v38, %v2270_v9 }
 0x414   :  { %1494 = vrot.lane.b32.xlu1 %v8185_v57, %s4506_s22 }
 0x415   :  { %1534 = vrot.lane.b32.xlu0 %v8186_v20, %s4507_s25 }
 0x416   :  { %v2464_v58 = vpop.permute.xlu1 %2463 }
 0x417   :  { %v2504_v54 = vpop.permute.xlu0 %2503 }
 0x418   :  { %v2643_v22 = vsel %vm759_vm10, %v2627_v25, %v2504_v54  ;;  %1536 = vrot.lane.b32.xlu1 %v8187_v48, %s4507_s25 }
 0x419   :  { %1576 = vrot.lane.b32.xlu0 %v6095_v11, %s4508_s26  ;;  %4318 = vmatprep.mubr.msk.f32.mxu0 %vm792_vm11, %v2643_v22  ;;  %v2596_v11 = vsel %vm708_vm7, %v2580_v24, %v2376_v28  ;;  %v2549_v28 = vsel %vm658_vm4, %v2535_v7, %v2220_v2  ;;  %v8193_v24 = vld [vmem:[#allocation10_spill] sm:$0xff] }
 0x41a   :  { %v2326_v19 = vpop.permute.xlu1 %2325  ;;  %v2612_v31 = vsel %vm725_vm8, %v2596_v11, %v2422_v40  ;;  %v2857_v40 = vmax.f32 %v2783_v15, 0.0  ;;  %v2565_v42 = vsel %vm674_vm5, %v2549_v28, %v2268_v52  ;;  %v2888_v11 = vrot.slane %v2856_v59, 7 }
 0x41b   :  { %v2378_v50 = vpop.permute.xlu0 %2377  ;;  %v2628_v39 = vsel %vm742_vm9, %v2612_v31, %v2464_v58  ;;  %v2582_v51 = vsel %vm691_vm6, %v2566_v61, %v2326_v19  ;;  %v2581_v2 = vsel %vm691_vm6, %v2565_v42, %v2324_v23  ;;  %v8192_v23 = vld [vmem:[#allocation69_spill] sm:$0xff] }
 0x41c   :  { %1450 = vrot.lane.b32.xlu1 %v8190_v5, %s4505_s20  ;;  %v2597_v9 = vsel %vm708_vm7, %v2581_v2, %v2378_v50  ;;  %v2889_v54 = vrot.slane %v2857_v40, 7 }
 0x41d   :  { %1578 = vrot.lane.b32.xlu0 %v8190_v5, %s4508_s26 }
 0x41e   :  { %v2506_v53 = vpop.permute.xlu1 %2505  ;;  %v6843_v45 = vsel %vm100_vm0, 0.0, %v2889_v54  ;;  %v2937_v16 = vsel %vm100_vm0, %v2889_v54, 0.0 }
 0x41f   :  { %v2644_v32 = vsel %vm759_vm10, %v2628_v39, %v2506_v53  ;;  %v2380_v30 = vpop.permute.xlu0 %2379  ;;  %v2984_v56 = vrot.slane %v2937_v16, 1  ;;  %v2983_v17 = vrot.slane %v6843_v45, 1  ;;  %v3071_v38 = vrot.slane %v2937_v16, 2  ;;  %v8197_v16 = vld [vmem:[#allocation40_spill] sm:$0xff] }
 0x420   :  { %v2598_v20 = vsel %vm708_vm7, %v2582_v51, %v2380_v30  ;;  %3022 = vrot.lane.b32.xlu1 %v8191_v3, %s4511_s13  ;;  %4319 = vmatmul.mubr.msk.f32.gmra.mrb[28].mxu0 %vm792_vm11, %v2644_v32  ;;  %v3070_v61 = vrot.slane %v6843_v45, 2  ;;  %v2936_v39 = vsel %vm100_vm0, %v2888_v11, 0.0  ;;  %v6871_v53 = vsel %vm100_vm0, 0.0, %v2888_v11  ;;  %v8199_v11 = vld [vmem:[#allocation56_spill] sm:$0xff] }
 0x421   :  { %1452 = vrot.lane.b32.xlu0 %v1421_v35, %s4505_s20  ;;  %v2614_v43 = vsel %vm725_vm8, %v2598_v20, %v5305_v0  ;;  %s4512_s20 = smov 36   ;;  %v2985_v7 = vsel %vm165_vm1, %v2983_v17, %v2984_v56  ;;  %v3068_v51 = vrot.slane %v2936_v39, 2  ;;  %v3067_v32 = vrot.slane %v6871_v53, 2  ;;  %v8198_v56 = vld [vmem:[#allocation36_spill] sm:$0xff] }
 0x422   :  { %v2424_v52 = vpop.permute.xlu1 %2423  ;;  %v2630_v22 = vsel %vm742_vm9, %v2614_v43, %v5314_v44  ;;  %v6881_v40 = vsel %vm256_vm2, %v3070_v61, %v3071_v38  ;;  %v2981_v20 = vrot.slane %v2936_v39, 1  ;;  %v1624_v59 = vsel %vm674_vm5, %v5199_v63, %v8197_v16  ;;  %v8202_v16 = vld [vmem:[#allocation73_spill] sm:$0xff] }
 0x423   :  { %v2613_v58 = vsel %vm725_vm8, %v2597_v9, %v2424_v52  ;;  %v2466_v25 = vpop.permute.xlu0 %2465  ;;  %v2646_v50 = vsel %vm759_vm10, %v2630_v22, %v5333_v41  ;;  %v3069_v9 = vsel %vm256_vm2, %v3067_v32, %v3068_v51  ;;  %v1640_v38 = vsel %vm691_vm6, %v1624_v59, %v8199_v11  ;;  %v8201_v32 = vld [vmem:[#allocation47_spill] sm:$0xff] }
 0x424   :  { %1496 = vrot.lane.b32.xlu1 %v8189_v60, %s4506_s22  ;;  %v2629_v48 = vsel %vm742_vm9, %v2613_v58, %v2466_v25  ;;  %v1598_v59 = vsel %vm642_vm3, %v8167_v10, %v8202_v16 }
 0x425   :  { %1538 = vrot.lane.b32.xlu0 %v8192_v23, %s4507_s25  ;;  %s4513_s25 = smov 72   ;;  %v8195_v23 = vld [vmem:[#allocation25_spill] sm:$0xff] }
 0x426   :  { %v2508_v13 = vpop.permute.xlu1 %2507  ;;  %v1596_v22 = vsel %vm642_vm3, %v8195_v23, %v8194_v36 }
 0x427   :  { %v2645_v37 = vsel %vm759_vm10, %v2629_v48, %v2508_v13  ;;  %v6840_v19 = vpop.permute.xlu0 %1424  ;;  %v8196_v48 = vld [vmem:[#allocation55_spill] sm:$0xff] }
 0x428   :  { %3109 = vrot.lane.b32.xlu1 %v8193_v24, %s4503_s18  ;;  %4321 = vmatprep.mubr.msk.f32.mxu0 %vm792_vm11, %v2645_v37  ;;  %v1610_v13 = vsel %vm658_vm4, %v1596_v22, %v8196_v48 }
 0x429   :  { %3158 = vrot.lane.b32.xlu0 %v6843_v45, %s4512_s20  ;;  %4322 = vmatmul.mubr.msk.f32.gmra.mrb[30].mxu0 %vm792_vm11, %v2646_v50  ;;  %v1625_v17 = vsel %vm674_vm5, %v1610_v13, %v8198_v56  ;;  %v8204_v56 = vld [vmem:[#allocation74_spill] sm:$0xff] }
 0x42a   :  { %v6854_v60 = vpop.permute.xlu1 %1426 }
 0x42b   :  { %v6856_v15 = vpop.permute.xlu0 %1428 }
 0x42c   :  { %1580 = vrot.lane.b32.xlu1 %v1421_v35, %s4508_s26  ;;  %s4514_s26 = smov 60   ;;  %v2980_v35 = vrot.slane %v6871_v53, 1 }
 0x42d   :  { %3314 = vrot.lane.b32.xlu0 %v6843_v45, %s4513_s25 }
 0x42e   :  { %v6862_v5 = vpop.permute.xlu1 %1430  ;;  %v2982_v58 = vsel %vm165_vm1, %v2980_v35, %v2981_v20  ;;  %v1641_v20 = vsel %vm691_vm6, %v1625_v17, %v8201_v32  ;;  %v8205_v17 = vld [vmem:[#allocation44_spill] sm:$0xff]  ;;  %v8208_v32 = vld [vmem:[#allocation75_spill] sm:$0xff] }
 0x42f   :  { %v6864_v31 = vpop.permute.xlu0 %1432  ;;  %v1657_v36 = vsel %vm708_vm7, %v1641_v20, %v6840_v19 }
 0x430   :  { %3214 = vrot.lane.b32.xlu1 %v2985_v7, %s4506_s22 }
 0x431   :  { %3156 = vrot.lane.b32.xlu0 %v6871_v53, %s4512_s20 }
 0x432   :  { %v6875_v28 = vpop.permute.xlu1 %1434 }
 0x433   :  { %v6878_v30 = vpop.permute.xlu0 %1436 }
 0x434   :  { %3268 = vrot.lane.b32.xlu1 %v6881_v40, %s4514_s26 }
 0x435   :  { %3026 = vrot.lane.b32.xlu0 %v2985_v7, %s4511_s13 }
 0x436   :  { %v6886_v42 = vpop.permute.xlu1 %1438 }
 0x437   :  { %v6889_v2 = vpop.permute.xlu0 %1440 }
 0x438   :  { %3111 = vrot.lane.b32.xlu1 %v3069_v9, %s4503_s18 }
 0x439   :  { %3113 = vrot.lane.b32.xlu0 %v6881_v40, %s4503_s18 }
 0x43a   :  { %v6895_v43 = vpop.permute.xlu1 %1442 }
 0x43b   :  { %v6897_v52 = vpop.permute.xlu0 %1444 }
 0x43c   :  { %3212 = vrot.lane.b32.xlu1 %v2982_v58, %s4506_s22 }
 0x43d   :  { %3359 = vrot.lane.b32.xlu0 %v2985_v7, %s4515_s11  ;;  %v8200_v7 = vld [vmem:[#allocation59_spill] sm:$0xff] }
 0x43e   :  { %v6902_v25 = vpop.permute.xlu1 %1446  ;;  %v1656_v61 = vsel %vm708_vm7, %v1640_v38, %v8200_v7  ;;  %v8206_v7 = vld [vmem:[#allocation66_spill] sm:$0xff] }
 0x43f   :  { %v1471_v54 = vpop.permute.xlu0 %1470 }
 0x440   :  { %v1672_v39 = vsel %vm725_vm8, %v1656_v61, %v1471_v54 }
 0x441   :  { %3024 = vrot.lane.b32.xlu0 %v2982_v58, %s4511_s13 }
 0x442   :  { %v1473_v37 = vpop.permute.xlu1 %1472 }
 0x443   :  { %v1513_v50 = vpop.permute.xlu0 %1512  ;;  %v1673_v22 = vsel %vm725_vm8, %v1657_v36, %v1473_v37  ;;  %v1612_v37 = vsel %vm658_vm4, %v1598_v59, %v8204_v56 }
 0x444   :  { %v1688_v35 = vsel %vm742_vm9, %v1672_v39, %v1513_v50  ;;  %v8203_v50 = vld [vmem:[#allocation41_spill] sm:$0xff] }
 0x445   :  { %3266 = vrot.lane.b32.xlu0 %v3069_v9, %s4514_s26  ;;  %v1597_v19 = vsel %vm642_vm3, %v8166_v62, %v8203_v50  ;;  %v3580_v62 = vld [vmem:[%s7945_s7] sm:$0xff] }
 0x446   :  { %v1515_v51 = vpop.permute.xlu1 %1514  ;;  %v1611_v11 = vsel %vm658_vm4, %v1597_v19, %v8205_v17  ;;  %v8210_v17 = vld [vmem:[#allocation79_spill] sm:$0xff] }
 0x447   :  { %v1555_v58 = vpop.permute.xlu0 %1554  ;;  %v1689_v9 = vsel %vm742_vm9, %v1673_v22, %v1515_v51  ;;  %v1626_v61 = vsel %vm674_vm5, %v1611_v11, %v8206_v7  ;;  %v8207_v51 = vld [vmem:[#allocation52_spill] sm:$0xff]  ;;  %v1600_v11 = vsel %vm642_vm3, %v8171_v18, %v8210_v17 }
 0x448   :  { %v1704_v23 = vsel %vm759_vm10, %v1688_v35, %v1555_v58  ;;  %v1627_v10 = vsel %vm674_vm5, %v1612_v37, %v8207_v51  ;;  %v1642_v20 = vsel %vm691_vm6, %v1626_v61, %v8208_v32  ;;  %v3581_v35 = vld [vmem:[%s7945_s7 + $0x8] sm:$0xff]  ;;  %v8212_v61 = vld [vmem:[#allocation81_spill] sm:$0xff] }
 0x449   :  { %4258 = vmatprep.mubr.msk.f32.mxu1 %vm792_vm11, %v1704_v23  ;;  %v1658_v58 = vsel %vm708_vm7, %v1642_v20, %v6854_v60  ;;  %v4424_v36 = vpack.c.bf16 %v3581_v35, %v3580_v62  ;;  %v8215_v20 = vld [vmem:[#allocation88_spill] sm:$0xff]  ;;  %v3582_v35 = vld [vmem:[%s7945_s7 + $0x10] sm:$0xff] }
 0x44a   :  { %v1557_v48 = vpop.permute.xlu1 %1556 }
 0x44b   :  { %v1705_v54 = vsel %vm759_vm10, %v1689_v9, %v1557_v48  ;;  %v1475_v13 = vpop.permute.xlu0 %1474  ;;  %v8209_v9 = vld [vmem:[#allocation67_spill] sm:$0xff]  ;;  %4425 = vmatprep.subr.bf16.mxu1 %v4424_v36 }
 0x44c   :  { %4259 = vmatmul.mubr.msk.f32.vlgmr.msra.gmra.mrb[0].mxu1 %vm792_vm11, %v1705_v54  ;;  %v1674_v23 = vsel %vm725_vm8, %v1658_v58, %v1475_v13  ;;  %v1643_v48 = vsel %vm691_vm6, %v1627_v10, %v8209_v9  ;;  %v8214_v10 = vld [vmem:[#allocation63_spill] sm:$0xff]  ;;  %v8216_v58 = vld [vmem:[#allocation76_spill] sm:$0xff] }
 0x44d   :  { %v1659_v59 = vsel %vm708_vm7, %v1643_v48, %v6856_v15  ;;  %4427 = vmatpush3.bf16.msra.mxu1 %v4424_v36  ;;  %v8211_v15 = vld [vmem:[#allocation62_spill] sm:$0xff]  ;;  %v8218_v48 = vld [vmem:[#allocation83_spill] sm:$0xff] }
 0x44e   :  { %v1477_v38 = vpop.permute.xlu1 %1476  ;;  %v1599_v7 = vsel %vm642_vm3, %v8170_v55, %v8211_v15  ;;  %v3583_v55 = vld [vmem:[%s7945_s7 + $0x18] sm:$0xff] }
 0x44f   :  { %v1517_v39 = vpop.permute.xlu0 %1516  ;;  %v1675_v19 = vsel %vm725_vm8, %v1659_v59, %v1477_v38  ;;  %v1614_v38 = vsel %vm658_vm4, %v1600_v11, %v8212_v61  ;;  %v1613_v32 = vsel %vm658_vm4, %v1599_v7, %v8214_v10  ;;  %v8220_v15 = vld [vmem:[#allocation80_spill] sm:$0xff] }
 0x450   :  { %v1690_v54 = vsel %vm742_vm9, %v1674_v23, %v1517_v39  ;;  %v8213_v39 = vld [vmem:[#allocation86_spill] sm:$0xff]  ;;  %v1628_v36 = vsel %vm674_vm5, %v1613_v32, %v8216_v58  ;;  %v8221_v32 = vld [vmem:[#allocation85_spill] sm:$0xff] }
 0x451   :  { %v1602_v51 = vsel %vm642_vm3, %v8175_v29, %v8213_v39  ;;  %v4428_v29 = vpack.c.bf16 %v3583_v55, %v3582_v35  ;;  %v3588_v55 = vld [vmem:[%s7945_s7 + $0x40] sm:$0xff]  ;;  %v3589_v58 = vld [vmem:[%s7945_s7 + $0x48] sm:$0xff] }
 0x452   :  { %v1519_v22 = vpop.permute.xlu1 %1518  ;;  %v1616_v62 = vsel %vm658_vm4, %v1602_v51, %v8215_v20 }
 0x453   :  { %v1559_v16 = vpop.permute.xlu0 %1558  ;;  %v1691_v60 = vsel %vm742_vm9, %v1675_v19, %v1519_v22  ;;  %v8217_v22 = vld [vmem:[#allocation71_spill] sm:$0xff]  ;;  %4429 = vmatprep.subr.bf16.mxu1 %v4428_v29  ;;  %v3584_v19 = vld [vmem:[%s7945_s7 + $0x20] sm:$0xff] }
 0x454   :  { %v1706_v50 = vsel %vm759_vm10, %v1690_v54, %v1559_v16  ;;  %v1629_v9 = vsel %vm674_vm5, %v1614_v38, %v8217_v22  ;;  %v1644_v54 = vsel %vm691_vm6, %v1628_v36, %v8218_v48  ;;  %v8219_v16 = vld [vmem:[#allocation82_spill] sm:$0xff]  ;;  %4431 = vmatpush3.bf16.msra.mxu1 %v4428_v29  ;;  %v8222_v29 = vld [vmem:[#allocation77_spill] sm:$0xff] }
 0x455   :  { %4261 = vmatprep.mubr.msk.f32.mxu1 %vm792_vm11, %v1706_v50  ;;  %v1631_v59 = vsel %vm674_vm5, %v1616_v62, %v8219_v16  ;;  %v1660_v50 = vsel %vm708_vm7, %v1644_v54, %v6862_v5  ;;  %v3587_v5 = vld [vmem:[%s7945_s7 + $0x38] sm:$0xff]  ;;  %v1645_v7 = vsel %vm691_vm6, %v1629_v9, %v8220_v15  ;;  %v1601_v22 = vsel %vm642_vm3, %v8174_v49, %v8222_v29  ;;  %v8223_v16 = vld [vmem:[#allocation78_spill] sm:$0xff]  ;;  %v3590_v15 = vld [vmem:[%s7945_s7 + $0x50] sm:$0xff] }
 0x456   :  { %v1561_v13 = vpop.permute.xlu1 %1560  ;;  %v1661_v10 = vsel %vm708_vm7, %v1645_v7, %v6864_v31  ;;  %v3591_v7 = vld [vmem:[%s7945_s7 + $0x58] sm:$0xff]  ;;  %v3593_v29 = vld [vmem:[%s7945_s7 + $0x68] sm:$0xf] }
 0x457   :  { %v1707_v56 = vsel %vm759_vm10, %v1691_v60, %v1561_v13  ;;  %v1479_v37 = vpop.permute.xlu0 %1478  ;;  %v3585_v60 = vld [vmem:[%s7945_s7 + $0x28] sm:$0xff]  ;;  %v3586_v13 = vld [vmem:[%s7945_s7 + $0x30] sm:$0xff] }
 0x458   :  { %4262 = vmatmul.mubr.msk.f32.gmra.mrb[2].mxu1 %vm792_vm11, %v1707_v56  ;;  %v1676_v56 = vsel %vm725_vm8, %v1660_v50, %v1479_v37  ;;  %v4432_v11 = vpack.c.bf16 %v3585_v60, %v3584_v19  ;;  %v4436_v51 = vpack.c.bf16 %v3587_v5, %v3586_v13  ;;  %v1647_v37 = vsel %vm691_vm6, %v1631_v59, %v8221_v32  ;;  %v8224_v60 = vld [vmem:[#allocation84_spill] sm:$0xff] }
 0x459   :  { %v1663_v31 = vsel %vm708_vm7, %v1647_v37, %v6878_v30  ;;  %v1615_v59 = vsel %vm658_vm4, %v1601_v22, %v8223_v16  ;;  %v4440_v19 = vpack.c.bf16 %v3589_v58, %v3588_v55  ;;  %v8228_v22 = vld [vmem:[#allocation93_spill] sm:$0xff] }
 0x45a   :  { %v1481_v18 = vpop.permute.xlu1 %1480  ;;  %4433 = vmatprep.subr.bf16.mxu1 %v4432_v11  ;;  %v1630_v13 = vsel %vm674_vm5, %v1615_v59, %v8224_v60  ;;  %v1679_v49 = vsel %vm725_vm8, %v1663_v31, %v5305_v0 }
 0x45b   :  { %v1521_v23 = vpop.permute.xlu0 %1520  ;;  %v1677_v36 = vsel %vm725_vm8, %v1661_v10, %v1481_v18  ;;  %4435 = vmatpush3.bf16.msra.mxu1 %v4432_v11  ;;  %v1695_v58 = vsel %vm742_vm9, %v1679_v49, %v5314_v44  ;;  %v8232_v49 = vld [vmem:[#allocation92_spill] sm:$0xff] }
 0x45c   :  { %v1692_v61 = vsel %vm742_vm9, %v1676_v56, %v1521_v23  ;;  %4437 = vmatprep.subr.bf16.mxu1 %v4436_v51  ;;  %v1711_v16 = vsel %vm759_vm10, %v1695_v58, %v5333_v41 }
 0x45e   :  { %v1523_v17 = vpop.permute.xlu1 %1522 }
 0x45f   :  { %v1563_v38 = vpop.permute.xlu0 %1562  ;;  %v4305_v39 = vpop.f32.mrb[18].mxu0  ;;  %v1693_v9 = vsel %vm742_vm9, %v1677_v36, %v1523_v17  ;;  %v8225_v17 = vld [vmem:[#allocation90_spill] sm:$0xff]  ;;  %4439 = vmatpush3.bf16.msra.mxu1 %v4436_v51  ;;  %v4444_v36 = vpack.c.bf16 %v3591_v7, %v3590_v15 }
 0x460   :  { %v1708_v20 = vsel %vm759_vm10, %v1692_v61, %v1563_v38  ;;  %v2793_v62 = vadd.f32 %v4305_v39, %v6789_v6  ;;  %v2787_v35 = vpop.f32.mrb[19].mxu0  ;;  %v1646_v11 = vsel %vm691_vm6, %v1630_v13, %v8225_v17  ;;  %v8226_v61 = vld [vmem:[#allocation91_spill] sm:$0xff]  ;;  %4441 = vmatprep.subr.bf16.mxu1 %v4440_v19  ;;  %v1632_v17 = vsel %vm674_vm5, %v5199_v63, %v8232_v49 }
 0x461   :  { %4264 = vmatprep.mubr.msk.f32.mxu1 %vm792_vm11, %v1708_v20  ;;  %v2788_v23 = vadd.f32 %v6789_v6, %v2787_v35  ;;  %v8227_v38 = vld [vmem:[#allocation43_spill] sm:$0xff]  ;;  %v1662_v10 = vsel %vm708_vm7, %v1646_v11, %v6875_v28 }
 0x462   :  { %v2859_v48 = vmax.f32 %v2793_v62, 0.0  ;;  %v1565_v54 = vpop.permute.xlu1 %1564  ;;  %v1603_v39 = vsel %vm642_vm3, %v8227_v38, %v8226_v61  ;;  %v8231_v13 = vld [vmem:[#allocation87_spill] sm:$0xff] }
 0x463   :  { %v2858_v50 = vmax.f32 %v2788_v23, 0.0  ;;  %v1709_v30 = vsel %vm759_vm10, %v1693_v9, %v1565_v54  ;;  %v1483_v18 = vpop.permute.xlu0 %1482  ;;  %v3592_v23 = vld [vmem:[%s7945_s7 + $0x60] sm:$0xff]  ;;  %v1617_v9 = vsel %vm658_vm4, %v1603_v39, %v8228_v22  ;;  %4443 = vmatpush3.bf16.msra.mxu1 %v4440_v19  ;;  %s4517_s7 = smov 96  }
 0x464   :  { %v2891_v56 = vrot.slane %v2859_v48, 7  ;;  %4265 = vmatmul.mubr.msk.f32.gmra.mrb[4].mxu1 %vm792_vm11, %v1709_v30  ;;  %v1678_v35 = vsel %vm725_vm8, %v1662_v10, %v1483_v18  ;;  %v4448_v30 = vpack.c.bf16 %v3593_v29, %v3592_v23  ;;  %4445 = vmatprep.subr.bf16.mxu1 %v4444_v36  ;;  %v1633_v19 = vsel %vm674_vm5, %v1617_v9, %v8231_v13  ;;  %v8234_v10 = vld [vmem:[#allocation89_spill] sm:$0xff]  ;;  %v8235_v23 = vld [vmem:[#allocation99_spill] sm:$0xff]  ;;  %v8238_v13 = vld [vmem:[#allocation96_spill] sm:$0xff] }
 0x465   :  { %v2890_v5 = vrot.slane %v2858_v50, 7  ;;  %v1605_v29 = vsel %vm642_vm3, %v8180_v34, %v8235_v23  ;;  %v8236_v22 = vld [vmem:[#allocation101_spill] sm:$0xff] }
 0x466   :  { %v7058_v32 = vsel %vm100_vm0, 0.0, %v2891_v56  ;;  %v1525_v37 = vpop.permute.xlu1 %1524  ;;  %v2939_v18 = vsel %vm100_vm0, %v2891_v56, 0.0  ;;  %v8233_v56 = vld [vmem:[#allocation98_spill] sm:$0xff]  ;;  %v1619_v9 = vsel %vm658_vm4, %v1605_v29, %v8236_v22 }
 0x467   :  { %v7061_v20 = vsel %vm100_vm0, 0.0, %v2890_v5  ;;  %v2938_v62 = vsel %vm100_vm0, %v2890_v5, 0.0  ;;  %v1567_v55 = vpop.permute.xlu0 %1566  ;;  %3162 = vrot.lane.b32.xlu1 %v7058_v32, %s4512_s20  ;;  %v1694_v31 = vsel %vm742_vm9, %v1678_v35, %v1525_v37  ;;  %4447 = vmatpush3.bf16.msra.mxu1 %v4444_v36  ;;  %v1648_v7 = vsel %vm691_vm6, %v1632_v17, %v8233_v56  ;;  %v8240_v17 = vld [vmem:[#allocation100_spill] sm:$0xff] }
 0x468   :  { %v2987_v28 = vrot.slane %v2938_v62, 1  ;;  %3160 = vrot.lane.b32.xlu0 %v7061_v20, %s4512_s20  ;;  %v2986_v51 = vrot.slane %v7061_v20, 1  ;;  %v1710_v48 = vsel %vm759_vm10, %v1694_v31, %v1567_v55  ;;  %v3074_v11 = vrot.slane %v2938_v62, 2  ;;  %4450 = vmatprep.subr.msk.bf16.mxu1 %vm7091_vm14, %v4448_v30 }
 0x469   :  { %4267 = vmatprep.mubr.msk.f32.mxu1 %vm792_vm11, %v1710_v48  ;;  %v3073_v15 = vrot.slane %v7061_v20, 2  ;;  %v2990_v61 = vrot.slane %v2939_v18, 1  ;;  %v2989_v39 = vrot.slane %v7058_v32, 1  ;;  %v1664_v63 = vsel %vm708_vm7, %v1648_v7, %v6886_v42 }
 0x46a   :  { %v1485_v54 = vpop.permute.xlu1 %1484  ;;  %v2988_v59 = vsel %vm165_vm1, %v2986_v51, %v2987_v28  ;;  %4268 = vmatmul.mubr.msk.f32.gmra.mrb[6].mxu1 %vm792_vm11, %v1711_v16  ;;  %v1649_v37 = vsel %vm691_vm6, %v1633_v19, %v8234_v10  ;;  %v8239_v19 = vld [vmem:[#allocation95_spill] sm:$0xff] }
 0x46b   :  { %v1487_v50 = vpop.permute.xlu0 %1486  ;;  %3316 = vrot.lane.b32.xlu1 %v7061_v20, %s4513_s25  ;;  %v1665_v62 = vsel %vm708_vm7, %v1649_v37, %v6889_v2  ;;  %v1680_v35 = vsel %vm725_vm8, %v1664_v63, %v1485_v54  ;;  %v3075_v31 = vsel %vm256_vm2, %v3073_v15, %v3074_v11  ;;  %4453 = vmatpush3.bf16.msk.msra.mxu1 %vm7091_vm14, %v4448_v30  ;;  %v3077_v54 = vrot.slane %v2939_v18, 2  ;;  %v8237_v30 = vld [vmem:[#allocation94_spill] sm:$0xff] }
 0x46c   :  { %3216 = vrot.lane.b32.xlu0 %v2988_v59, %s4506_s22  ;;  %v1681_v55 = vsel %vm725_vm8, %v1665_v62, %v1487_v50  ;;  %v2991_v2 = vsel %vm165_vm1, %v2989_v39, %v2990_v61  ;;  %v3076_v50 = vrot.slane %v7058_v32, 2  ;;  %v1604_v60 = vsel %vm642_vm3, %v8179_v1, %v8237_v30  ;;  %v8242_v61 = vld [vmem:[#allocation97_spill] sm:$0xff] }
 0x46d   :  { %v1618_v34 = vsel %vm658_vm4, %v1604_v60, %v8238_v13  ;;  %v1635_v49 = vsel %vm674_vm5, %v1619_v9, %v8239_v19  ;;  %v8245_v60 = vld [vmem:[#allocation104_spill] sm:$0xff] }
 0x46e   :  { %v1527_v5 = vpop.permute.xlu1 %1526  ;;  %v1634_v18 = vsel %vm674_vm5, %v1618_v34, %v8240_v17  ;;  %v7150_v1 = vsel %vm256_vm2, %v3076_v50, %v3077_v54  ;;  %v8246_v34 = vld [vmem:[#allocation109_spill] sm:$0xff]  ;;  %v8247_v17 = vld [vmem:[#allocation108_spill] sm:$0xff] }
 0x46f   :  { %v1529_v38 = vpop.permute.xlu0 %1528  ;;  %3028 = vrot.lane.b32.xlu1 %v2988_v59, %s4511_s13  ;;  %v1696_v58 = vsel %vm742_vm9, %v1680_v35, %v1527_v5  ;;  %v8241_v5 = vld [vmem:[#allocation106_spill] sm:$0xff] }
 0x470   :  { %3404 = vrot.lane.b32.xlu0 %v6881_v40, %s4517_s7  ;;  %v1697_v42 = vsel %vm742_vm9, %v1681_v55, %v1529_v38  ;;  %v1651_v38 = vsel %vm691_vm6, %v1635_v49, %v8242_v61 }
 0x471   :  { %v1667_v63 = vsel %vm708_vm7, %v1651_v38, %v6897_v52 }
 0x472   :  { %v1569_v28 = vpop.permute.xlu1 %1568 }
 0x473   :  { %v1712_v51 = vsel %vm759_vm10, %v1696_v58, %v1569_v28  ;;  %v1571_v40 = vpop.permute.xlu0 %1570  ;;  %3115 = vrot.lane.b32.xlu1 %v3075_v31, %s4503_s18 }
 0x474   :  { %v1713_v36 = vsel %vm759_vm10, %v1697_v42, %v1571_v40  ;;  %3218 = vrot.lane.b32.xlu0 %v2991_v2, %s4506_s22  ;;  %4270 = vmatprep.mubr.msk.f32.mxu1 %vm792_vm11, %v1712_v51 }
 0x475   :  { %4271 = vmatmul.mubr.msk.f32.gmra.mrb[8].mxu1 %vm792_vm11, %v1713_v36 }
 0x476   :  { %v1489_v48 = vpop.permute.xlu1 %1488 }
 0x477   :  { %v1491_v16 = vpop.permute.xlu0 %1490  ;;  %3361 = vrot.lane.b32.xlu1 %v2988_v59, %s4515_s11  ;;  %v1650_v59 = vsel %vm691_vm6, %v1634_v18, %v8241_v5 }
 0x478   :  { %3406 = vrot.lane.b32.xlu0 %v3075_v31, %s4517_s7  ;;  %v1666_v7 = vsel %vm708_vm7, %v1650_v59, %v6895_v43  ;;  %v1683_v62 = vsel %vm725_vm8, %v1667_v63, %v1491_v16  ;;  %v8244_v16 = vld [vmem:[#allocation107_spill] sm:$0xff] }
 0x479   :  { %v1682_v10 = vsel %vm725_vm8, %v1666_v7, %v1489_v48  ;;  %v8243_v48 = vld [vmem:[#allocation102_spill] sm:$0xff]  ;;  %v1607_v50 = vsel %vm642_vm3, %v6012_v12, %v8244_v16  ;;  %v8248_v12 = vld [vmem:[#allocation103_spill] sm:$0xff] }
 0x47a   :  { %v1531_v11 = vpop.permute.xlu1 %1530  ;;  %v1606_v54 = vsel %vm642_vm3, %v8182_v47, %v8243_v48  ;;  %v1621_v19 = vsel %vm658_vm4, %v1607_v50, %v8246_v34  ;;  %v8250_v16 = vld [vmem:[#allocation110_spill] sm:$0xff] }
 0x47b   :  { %v1533_v15 = vpop.permute.xlu0 %1532  ;;  %3030 = vrot.lane.b32.xlu1 %v2991_v2, %s4511_s13  ;;  %v4308_v56 = vpop.f32.mrb[20].mxu0  ;;  %v1698_v35 = vsel %vm742_vm9, %v1682_v10, %v1531_v11  ;;  %v1620_v13 = vsel %vm658_vm4, %v1606_v54, %v8245_v60  ;;  %v8251_v60 = vld [vmem:[#allocation111_spill] sm:$0xff] }
 0x47c   :  { %v2797_v39 = vpop.f32.mrb[21].mxu0  ;;  %3117 = vrot.lane.b32.xlu0 %v7150_v1, %s4503_s18  ;;  %v1699_v43 = vsel %vm742_vm9, %v1683_v62, %v1533_v15  ;;  %v2803_v51 = vadd.f32 %v4308_v56, %v6789_v6  ;;  %v1636_v18 = vsel %vm674_vm5, %v1620_v13, %v8247_v17  ;;  %v1637_v15 = vsel %vm674_vm5, %v1621_v19, %v8248_v12 }
 0x47d   :  { %v2798_v37 = vadd.f32 %v6789_v6, %v2797_v39  ;;  %v1652_v47 = vsel %vm691_vm6, %v1636_v18, %v6385_v26 }
 0x47e   :  { %v1573_v55 = vpop.permute.xlu1 %1572  ;;  %v1668_v56 = vsel %vm708_vm7, %v1652_v47, %v6902_v25 }
 0x47f   :  { %v2860_v58 = vmax.f32 %v2798_v37, 0.0  ;;  %v1714_v28 = vsel %vm759_vm10, %v1698_v35, %v1573_v55  ;;  %v1575_v42 = vpop.permute.xlu0 %1574  ;;  %3270 = vrot.lane.b32.xlu1 %v3075_v31, %s4514_s26  ;;  %v2861_v31 = vmax.f32 %v2803_v51, 0.0  ;;  %v8249_v37 = vld [vmem:[#allocation105_spill] sm:$0xff] }
 0x480   :  { %v1715_v52 = vsel %vm759_vm10, %v1699_v43, %v1575_v42  ;;  %3318 = vrot.lane.b32.xlu0 %v7058_v32, %s4513_s25  ;;  %4273 = vmatprep.mubr.msk.f32.mxu1 %vm792_vm11, %v1714_v28  ;;  %v1653_v62 = vsel %vm691_vm6, %v1637_v15, %v8249_v37 }
 0x481   :  { %v2892_v40 = vrot.slane %v2860_v58, 7  ;;  %4274 = vmatmul.mubr.msk.f32.gmra.mrb[10].mxu1 %vm792_vm11, %v1715_v52  ;;  %v2893_v59 = vrot.slane %v2861_v31, 7 }
 0x482   :  { %v1449_v36 = vpop.permute.xlu1 %1448 }
 0x483   :  { %v7174_v23 = vsel %vm100_vm0, 0.0, %v2892_v40  ;;  %v2940_v29 = vsel %vm100_vm0, %v2892_v40, 0.0  ;;  %v1493_v22 = vpop.permute.xlu0 %1492  ;;  %v7205_v10 = vsel %vm100_vm0, 0.0, %v2893_v59  ;;  %v1669_v25 = vsel %vm708_vm7, %v1653_v62, %v1449_v36 }
 0x484   :  { %v2993_v9 = vrot.slane %v2940_v29, 1  ;;  %3164 = vrot.lane.b32.xlu0 %v7174_v23, %s4512_s20  ;;  %v2992_v30 = vrot.slane %v7174_v23, 1  ;;  %v1684_v7 = vsel %vm725_vm8, %v1668_v56, %v1493_v22  ;;  %v3080_v38 = vrot.slane %v2940_v29, 2 }
 0x485   :  { %v3079_v26 = vrot.slane %v7174_v23, 2  ;;  %v2995_v52 = vrot.slane %v7205_v10, 1  ;;  %v1609_v40 = vsel %vm642_vm3, %v8185_v57, %v6387_v27  ;;  %v3082_v13 = vrot.slane %v7205_v10, 2 }
 0x486   :  { %v1495_v49 = vpop.permute.xlu1 %1494  ;;  %v2994_v5 = vsel %vm165_vm1, %v2992_v30, %v2993_v9  ;;  %v1623_v22 = vsel %vm658_vm4, %v1609_v40, %v6401_v4  ;;  %v1608_v4 = vsel %vm642_vm3, %v8184_v33, %v6366_v21  ;;  %vm3480_vm3 = vcmask 293888  }
 0x487   :  { %v1535_v11 = vpop.permute.xlu0 %1534  ;;  %3032 = vrot.lane.b32.xlu1 %v2994_v5, %s4511_s13  ;;  %v1685_v55 = vsel %vm725_vm8, %v1669_v25, %v1495_v49  ;;  %v3081_v51 = vsel %vm256_vm2, %v3079_v26, %v3080_v38  ;;  %v1639_v27 = vsel %vm674_vm5, %v1623_v22, %v6368_v46  ;;  %v1622_v50 = vsel %vm658_vm4, %v1608_v4, %v8250_v16 }
 0x488   :  { %3363 = vrot.lane.b32.xlu0 %v2991_v2, %s4515_s11  ;;  %v1700_v39 = vsel %vm742_vm9, %v1684_v7, %v1535_v11  ;;  %v2941_v2 = vsel %vm100_vm0, %v2893_v59, 0.0  ;;  %v1655_v46 = vsel %vm691_vm6, %v1639_v27, %v8251_v60  ;;  %v1638_v34 = vsel %vm674_vm5, %v1622_v50, %v6399_v8 }
 0x489   :  { %v2996_v58 = vrot.slane %v2941_v2, 1  ;;  %v3083_v30 = vrot.slane %v2941_v2, 2  ;;  %v1654_v21 = vsel %vm691_vm6, %v1638_v34, %v6412_v14  ;;  %vm3513_vm6 = vcmask 490496  }
 0x48a   :  { %v1537_v61 = vpop.permute.xlu1 %1536 }
 0x48b   :  { %v1577_v63 = vpop.permute.xlu0 %1576  ;;  %3272 = vrot.lane.b32.xlu1 %v7150_v1, %s4514_s26  ;;  %v1701_v28 = vsel %vm742_vm9, %v1685_v55, %v1537_v61  ;;  %v2997_v48 = vsel %vm165_vm1, %v2995_v52, %v2996_v58  ;;  %v3084_v47 = vsel %vm256_vm2, %v3082_v13, %v3083_v30 }
 0x48c   :  { %v1716_v35 = vsel %vm759_vm10, %v1700_v39, %v1577_v63  ;;  %3220 = vrot.lane.b32.xlu0 %v2994_v5, %s4506_s22 }
 0x48d   :  { %4276 = vmatprep.mubr.msk.f32.mxu1 %vm792_vm11, %v1716_v35 }
 0x48e   :  { %v1451_v43 = vpop.permute.xlu1 %1450 }
 0x48f   :  { %v1579_v42 = vpop.permute.xlu0 %1578  ;;  %3119 = vrot.lane.b32.xlu1 %v3081_v51, %s4503_s18  ;;  %v1670_v33 = vsel %vm708_vm7, %v1654_v21, %v1451_v43 }
 0x490   :  { %v1717_v29 = vsel %vm759_vm10, %v1701_v28, %v1579_v42  ;;  %v4311_v36 = vpop.f32.mrb[22].mxu0  ;;  %3408 = vrot.lane.b32.xlu0 %v7150_v1, %s4517_s7 }
 0x491   :  { %4277 = vmatmul.mubr.msk.f32.gmra.mrb[12].mxu1 %vm792_vm11, %v1717_v29  ;;  %v2807_v31 = vpop.f32.mrb[23].mxu0  ;;  %v2813_v39 = vadd.f32 %v4311_v36, %v6789_v6 }
 0x492   :  { %v7230_v9 = vpop.permute.xlu1 %3022  ;;  %v2808_v57 = vadd.f32 %v6789_v6, %v2807_v31 }
 0x493   :  { %3320 = vrot.lane.b32.xlu1 %v7174_v23, %s4513_s25  ;;  %v1453_v1 = vpop.permute.xlu0 %1452  ;;  %v2863_v2 = vmax.f32 %v2813_v39, 0.0 }
 0x494   :  { %3222 = vrot.lane.b32.xlu0 %v2997_v48, %s4506_s22  ;;  %v2862_v19 = vmax.f32 %v2808_v57, 0.0  ;;  %v1671_v49 = vsel %vm708_vm7, %v1655_v46, %v1453_v1 }
 0x495   :  { %v1687_v18 = vsel %vm725_vm8, %v1671_v49, %v5305_v0  ;;  %v2895_v35 = vrot.slane %v2863_v2, 7 }
 0x496   :  { %v1497_v54 = vpop.permute.xlu1 %1496  ;;  %v2894_v59 = vrot.slane %v2862_v19, 7  ;;  %v1703_v15 = vsel %vm742_vm9, %v1687_v18, %v5314_v44 }
 0x497   :  { %3166 = vrot.lane.b32.xlu1 %v7205_v10, %s4512_s20  ;;  %v1686_v8 = vsel %vm725_vm8, %v1670_v33, %v1497_v54  ;;  %v1539_v11 = vpop.permute.xlu0 %1538  ;;  %v2927_v28 = vsel %vm100_vm0, 0.0, %v2895_v35  ;;  %v2943_v42 = vsel %vm100_vm0, %v2895_v35, 0.0 }
 0x498   :  { %3410 = vrot.lane.b32.xlu0 %v3081_v51, %s4517_s7  ;;  %v1702_v12 = vsel %vm742_vm9, %v1686_v8, %v1539_v11  ;;  %v7269_v0 = vsel %vm100_vm0, 0.0, %v2894_v59  ;;  %v2942_v7 = vsel %vm100_vm0, %v2894_v59, 0.0  ;;  %v3207_v40 = vrot.slane %v2943_v42, 1  ;;  %v8252_v59 = vld [vmem:[#allocation5_spill] sm:$0xff] }
 0x499   :  { %v2999_v44 = vrot.slane %v2942_v7, 1  ;;  %v2998_v61 = vrot.slane %v7269_v0, 1  ;;  %v3086_v63 = vrot.slane %v2942_v7, 2  ;;  %v3206_v22 = vrot.slane %v2927_v28, 1 }
 0x49a   :  { %v7256_v17 = vpop.permute.xlu1 %3109  ;;  %v3261_v4 = vrot.slane %v2943_v42, 2  ;;  %v3260_v50 = vrot.slane %v2927_v28, 2  ;;  %vm3546_vm9 = vcmask 687104  }
 0x49b   :  { %3365 = vrot.lane.b32.xlu1 %v2994_v5, %s4515_s11  ;;  %v1719_v5 = vsel %vm759_vm10, %v1703_v15, %v5333_v41  ;;  %v3000_v38 = vsel %vm165_vm1, %v2998_v61, %v2999_v44  ;;  %v3085_v41 = vrot.slane %v7269_v0, 2  ;;  %v7288_v26 = vpop.permute.xlu0 %3158  ;;  %v3208_v1 = vsel %vm165_vm1, %v3206_v22, %v3207_v40 }
 0x49c   :  { %3121 = vrot.lane.b32.xlu0 %v3084_v47, %s4503_s18  ;;  %v3262_v34 = vsel %vm256_vm2, %v3260_v50, %v3261_v4  ;;  %v3450_v15 = vsel %vm3449_vm15, %v8252_v59, %v7230_v9 }
 0x49d   :  { %v3087_v37 = vsel %vm256_vm2, %v3085_v41, %v3086_v63  ;;  %v7351_v39 = vsel %vm674_vm5, %v3450_v15, %v7256_v17 }
 0x49e   :  { %v1581_v14 = vpop.permute.xlu1 %1580 }
 0x49f   :  { %v1718_v56 = vsel %vm759_vm10, %v1702_v12, %v1581_v14  ;;  %3034 = vrot.lane.b32.xlu1 %v2997_v48, %s4511_s13  ;;  %v7295_v62 = vpop.permute.xlu0 %3314  ;;  %vm3563_vm10 = vcmask 785408  }
 0x4a0   :  { %3322 = vrot.lane.b32.xlu0 %v7205_v10, %s4513_s25  ;;  %4279 = vmatprep.mubr.msk.f32.mxu1 %vm792_vm11, %v1718_v56 }
 0x4a1   :  { %4280 = vmatmul.mubr.msk.f32.gmra.mrb[14].mxu1 %vm792_vm11, %v1719_v5 }
 0x4a2   :  { %v7316_v54 = vpop.permute.xlu1 %3214 }
 0x4a3   :  { %3274 = vrot.lane.b32.xlu1 %v3081_v51, %s4514_s26  ;;  %v3157_v51 = vpop.permute.xlu0 %3156 }
 0x4a4   :  { %3168 = vrot.lane.b32.xlu0 %v7269_v0, %s4512_s20  ;;  %v3481_v41 = vsel %vm3480_vm3, %v7351_v39, %v3157_v51 }
 0x4a6   :  { %v7328_v19 = vpop.permute.xlu1 %3268 }
 0x4a7   :  { %3036 = vrot.lane.b32.xlu1 %v3000_v38, %s4511_s13  ;;  %v7310_v27 = vpop.permute.xlu0 %3026 }
 0x4a8   :  { %3367 = vrot.lane.b32.xlu0 %v2997_v48, %s4515_s11 }
 0x4aa   :  { %v3112_v18 = vpop.permute.xlu1 %3111 }
 0x4ab   :  { %3276 = vrot.lane.b32.xlu1 %v3084_v47, %s4514_s26  ;;  %v7320_v30 = vpop.permute.xlu0 %3113 }
 0x4ac   :  { %3224 = vrot.lane.b32.xlu0 %v3000_v38, %s4506_s22 }
 0x4ae   :  { %v3213_v7 = vpop.permute.xlu1 %3212 }
 0x4af   :  { %3123 = vrot.lane.b32.xlu1 %v3087_v37, %s4503_s18  ;;  %v3360_v49 = vpop.permute.xlu0 %3359  ;;  %v3497_v35 = vsel %vm725_vm8, %v3481_v41, %v3213_v7 }
 0x4b0   :  { %3412 = vrot.lane.b32.xlu0 %v3084_v47, %s4517_s7 }
 0x4b3   :  { %v4314_v25 = vpop.f32.mrb[24].mxu0  ;;  %3324 = vrot.lane.b32.xlu1 %v7269_v0, %s4513_s25  ;;  %v3025_v47 = vpop.permute.xlu0 %3024 }
 0x4b4   :  { %v2817_v55 = vpop.f32.mrb[25].mxu0  ;;  %3278 = vrot.lane.b32.xlu0 %v3087_v37, %s4514_s26  ;;  %v2823_v16 = vadd.f32 %v4314_v25, %v6789_v6 }
 0x4b5   :  { %v2818_v43 = vadd.f32 %v6789_v6, %v2817_v55 }
 0x4b6   :  { %v2865_v60 = vmax.f32 %v2823_v16, 0.0 }
 0x4b7   :  { %v2864_v58 = vmax.f32 %v2818_v43, 0.0  ;;  %3170 = vrot.lane.b32.xlu1 %v2927_v28, %s4512_s20  ;;  %v3267_v44 = vpop.permute.xlu0 %3266 }
 0x4b8   :  { %v2897_v21 = vrot.slane %v2865_v60, 7  ;;  %v3514_v25 = vsel %vm3513_vm6, %v3497_v35, %v3267_v44 }
 0x4b9   :  { %v2896_v52 = vrot.slane %v2864_v58, 7 }
 0x4ba   :  { %v7334_v8 = vsel %vm100_vm0, 0.0, %v2897_v21  ;;  %v2945_v11 = vsel %vm100_vm0, %v2897_v21, 0.0 }
 0x4bb   :  { %v7305_v29 = vsel %vm100_vm0, 0.0, %v2896_v52  ;;  %v2944_v36 = vsel %vm100_vm0, %v2896_v52, 0.0  ;;  %3369 = vrot.lane.b32.xlu1 %v3000_v38, %s4515_s11  ;;  %v3005_v12 = vrot.slane %v2945_v11, 1  ;;  %v3004_v14 = vrot.slane %v7334_v8, 1 }
 0x4bc   :  { %v3001_v31 = vrot.slane %v7305_v29, 1  ;;  %v3002_v48 = vrot.slane %v2944_v36, 1  ;;  %v3088_v46 = vrot.slane %v7305_v29, 2  ;;  %v3089_v13 = vrot.slane %v2944_v36, 2 }
 0x4bd   :  { %v3006_v38 = vsel %vm165_vm1, %v3004_v14, %v3005_v12  ;;  %v3091_v17 = vrot.slane %v7334_v8, 2 }
 0x4be   :  { %v3003_v57 = vsel %vm165_vm1, %v3001_v31, %v3002_v48  ;;  %v3090_v33 = vsel %vm256_vm2, %v3088_v46, %v3089_v13 }
 0x4bf   :  { %3038 = vrot.lane.b32.xlu0 %v3003_v57, %s4511_s13  ;;  %3226 = vrot.lane.b32.xlu1 %v3208_v1, %s4506_s22 }
 0x4c3   :  { %3326 = vrot.lane.b32.xlu0 %v2927_v28, %s4513_s25  ;;  %3414 = vrot.lane.b32.xlu1 %v3087_v37, %s4517_s7 }
 0x4c7   :  { %3172 = vrot.lane.b32.xlu0 %v7305_v29, %s4512_s20  ;;  %3280 = vrot.lane.b32.xlu1 %v3262_v34, %s4514_s26 }
 0x4cb   :  { %3371 = vrot.lane.b32.xlu0 %v3208_v1, %s4515_s11  ;;  %3125 = vrot.lane.b32.xlu1 %v3090_v33, %s4503_s18 }
 0x4cf   :  { %3228 = vrot.lane.b32.xlu0 %v3003_v57, %s4506_s22  ;;  %3328 = vrot.lane.b32.xlu1 %v8252_v59, %s4513_s25 }
 0x4d3   :  { %3416 = vrot.lane.b32.xlu0 %v3262_v34, %s4517_s7  ;;  %3174 = vrot.lane.b32.xlu1 %v7334_v8, %s4512_s20 }
 0x4d4   :  { %v4317_v56 = vpop.f32.mrb[26].mxu0 }
 0x4d5   :  { %v2827_v5 = vpop.f32.mrb[27].mxu0 }
 0x4d6   :  { %v2828_v61 = vadd.f32 %v6789_v6, %v2827_v5  ;;  %v3092_v6 = vrot.slane %v2945_v11, 2 }
 0x4d7   :  { %3230 = vrot.lane.b32.xlu0 %v3006_v38, %s4506_s22  ;;  %3373 = vrot.lane.b32.xlu1 %v8191_v3, %s4515_s11  ;;  %v3451_v3 = vsel %vm3449_vm15, %v6871_v53, %v3025_v47  ;;  %v3530_v53 = vsel %vm792_vm11, %v3514_v25, %v7295_v62  ;;  %v7391_v62 = vld [vmem:[%s7944_s6] ss:$0 sm:$0xff] }
 0x4d8   :  { %v2866_v63 = vmax.f32 %v2828_v61, 0.0  ;;  %v3093_v42 = vsel %vm256_vm2, %v3091_v17, %v3092_v6  ;;  %v3547_v22 = vsel %vm3546_vm9, %v3530_v53, %v3360_v49  ;;  %v2833_v48 = vadd.f32 %v7391_v62, %v4317_v56 }
 0x4d9   :  { %v7356_v9 = vpop.permute.xlu1 %3162 }
 0x4da   :  { %v2898_v2 = vrot.slane %v2866_v63, 7  ;;  %v7360_v37 = vpop.permute.xlu0 %3160  ;;  %v2867_v50 = vmax.f32 %v2833_v48, 0.0 }
 0x4db   :  { %3418 = vrot.lane.b32.xlu0 %v8193_v24, %s4517_s7  ;;  %3040 = vrot.lane.b32.xlu1 %v3006_v38, %s4511_s13  ;;  %v3466_v24 = vsel %vm674_vm5, %v3451_v3, %v3112_v18 }
 0x4dc   :  { %v7370_v55 = vsel %vm100_vm0, 0.0, %v2898_v2  ;;  %v2946_v43 = vsel %vm100_vm0, %v2898_v2, 0.0  ;;  %v3482_v36 = vsel %vm3480_vm3, %v3466_v24, %v7288_v26  ;;  %v3452_v2 = vsel %vm3449_vm15, %v6843_v45, %v7310_v27 }
 0x4dd   :  { %v3317_v58 = vpop.permute.xlu1 %3316  ;;  %v3008_v51 = vrot.slane %v2946_v43, 1  ;;  %v3007_v52 = vrot.slane %v7370_v55, 1  ;;  %v3498_v26 = vsel %vm725_vm8, %v3482_v36, %v7316_v54  ;;  %v3095_v60 = vrot.slane %v2946_v43, 2 }
 0x4de   :  { %v7374_v28 = vpop.permute.xlu0 %3216  ;;  %v3094_v46 = vrot.slane %v7370_v55, 2  ;;  %v3515_v13 = vsel %vm3513_vm6, %v3498_v26, %v7328_v19  ;;  %v3467_v43 = vsel %vm674_vm5, %v3452_v2, %v7320_v30 }
 0x4df   :  { %3127 = vrot.lane.b32.xlu0 %v3093_v42, %s4503_s18  ;;  %3282 = vrot.lane.b32.xlu1 %v3090_v33, %s4514_s26  ;;  %v3009_v1 = vsel %vm165_vm1, %v3007_v52, %v3008_v51  ;;  %v3531_v34 = vsel %vm792_vm11, %v3515_v13, %v3317_v58  ;;  %v2899_v33 = vrot.slane %v2867_v50, 7  ;;  %v3483_v58 = vsel %vm3480_vm3, %v3467_v43, %v7360_v37 }
 0x4e0   :  { %v3096_v11 = vsel %vm256_vm2, %v3094_v46, %v3095_v60  ;;  %v3499_v27 = vsel %vm725_vm8, %v3483_v58, %v7374_v28 }
 0x4e1   :  { %v7383_v40 = vpop.permute.xlu1 %3028  ;;  %v7422_v47 = vsel %vm100_vm0, 0.0, %v2899_v33  ;;  %v2947_v59 = vsel %vm100_vm0, %v2899_v33, 0.0 }
 0x4e2   :  { %v3405_v31 = vpop.permute.xlu0 %3404  ;;  %v3011_v14 = vrot.slane %v2947_v59, 1  ;;  %v3010_v56 = vrot.slane %v7422_v47, 1  ;;  %v3098_v17 = vrot.slane %v2947_v59, 2  ;;  %v3097_v25 = vrot.slane %v7422_v47, 2 }
 0x4e3   :  { %v3564_v57 = vsel %vm3563_vm10, %v3547_v22, %v3405_v31  ;;  %3330 = vrot.lane.b32.xlu0 %v7334_v8, %s4513_s25  ;;  %3042 = vrot.lane.b32.xlu1 %v3009_v1, %s4511_s13  ;;  %v3453_v60 = vsel %vm3449_vm15, %v7061_v20, %v7383_v40 }
 0x4e4   :  { %4352 = vmatprep.mubr.msk.f32.mxu1 %vm3601_vm12, %v3564_v57  ;;  %v3012_v63 = vsel %vm165_vm1, %v3010_v56, %v3011_v14  ;;  %v3099_v37 = vsel %vm256_vm2, %v3097_v25, %v3098_v17 }
 0x4e5   :  { %v7402_v4 = vpop.permute.xlu1 %3115 }
 0x4e6   :  { %v7404_v16 = vpop.permute.xlu0 %3218  ;;  %v3468_v46 = vsel %vm674_vm5, %v3453_v60, %v7402_v4 }
 0x4e7   :  { %3176 = vrot.lane.b32.xlu0 %v7370_v55, %s4512_s20  ;;  %3284 = vrot.lane.b32.xlu1 %v3093_v42, %s4514_s26  ;;  %v3484_v33 = vsel %vm3480_vm3, %v3468_v46, %v7356_v9 }
 0x4e9   :  { %v3362_v49 = vpop.permute.xlu1 %3361 }
 0x4ea   :  { %v3548_v54 = vsel %vm3546_vm9, %v3531_v34, %v3362_v49  ;;  %v3407_v21 = vpop.permute.xlu0 %3406 }
 0x4eb   :  { %v3565_v18 = vsel %vm3563_vm10, %v3548_v54, %v3407_v21  ;;  %3375 = vrot.lane.b32.xlu0 %v3006_v38, %s4515_s11  ;;  %3129 = vrot.lane.b32.xlu1 %v3096_v11, %s4503_s18 }
 0x4ec   :  { %4353 = vmatmul.mubr.msk.f32.vlgmr.msra.gmra.mrb[16].mxu1 %vm3601_vm12, %v3565_v18 }
 0x4ed   :  { %v7426_v12 = vpop.permute.xlu1 %3030 }
 0x4ee   :  { %v7419_v19 = vpop.permute.xlu0 %3117  ;;  %v3454_v43 = vsel %vm3449_vm15, %v7058_v32, %v7426_v12 }
 0x4ef   :  { %3232 = vrot.lane.b32.xlu0 %v3009_v1, %s4506_s22  ;;  %3332 = vrot.lane.b32.xlu1 %v7370_v55, %s4513_s25 }
 0x4f1   :  { %v3271_v61 = vpop.permute.xlu1 %3270 }
 0x4f2   :  { %v3319_v15 = vpop.permute.xlu0 %3318  ;;  %v3516_v30 = vsel %vm3513_vm6, %v3499_v27, %v3271_v61 }
 0x4f3   :  { %v4320_v7 = vpop.f32.mrb[28].mxu0  ;;  %3420 = vrot.lane.b32.xlu0 %v3093_v42, %s4517_s7  ;;  %3178 = vrot.lane.b32.xlu1 %v7422_v47, %s4512_s20  ;;  %v3532_v31 = vsel %vm792_vm11, %v3516_v30, %v3319_v15 }
 0x4f4   :  { %v2837_v5 = vpop.f32.mrb[29].mxu0 }
 0x4f5   :  { %v2838_v44 = vadd.f32 %v7391_v62, %v2837_v5 }
 0x4f6   :  { %v7435_v38 = vpop.permute.xlu0 %3164 }
 0x4f7   :  { %v2868_v41 = vmax.f32 %v2838_v44, 0.0  ;;  %3234 = vrot.lane.b32.xlu0 %v3012_v63, %s4506_s22  ;;  %3377 = vrot.lane.b32.xlu1 %v3009_v1, %s4515_s11  ;;  %v2843_v1 = vadd.f32 %v7391_v62, %v4320_v7 }
 0x4f9   :  { %v2900_v6 = vrot.slane %v2868_v41, 7  ;;  %v7443_v35 = vpop.permute.xlu1 %3032  ;;  %v2869_v49 = vmax.f32 %v2843_v1, 0.0 }
 0x4fa   :  { %v3364_v3 = vpop.permute.xlu0 %3363 }
 0x4fb   :  { %3422 = vrot.lane.b32.xlu0 %v3096_v11, %s4517_s7  ;;  %v7452_v42 = vsel %vm100_vm0, 0.0, %v2900_v6  ;;  %v2948_v24 = vsel %vm100_vm0, %v2900_v6, 0.0  ;;  %3044 = vrot.lane.b32.xlu1 %v3012_v63, %s4511_s13  ;;  %v3549_v48 = vsel %vm3546_vm9, %v3532_v31, %v3364_v3  ;;  %v2901_v40 = vrot.slane %v2869_v49, 7 }
 0x4fc   :  { %v7456_v45 = vpop.f32.mrb[30].mxu0  ;;  %v3014_v36 = vrot.slane %v2948_v24, 1  ;;  %v3013_v22 = vrot.slane %v7452_v42, 1  ;;  %v3101_v54 = vrot.slane %v2948_v24, 2  ;;  %v3100_v21 = vrot.slane %v7452_v42, 2 }
 0x4fd   :  { %v2847_v53 = vpop.f32.mrb[31].mxu0  ;;  %v3273_v51 = vpop.permute.xlu1 %3272  ;;  %v7503_v9 = vsel %vm100_vm0, 0.0, %v2901_v40  ;;  %v2949_v7 = vsel %vm100_vm0, %v2901_v40, 0.0 }
 0x4fe   :  { %v7461_v52 = vpop.permute.xlu0 %3220  ;;  %v3015_v50 = vsel %vm165_vm1, %v3013_v22, %v3014_v36  ;;  %v3102_v4 = vsel %vm256_vm2, %v3100_v21, %v3101_v54  ;;  %v3017_v61 = vrot.slane %v2949_v7, 1  ;;  %v3016_v6 = vrot.slane %v7503_v9, 1 }
 0x4ff   :  { %3131 = vrot.lane.b32.xlu0 %v3099_v37, %s4503_s18  ;;  %3286 = vrot.lane.b32.xlu1 %v3096_v11, %s4514_s26  ;;  %v3500_v11 = vsel %vm725_vm8, %v3484_v33, %v7404_v16  ;;  %v2848_v16 = vadd.f32 %v7391_v62, %v2847_v53  ;;  %v3104_v24 = vrot.slane %v2949_v7, 2  ;;  %v3103_v30 = vrot.slane %v7503_v9, 2 }
 0x500   :  { %v3517_v59 = vsel %vm3513_vm6, %v3500_v11, %v3273_v51  ;;  %v3018_v25 = vsel %vm165_vm1, %v3016_v6, %v3017_v61  ;;  %v3469_v51 = vsel %vm674_vm5, %v3454_v43, %v7419_v19  ;;  %v2853_v21 = vadd.f32 %v7391_v62, %v7456_v45 }
 0x501   :  { %v7469_v28 = vpop.permute.xlu1 %3119  ;;  %v2870_v2 = vmax.f32 %v2848_v16, 0.0  ;;  %v3105_v19 = vsel %vm256_vm2, %v3103_v30, %v3104_v24 }
 0x502   :  { %v3409_v57 = vpop.permute.xlu0 %3408 }
 0x503   :  { %v3566_v26 = vsel %vm3563_vm10, %v3549_v48, %v3409_v57  ;;  %3334 = vrot.lane.b32.xlu0 %v7422_v47, %s4513_s25  ;;  %3046 = vrot.lane.b32.xlu1 %v3015_v50, %s4511_s13  ;;  %v2902_v58 = vrot.slane %v2870_v2, 7 }
 0x504   :  { %4355 = vmatprep.mubr.msk.f32.mxu1 %vm3601_vm12, %v3566_v26 }
 0x505   :  { %v3321_v13 = vpop.permute.xlu1 %3320  ;;  %v7536_v36 = vsel %vm100_vm0, 0.0, %v2902_v58  ;;  %v2950_v32 = vsel %vm100_vm0, %v2902_v58, 0.0 }
 0x506   :  { %v7483_v34 = vpop.permute.xlu0 %3222  ;;  %v3533_v14 = vsel %vm792_vm11, %v3517_v59, %v3321_v13  ;;  %v3020_v57 = vrot.slane %v2950_v32, 1  ;;  %v3107_v33 = vrot.slane %v2950_v32, 2 }
 0x507   :  { %3180 = vrot.lane.b32.xlu0 %v7452_v42, %s4512_s20  ;;  %3288 = vrot.lane.b32.xlu1 %v3099_v37, %s4514_s26 }
 0x509   :  { %v7491_v18 = vpop.permute.xlu1 %3166 }
 0x50a   :  { %v3411_v20 = vpop.permute.xlu0 %3410 }
 0x50b   :  { %3379 = vrot.lane.b32.xlu0 %v3012_v63, %s4515_s11  ;;  %3133 = vrot.lane.b32.xlu1 %v3102_v4, %s4503_s18 }
 0x50d   :  { %v3366_v15 = vpop.permute.xlu1 %3365 }
 0x50e   :  { %v7500_v56 = vpop.permute.xlu0 %3121  ;;  %v3550_v5 = vsel %vm3546_vm9, %v3533_v14, %v3366_v15  ;;  %v3455_v14 = vsel %vm3449_vm15, %v7174_v23, %v7443_v35 }
 0x50f   :  { %3236 = vrot.lane.b32.xlu0 %v3015_v50, %s4506_s22  ;;  %3336 = vrot.lane.b32.xlu1 %v7452_v42, %s4513_s25  ;;  %v3567_v44 = vsel %vm3563_vm10, %v3550_v5, %v3411_v20  ;;  %v3106_v20 = vrot.slane %v7536_v36, 2  ;;  %v3470_v5 = vsel %vm674_vm5, %v3455_v14, %v7469_v28 }
 0x510   :  { %4356 = vmatmul.mubr.msk.f32.gmra.mrb[18].mxu1 %vm3601_vm12, %v3567_v44  ;;  %v3486_v16 = vsel %vm3480_vm3, %v3470_v5, %v7491_v18 }
 0x511   :  { %v7513_v63 = vpop.permute.xlu1 %3034  ;;  %v3108_v11 = vsel %vm256_vm2, %v3106_v20, %v3107_v33  ;;  %v3502_v23 = vsel %vm725_vm8, %v3486_v16, %v7483_v34 }
 0x512   :  { %v3323_v41 = vpop.permute.xlu0 %3322 }
 0x513   :  { %3424 = vrot.lane.b32.xlu0 %v3099_v37, %s4517_s7  ;;  %3182 = vrot.lane.b32.xlu1 %v7503_v9, %s4512_s20  ;;  %v3485_v37 = vsel %vm3480_vm3, %v3469_v51, %v7435_v38  ;;  %v3019_v38 = vrot.slane %v7536_v36, 1 }
 0x514   :  { %v3501_v12 = vsel %vm725_vm8, %v3485_v37, %v7461_v52  ;;  %v7606_v37 = vld [vmem:[%s7942_s4] ss:$0 sm:$0xff] }
 0x515   :  { %v3275_v17 = vpop.permute.xlu1 %3274  ;;  %v3021_v49 = vsel %vm165_vm1, %v3019_v38, %v3020_v57 }
 0x516   :  { %v7519_v3 = vpop.permute.xlu0 %3168  ;;  %v3518_v22 = vsel %vm3513_vm6, %v3501_v12, %v3275_v17 }
 0x517   :  { %3238 = vrot.lane.b32.xlu0 %v3018_v25, %s4506_s22  ;;  %3381 = vrot.lane.b32.xlu1 %v3015_v50, %s4515_s11  ;;  %v3534_v50 = vsel %vm792_vm11, %v3518_v22, %v3323_v41 }
 0x519   :  { %v7527_v27 = vpop.permute.xlu1 %3036 }
 0x51a   :  { %v3368_v53 = vpop.permute.xlu0 %3367 }
 0x51b   :  { %3426 = vrot.lane.b32.xlu0 %v3102_v4, %s4517_s7  ;;  %3048 = vrot.lane.b32.xlu1 %v3018_v25, %s4511_s13  ;;  %v3551_v52 = vsel %vm3546_vm9, %v3534_v50, %v3368_v53 }
 0x51d   :  { %v3277_v31 = vpop.permute.xlu1 %3276 }
 0x51e   :  { %v7543_v48 = vpop.permute.xlu0 %3224  ;;  %v3519_v28 = vsel %vm3513_vm6, %v3502_v23, %v3277_v31  ;;  %v3456_v31 = vsel %vm3449_vm15, %v7205_v10, %v7513_v63 }
 0x51f   :  { %v7546_v1 = vpop.f32.mrb[0].mxu1  ;;  %3135 = vrot.lane.b32.xlu0 %v3105_v19, %s4503_s18  ;;  %3290 = vrot.lane.b32.xlu1 %v3102_v4, %s4514_s26  ;;  %v2871_v4 = vmax.f32 %v2853_v21, 0.0 }
 0x520   :  { %v1850_v26 = vpop.f32.mrb[1].mxu1 }
 0x521   :  { %v7553_v60 = vpop.permute.xlu1 %3123  ;;  %v2903_v7 = vrot.slane %v2871_v4, 7 }
 0x522   :  { %v3413_v46 = vpop.permute.xlu0 %3412 }
 0x523   :  { %v3568_v13 = vsel %vm3563_vm10, %v3551_v52, %v3413_v46  ;;  %3338 = vrot.lane.b32.xlu0 %v7503_v9, %s4513_s25  ;;  %3050 = vrot.lane.b32.xlu1 %v3021_v49, %s4511_s13  ;;  %v2951_v41 = vsel %vm100_vm0, %v2903_v7, 0.0  ;;  %v2935_v35 = vsel %vm100_vm0, 0.0, %v2903_v7  ;;  %v3471_v46 = vsel %vm674_vm5, %v3456_v31, %v7500_v56 }
 0x524   :  { %4358 = vmatprep.mubr.msk.f32.mxu1 %vm3601_vm12, %v3568_v13  ;;  %v3264_v2 = vrot.slane %v2951_v41, 2  ;;  %v3210_v58 = vrot.slane %v2951_v41, 1  ;;  %v3209_v24 = vrot.slane %v2935_v35, 1  ;;  %v3487_v13 = vsel %vm3480_vm3, %v3471_v46, %v7519_v3 }
 0x525   :  { %v3325_v54 = vpop.permute.xlu1 %3324  ;;  %vm3959_vm0 = vcmask 228352  }
 0x526   :  { %v3279_v45 = vpop.permute.xlu0 %3278  ;;  %v3535_v18 = vsel %vm792_vm11, %v3519_v28, %v3325_v54  ;;  %v3211_v22 = vsel %vm165_vm1, %v3209_v24, %v3210_v58 }
 0x527   :  { %3184 = vrot.lane.b32.xlu0 %v7536_v36, %s4512_s20  ;;  %3292 = vrot.lane.b32.xlu1 %v3105_v19, %s4514_s26 }
 0x529   :  { %v7567_v40 = vpop.permute.xlu1 %3170 }
 0x52b   :  { %v7570_v59 = vpop.f32.mrb[2].mxu1  ;;  %3383 = vrot.lane.b32.xlu0 %v3018_v25, %s4515_s11  ;;  %3137 = vrot.lane.b32.xlu1 %v3108_v11, %s4503_s18  ;;  %v3263_v25 = vrot.slane %v2935_v35, 2 }
 0x52c   :  { %v1860_v62 = vpop.f32.mrb[3].mxu1 }
 0x52d   :  { %v3370_v15 = vpop.permute.xlu1 %3369  ;;  %v3265_v12 = vsel %vm256_vm2, %v3263_v25, %v3264_v2  ;;  %v1861_v10 = vadd.f32 %v7606_v37, %v1860_v62 }
 0x52e   :  { %v3552_v17 = vsel %vm3546_vm9, %v3535_v18, %v3370_v15 }
 0x52f   :  { %3240 = vrot.lane.b32.xlu0 %v3021_v49, %s4506_s22  ;;  %3340 = vrot.lane.b32.xlu1 %v7536_v36, %s4513_s25  ;;  %v1931_v33 = vmax.f32 %v1861_v10, 0.0 }
 0x531   :  { %v7584_v44 = vpop.permute.xlu0 %3038  ;;  %v7586_v61 = vpop.permute.xlu1 %3226 }
 0x533   :  { %3428 = vrot.lane.b32.xlu0 %v3105_v19, %s4517_s7  ;;  %3186 = vrot.lane.b32.xlu1 %v2935_v35, %s4512_s20  ;;  %v1851_v19 = vadd.f32 %v7606_v37, %v1850_v26  ;;  %v3503_v26 = vsel %vm725_vm8, %v3487_v13, %v7543_v48 }
 0x534   :  { %v3520_v21 = vsel %vm3513_vm6, %v3503_v26, %v3279_v45  ;;  %v3457_v45 = vsel %vm3449_vm15, %v7269_v0, %v7527_v27  ;;  %v1866_v27 = vadd.f32 %v7570_v59, %v7606_v37 }
 0x535   :  { %v3327_v6 = vpop.permute.xlu0 %3326  ;;  %v3415_v43 = vpop.permute.xlu1 %3414  ;;  %v3472_v14 = vsel %vm674_vm5, %v3457_v45, %v7553_v60 }
 0x536   :  { %v3569_v34 = vsel %vm3563_vm10, %v3552_v17, %v3415_v43  ;;  %v3536_v56 = vsel %vm792_vm11, %v3520_v21, %v3327_v6 }
 0x537   :  { %v4266_v53 = vpop.f32.mrb[4].mxu1  ;;  %3294 = vrot.lane.b32.xlu0 %v3108_v11, %s4514_s26  ;;  %3385 = vrot.lane.b32.xlu1 %v3021_v49, %s4515_s11  ;;  %v1929_v49 = vmax.f32 %v1851_v19, 0.0 }
 0x538   :  { %4359 = vmatmul.mubr.msk.f32.gmra.mrb[20].mxu1 %vm3601_vm12, %v3569_v34  ;;  %v1870_v30 = vpop.f32.mrb[5].mxu1  ;;  %v1876_v2 = vadd.f32 %v4266_v53, %v7606_v37 }
 0x539   :  { %v7601_v51 = vpop.permute.xlu0 %3172  ;;  %v3281_v32 = vpop.permute.xlu1 %3280  ;;  %v1871_v3 = vadd.f32 %v7606_v37, %v1870_v30 }
 0x53a   :  { %v1934_v24 = vmax.f32 %v1876_v2, 0.0 }
 0x53b   :  { %3296 = vrot.lane.b32.xlu0 %v3265_v12, %s4514_s26  ;;  %3242 = vrot.lane.b32.xlu1 %v3211_v22, %s4506_s22  ;;  %v1933_v7 = vmax.f32 %v1871_v3, 0.0  ;;  %s4518_s22 = smov 28  }
 0x53d   :  { %v3372_v57 = vpop.permute.xlu0 %3371  ;;  %v7616_v38 = vpop.permute.xlu1 %3125 }
 0x53e   :  { %v4269_v50 = vpop.f32.mrb[6].mxu1  ;;  %v3553_v20 = vsel %vm3546_vm9, %v3536_v56, %v3372_v57  ;;  %v3489_v56 = vsel %vm3480_vm3, %v7351_v39, %v7601_v51  ;;  %v3458_v51 = vsel %vm3449_vm15, %v7305_v29, %v7584_v44 }
 0x53f   :  { %v1880_v52 = vpop.f32.mrb[7].mxu1  ;;  %3387 = vrot.lane.b32.xlu0 %v3211_v22, %s4515_s11  ;;  %3430 = vrot.lane.b32.xlu1 %v3108_v11, %s4517_s7  ;;  %v1856_v11 = vadd.f32 %v7546_v1, %v7606_v37  ;;  %v3488_v1 = vsel %vm3480_vm3, %v3472_v14, %v7567_v40  ;;  %v1886_v34 = vadd.f32 %v4269_v50, %v7606_v37 }
 0x540   :  { %v1881_v5 = vadd.f32 %v7606_v37, %v1880_v52  ;;  %v3504_v23 = vsel %vm725_vm8, %v3488_v1, %v7586_v61  ;;  %v1932_v61 = vmax.f32 %v1866_v27, 0.0 }
 0x541   :  { %v7625_v63 = vpop.permute.xlu0 %3228  ;;  %v7629_v54 = vpop.permute.xlu1 %3328  ;;  %v1930_v0 = vmax.f32 %v1856_v11, 0.0  ;;  %v1936_v22 = vmax.f32 %v1886_v34, 0.0 }
 0x542   :  { %v1935_v28 = vmax.f32 %v1881_v5, 0.0  ;;  %v3505_v3 = vsel %vm725_vm8, %v3489_v56, %v7625_v63 }
 0x543   :  { %3831 = vrot.lane.b32.xlu0 %v1929_v49, %s4502_s17  ;;  %3342 = vrot.lane.b32.xlu1 %v2935_v35, %s4513_s25  ;;  %v3521_v35 = vsel %vm3513_vm6, %v3504_v23, %v3281_v32 }
 0x544   :  { %v3537_v40 = vsel %vm792_vm11, %v3521_v35, %v7629_v54 }
 0x545   :  { %v3417_v4 = vpop.permute.xlu0 %3416  ;;  %v7639_v48 = vpop.permute.xlu1 %3174 }
 0x546   :  { %v3570_v62 = vsel %vm3563_vm10, %v3553_v20, %v3417_v4 }
 0x547   :  { %3835 = vrot.lane.b32.xlu0 %v1931_v33, %s4502_s17  ;;  %4361 = vmatprep.mubr.msk.f32.mxu1 %vm3601_vm12, %v3570_v62 }
 0x548   :  { %3432 = vrot.lane.b32.xlu1 %v3265_v12, %s4517_s7  ;;  %v4272_v15 = vpop.f32.mrb[8].mxu1 }
 0x549   :  { %v1890_v16 = vpop.f32.mrb[9].mxu1  ;;  %v7653_v41 = vpop.permute.xlu0 %3230  ;;  %v1896_v31 = vadd.f32 %v4272_v15, %v7606_v37 }
 0x54a   :  { %v7659_v60 = vpop.permute.xlu1 %3373  ;;  %v1891_v59 = vadd.f32 %v7606_v37, %v1890_v16  ;;  %v3473_v16 = vsel %vm674_vm5, %v3458_v51, %v7616_v38 }
 0x54b   :  { %3839 = vrot.lane.b32.xlu0 %v1933_v7, %s4502_s17  ;;  %v3554_v18 = vsel %vm3546_vm9, %v3537_v40, %v7659_v60  ;;  %v1938_v50 = vmax.f32 %v1896_v31, 0.0  ;;  %v3490_v27 = vsel %vm3480_vm3, %v3473_v16, %v7639_v48 }
 0x54c   :  { %3833 = vrot.lane.b32.xlu1 %v1930_v0, %s4502_s17  ;;  %v1937_v43 = vmax.f32 %v1891_v59, 0.0  ;;  %v3506_v35 = vsel %vm725_vm8, %v3490_v27, %v7653_v41 }
 0x54d   :  { %v7669_v6 = vpop.permute.xlu0 %3418 }
 0x54e   :  { %v7672_v17 = vpop.permute.xlu1 %3040  ;;  %v3571_v25 = vsel %vm3563_vm10, %v3554_v18, %v7669_v6 }
 0x54f   :  { %3843 = vrot.lane.b32.xlu0 %v1935_v28, %s4502_s17  ;;  %4362 = vmatmul.mubr.msk.f32.gmra.mrb[22].mxu1 %vm3601_vm12, %v3571_v25 }
 0x550   :  { %3837 = vrot.lane.b32.xlu1 %v1932_v61, %s4502_s17 }
 0x551   :  { %v7679_v58 = vpop.permute.xlu0 %3127 }
 0x552   :  { %v3283_v30 = vpop.permute.xlu1 %3282 }
 0x553   :  { %3847 = vrot.lane.b32.xlu0 %v1937_v43, %s4502_s17  ;;  %v3522_v4 = vsel %vm3513_vm6, %v3505_v3, %v3283_v30 }
 0x554   :  { %3841 = vrot.lane.b32.xlu1 %v1934_v24, %s4502_s17  ;;  %v4275_v53 = vpop.f32.mrb[10].mxu1 }
 0x555   :  { %v1900_v32 = vpop.f32.mrb[11].mxu1  ;;  %v3331_v12 = vpop.permute.xlu0 %3330  ;;  %v1906_v13 = vadd.f32 %v4275_v53, %v7606_v37 }
 0x556   :  { %v7685_v19 = vpop.permute.xlu1 %3042  ;;  %v1901_v57 = vadd.f32 %v7606_v37, %v1900_v32  ;;  %v3538_v11 = vsel %vm792_vm11, %v3522_v4, %v3331_v12 }
 0x557   :  { %v1940_v26 = vmax.f32 %v1906_v13, 0.0 }
 0x558   :  { %v1939_v52 = vmax.f32 %v1901_v57, 0.0  ;;  %3845 = vrot.lane.b32.xlu1 %v1936_v22, %s4502_s17  ;;  %v3459_v57 = vsel %vm3449_vm15, %v7334_v8, %v7672_v17  ;;  %v3460_v8 = vsel %vm3449_vm15, %v7370_v55, %v7685_v19 }
 0x559   :  { %v3177_v46 = vpop.permute.xlu0 %3176 }
 0x55a   :  { %v3285_v49 = vpop.permute.xlu1 %3284  ;;  %3851 = vrot.lane.b32.xlu0 %v1939_v52, %s4502_s17  ;;  %v3474_v52 = vsel %vm674_vm5, %v3459_v57, %v7679_v58 }
 0x55b   :  { %v3523_v29 = vsel %vm3513_vm6, %v3506_v35, %v3285_v49 }
 0x55c   :  { %3849 = vrot.lane.b32.xlu1 %v1938_v50, %s4502_s17  ;;  %v3491_v50 = vsel %vm3480_vm3, %v3474_v52, %v3177_v46 }
 0x55d   :  { %v3376_v10 = vpop.permute.xlu0 %3375 }
 0x55e   :  { %v7692_v21 = vpop.permute.xlu1 %3129  ;;  %v3555_v45 = vsel %vm3546_vm9, %v3538_v11, %v3376_v10 }
 0x55f   :  { %v3475_v17 = vsel %vm674_vm5, %v3460_v8, %v7692_v21 }
 0x560   :  { %3853 = vrot.lane.b32.xlu1 %v1940_v26, %s4502_s17 }
 0x561   :  { %v3233_v33 = vpop.permute.xlu0 %3232 }
 0x562   :  { %v3333_v20 = vpop.permute.xlu1 %3332  ;;  %v3507_v13 = vsel %vm725_vm8, %v3491_v50, %v3233_v33 }
 0x563   :  { %v3539_v44 = vsel %vm792_vm11, %v3523_v29, %v3333_v20 }
 0x564   :  { %v4278_v62 = vpop.f32.mrb[12].mxu1 }
 0x565   :  { %v1916_v14 = vadd.f32 %v4278_v62, %v7606_v37  ;;  %v1910_v15 = vpop.f32.mrb[13].mxu1  ;;  %v3421_v1 = vpop.permute.xlu0 %3420 }
 0x566   :  { %v1911_v7 = vadd.f32 %v7606_v37, %v1910_v15  ;;  %v3179_v5 = vpop.permute.xlu1 %3178  ;;  %v3572_v39 = vsel %vm3563_vm10, %v3555_v45, %v3421_v1 }
 0x567   :  { %v1942_v63 = vmax.f32 %v1916_v14, 0.0  ;;  %4364 = vmatprep.mubr.msk.f32.mxu1 %vm3601_vm12, %v3572_v39  ;;  %v3492_v58 = vsel %vm3480_vm3, %v3475_v17, %v3179_v5 }
 0x568   :  { %v1941_v0 = vmax.f32 %v1911_v7, 0.0 }
 0x569   :  { %3857 = vrot.lane.b32.xlu1 %v1942_v63, %s4502_s17  ;;  %v3235_v23 = vpop.permute.xlu0 %3234 }
 0x56a   :  { %v3378_v40 = vpop.permute.xlu1 %3377  ;;  %3855 = vrot.lane.b32.xlu0 %v1941_v0, %s4502_s17  ;;  %v3508_v33 = vsel %vm725_vm8, %v3492_v58, %v3235_v23 }
 0x56b   :  { %v3556_v28 = vsel %vm3546_vm9, %v3539_v44, %v3378_v40 }
 0x56d   :  { %v3423_v38 = vpop.permute.xlu0 %3422 }
 0x56e   :  { %v3045_v18 = vpop.permute.xlu1 %3044  ;;  %v3573_v59 = vsel %vm3563_vm10, %v3556_v28, %v3423_v38 }
 0x56f   :  { %4365 = vmatmul.mubr.msk.f32.gmra.mrb[24].mxu1 %vm3601_vm12, %v3573_v59  ;;  %v3461_v0 = vsel %vm3449_vm15, %v7422_v47, %v3045_v18 }
 0x571   :  { %v3132_v48 = vpop.permute.xlu0 %3131 }
 0x572   :  { %v3287_v61 = vpop.permute.xlu1 %3286  ;;  %v3476_v27 = vsel %vm674_vm5, %v3461_v0, %v3132_v48 }
 0x573   :  { %v3524_v10 = vsel %vm3513_vm6, %v3507_v13, %v3287_v61 }
 0x574   :  { %v4281_v2 = vpop.f32.mrb[14].mxu1 }
 0x575   :  { %v3335_v25 = vpop.permute.xlu0 %3334  ;;  %v1926_v41 = vadd.f32 %v4281_v2, %v7606_v37  ;;  %v1920_v24 = vpop.f32.mrb[15].mxu1 }
 0x576   :  { %v3047_v43 = vpop.permute.xlu1 %3046  ;;  %v1921_v34 = vadd.f32 %v7606_v37, %v1920_v24  ;;  %v3540_v26 = vsel %vm792_vm11, %v3524_v10, %v3335_v25 }
 0x577   :  { %v1944_v30 = vmax.f32 %v1926_v41, 0.0  ;;  %v3462_v48 = vsel %vm3449_vm15, %v7452_v42, %v3047_v43 }
 0x578   :  { %v1943_v53 = vmax.f32 %v1921_v34, 0.0 }
 0x579   :  { %v3181_v32 = vpop.permute.xlu0 %3180  ;;  %3861 = vrot.lane.b32.xlu1 %v1944_v30, %s4502_s17 }
 0x57a   :  { %v3289_v12 = vpop.permute.xlu1 %3288  ;;  %3859 = vrot.lane.b32.xlu0 %v1943_v53, %s4502_s17  ;;  %v3493_v23 = vsel %vm3480_vm3, %v3476_v27, %v3181_v32 }
 0x57b   :  { %v3525_v62 = vsel %vm3513_vm6, %v3508_v33, %v3289_v12 }
 0x57d   :  { %v3380_v22 = vpop.permute.xlu0 %3379 }
 0x57e   :  { %v3134_v31 = vpop.permute.xlu1 %3133  ;;  %v3557_v56 = vsel %vm3546_vm9, %v3540_v26, %v3380_v22 }
 0x57f   :  { %v3477_v25 = vsel %vm674_vm5, %v3462_v48, %v3134_v31 }
 0x581   :  { %v3237_v37 = vpop.permute.xlu0 %3236 }
 0x582   :  { %v3337_v49 = vpop.permute.xlu1 %3336  ;;  %v3509_v40 = vsel %vm725_vm8, %v3493_v23, %v3237_v37 }
 0x583   :  { %v3541_v45 = vsel %vm792_vm11, %v3525_v62, %v3337_v49 }
 0x585   :  { %v3425_v3 = vpop.permute.xlu0 %3424 }
 0x586   :  { %v3183_v20 = vpop.permute.xlu1 %3182  ;;  %v3574_v4 = vsel %vm3563_vm10, %v3557_v56, %v3425_v3 }
 0x587   :  { %4367 = vmatprep.mubr.msk.f32.mxu1 %vm3601_vm12, %v3574_v4  ;;  %v3494_v24 = vsel %vm3480_vm3, %v3477_v25, %v3183_v20 }
 0x589   :  { %v3239_v46 = vpop.permute.xlu0 %3238 }
 0x58a   :  { %v3382_v11 = vpop.permute.xlu1 %3381  ;;  %v3510_v53 = vsel %vm725_vm8, %v3494_v24, %v3239_v46 }
 0x58b   :  { %v3558_v14 = vsel %vm3546_vm9, %v3541_v45, %v3382_v11 }
 0x58d   :  { %v3427_v15 = vpop.permute.xlu0 %3426 }
 0x58e   :  { %v3049_v1 = vpop.permute.xlu1 %3048  ;;  %v3575_v55 = vsel %vm3563_vm10, %v3558_v14, %v3427_v15 }
 0x58f   :  { %4368 = vmatmul.mubr.msk.f32.gmra.mrb[26].mxu1 %vm3601_vm12, %v3575_v55  ;;  %v3463_v43 = vsel %vm3449_vm15, %v7503_v9, %v3049_v1 }
 0x591   :  { %v3136_v19 = vpop.permute.xlu0 %3135 }
 0x592   :  { %v3291_v21 = vpop.permute.xlu1 %3290  ;;  %v3478_v52 = vsel %vm674_vm5, %v3463_v43, %v3136_v19 }
 0x593   :  { %v3526_v44 = vsel %vm3513_vm6, %v3509_v40, %v3291_v21 }
 0x595   :  { %v3339_v7 = vpop.permute.xlu0 %3338 }
 0x596   :  { %v3051_v5 = vpop.permute.xlu1 %3050  ;;  %v3542_v28 = vsel %vm792_vm11, %v3526_v44, %v3339_v7 }
 0x597   :  { %v3464_v41 = vsel %vm3449_vm15, %v7536_v36, %v3051_v5 }
 0x599   :  { %v3185_v39 = vpop.permute.xlu0 %3184 }
 0x59a   :  { %v3293_v51 = vpop.permute.xlu1 %3292  ;;  %v3495_v13 = vsel %vm3480_vm3, %v3478_v52, %v3185_v39 }
 0x59b   :  { %v3527_v12 = vsel %vm3513_vm6, %v3510_v53, %v3293_v51 }
 0x59d   :  { %v3384_v63 = vpop.permute.xlu0 %3383 }
 0x59e   :  { %v3138_v16 = vpop.permute.xlu1 %3137  ;;  %v3559_v38 = vsel %vm3546_vm9, %v3542_v28, %v3384_v63 }
 0x59f   :  { %v3479_v34 = vsel %vm674_vm5, %v3464_v41, %v3138_v16 }
 0x5a1   :  { %v3241_v35 = vpop.permute.xlu0 %3240 }
 0x5a2   :  { %v3341_v29 = vpop.permute.xlu1 %3340  ;;  %v3511_v49 = vsel %vm725_vm8, %v3495_v13, %v3241_v35 }
 0x5a3   :  { %v3543_v42 = vsel %vm792_vm11, %v3527_v12, %v3341_v29 }
 0x5a5   :  { %v3429_v59 = vpop.permute.xlu0 %3428 }
 0x5a6   :  { %v3187_v61 = vpop.permute.xlu1 %3186  ;;  %v3576_v2 = vsel %vm3563_vm10, %v3559_v38, %v3429_v59 }
 0x5a7   :  { %4370 = vmatprep.mubr.msk.f32.mxu1 %vm3601_vm12, %v3576_v2  ;;  %v3496_v32 = vsel %vm3480_vm3, %v3479_v34, %v3187_v61 }
 0x5a9   :  { %v3295_v18 = vpop.permute.xlu0 %3294 }
 0x5aa   :  { %v3386_v47 = vpop.permute.xlu1 %3385  ;;  %v3528_v10 = vsel %vm3513_vm6, %v3511_v49, %v3295_v18 }
 0x5ab   :  { %v3560_v36 = vsel %vm3546_vm9, %v3543_v42, %v3386_v47 }
 0x5ad   :  { %v3297_v57 = vpop.permute.xlu0 %3296 }
 0x5ae   :  { %v3243_v30 = vpop.permute.xlu1 %3242 }
 0x5af   :  { %v3512_v22 = vsel %vm725_vm8, %v3496_v32, %v3243_v30  ;;  %v8253_v32 = vld [vmem:[#allocation19_spill] sm:$0xff] }
 0x5b0   :  { %v3529_v50 = vsel %vm3513_vm6, %v3512_v22, %v3297_v57  ;;  %v8254_v57 = vld [vmem:[#allocation11_spill] sm:$0xff] }
 0x5b1   :  { %v3545_v9 = vsel %vm792_vm11, %v3529_v50, %v7629_v54  ;;  %v3388_v3 = vpop.permute.xlu0 %3387  ;;  %v7797_v54 = vld [vmem:[%s7946_s8] ss:$0 sm:$0xff]  ;;  %s4519_s8 = smov [#allocation2]  }
 0x5b2   :  { %v3431_v31 = vpop.permute.xlu1 %3430  ;;  %v3562_v20 = vsel %vm3546_vm9, %v3545_v9, %v7659_v60  ;;  %s4013_s13 = sshll.u32 %s4519_s8, 4  ;;  %s4014_s13 = int_to_ptr.vmem [resolvable:$true] %s4013_s13 }
 0x5b3   :  { %v3577_v37 = vsel %vm3563_vm10, %v3560_v36, %v3431_v31  ;;  %v3579_v58 = vsel %vm3563_vm10, %v3562_v20, %v7669_v6  ;;  %s4476_s20 = scalar_lea.vmem %s4014_s13, 2048  ;;  %p4481_p1 = scmp.lt.s32.totalorder %s4014_s13, %s4014_s13 }
 0x5b4   :  { %4371 = vmatmul.mubr.msk.f32.gmra.mrb[28].mxu1 %vm3601_vm12, %v3577_v37  ;;  %p4477_p0 = scmp.ne.s32.totalorder %s4014_s13, %s4476_s20  ;;  %p4482_p2 = scmp.lt.s32.totalorder %s4476_s20, %s4476_s20 }
 0x5b5   :  { %v3832_v16 = vpop.permute.xlu0 %3831 }
 0x5b6   :  { %v3343_v26 = vpop.permute.xlu1 %3342  ;;  %v3943_v42 = vsel %vm658_vm4, %v8254_v57, %v3832_v16  ;;  %p4483_p3 = por %p4482_p2, %p4481_p1 }
 0x5b7   :  { %v3544_v56 = vsel %vm792_vm11, %v3528_v10, %v3343_v26 }
 0x5b8   :  { %v3561_v8 = vsel %vm3546_vm9, %v3544_v56, %v3388_v3  ;;  %v8255_v56 = vld [vmem:[#allocation7_spill] sm:$0xff]  ;;  %p4484_p4 = pnand %p4483_p3, %p4477_p0 }
 0x5b9   :  { %v3836_v23 = vpop.permute.xlu0 %3835 }
 0x5ba   :  { %v3433_v4 = vpop.permute.xlu1 %3432 }
 0x5bb   :  { %v3578_v17 = vsel %vm3563_vm10, %v3561_v8, %v3433_v4  ;;  %v8256_v4 = vld [vmem:[#allocation16_spill] sm:$0xff] }
 0x5bc   :  { %4373 = vmatprep.mubr.msk.f32.mxu1 %vm3601_vm12, %v3578_v17  ;;  %v3945_v8 = vsel %vm658_vm4, %v8256_v4, %v3836_v23 }
 0x5bd   :  { %4374 = vmatmul.mubr.msk.f32.gmra.mrb[30].mxu1 %vm3601_vm12, %v3579_v58  ;;  %v3840_v40 = vpop.permute.xlu0 %3839 }
 0x5be   :  { %v3834_v7 = vpop.permute.xlu1 %3833 }
 0x5bf   :  { %v4354_v46 = vpop.f32.mrb[16].mxu1  ;;  %v3944_v12 = vsel %vm658_vm4, %v8253_v32, %v3834_v7 }
 0x5c0   :  { %v3726_v60 = vadd.f32 %v4354_v46, %v7797_v54  ;;  %v3720_v33 = vpop.f32.mrb[17].mxu1 }
 0x5c1   :  { %v3721_v11 = vadd.f32 %v7797_v54, %v3720_v33  ;;  %v7813_v44 = vpop.permute.xlu0 %3843 }
 0x5c2   :  { %v3800_v62 = vmax.f32 %v3726_v60, 0.0  ;;  %v3838_v27 = vpop.permute.xlu1 %3837 }
 0x5c3   :  { %v3799_v45 = vmax.f32 %v3721_v11, 0.0  ;;  %v3946_v3 = vsel %vm658_vm4, %v8255_v56, %v3838_v27 }
 0x5c4   :  { %3897 = vrot.lane.b32.xlu1 %v3800_v62, %s4518_s22 }
 0x5c5   :  { %3895 = vrot.lane.b32.xlu0 %v3799_v45, %s4518_s22  ;;  %v7819_v48 = vpop.permute.xlu0 %3847 }
 0x5c6   :  { %v3842_v35 = vpop.permute.xlu1 %3841 }
 0x5ca   :  { %v7811_v29 = vpop.permute.xlu1 %3845 }
 0x5cc   :  { %v7825_v41 = vpop.permute.xlu0 %3851 }
 0x5ce   :  { %v7816_v61 = vpop.permute.xlu1 %3849 }
 0x5d2   :  { %v7823_v25 = vpop.permute.xlu1 %3853 }
 0x5db   :  { %v7827_v24 = vpop.permute.xlu1 %3857 }
 0x5dc   :  { %v7829_v34 = vpop.permute.xlu0 %3855 }
 0x5e3   :  { %v4357_v6 = vpop.f32.mrb[18].mxu1 }
 0x5e4   :  { %v3736_v14 = vadd.f32 %v4357_v6, %v7797_v54  ;;  %v3730_v15 = vpop.f32.mrb[19].mxu1 }
 0x5e5   :  { %v3731_v1 = vadd.f32 %v7797_v54, %v3730_v15 }
 0x5e6   :  { %v3802_v55 = vmax.f32 %v3736_v14, 0.0 }
 0x5e7   :  { %v3801_v19 = vmax.f32 %v3731_v1, 0.0  ;;  %v8257_v1 = vld [vmem:[#allocation20_spill] sm:$0xff] }
 0x5e8   :  { %3901 = vrot.lane.b32.xlu1 %v3802_v55, %s4518_s22  ;;  %v3948_v55 = vsel %vm658_vm4, %v8257_v1, %v3842_v35 }
 0x5e9   :  { %3899 = vrot.lane.b32.xlu0 %v3801_v19, %s4518_s22 }
 0x5eb   :  { %v7831_v30 = vpop.permute.xlu1 %3861 }
 0x5ec   :  { %v7833_v53 = vpop.permute.xlu0 %3859 }
 0x60b   :  { %v4360_v21 = vpop.f32.mrb[20].mxu1 }
 0x60c   :  { %v3746_v5 = vadd.f32 %v4360_v21, %v7797_v54  ;;  %v3740_v39 = vpop.f32.mrb[21].mxu1  ;;  %v8258_v21 = vld [vmem:[#allocation13_spill] sm:$0xff] }
 0x60d   :  { %v3741_v51 = vadd.f32 %v7797_v54, %v3740_v39  ;;  %v3947_v7 = vsel %vm658_vm4, %v8258_v21, %v3840_v40 }
 0x60e   :  { %v3804_v63 = vmax.f32 %v3746_v5, 0.0 }
 0x60f   :  { %v3803_v0 = vmax.f32 %v3741_v51, 0.0 }
 0x610   :  { %3905 = vrot.lane.b32.xlu1 %v3804_v63, %s4518_s22 }
 0x611   :  { %3903 = vrot.lane.b32.xlu0 %v3803_v0, %s4518_s22 }
 0x622   :  { %v4363_v28 = vpop.f32.mrb[22].mxu1 }
 0x623   :  { %v3756_v38 = vadd.f32 %v4363_v28, %v7797_v54  ;;  %v3750_v59 = vpop.f32.mrb[23].mxu1 }
 0x624   :  { %v3751_v2 = vadd.f32 %v7797_v54, %v3750_v59 }
 0x625   :  { %v3806_v47 = vmax.f32 %v3756_v38, 0.0 }
 0x626   :  { %v3805_v18 = vmax.f32 %v3751_v2, 0.0 }
 0x627   :  { %3909 = vrot.lane.b32.xlu1 %v3806_v47, %s4518_s22 }
 0x628   :  { %3907 = vrot.lane.b32.xlu0 %v3805_v18, %s4518_s22 }
 0x636   :  { %v3898_v22 = vpop.permute.xlu1 %3897 }
 0x637   :  { %v3961_v43 = vsel %vm3959_vm0, %v3944_v12, %v3898_v22  ;;  %v3896_v36 = vpop.permute.xlu0 %3895  ;;  %v8259_v12 = vld [vmem:[#allocation9_spill] sm:$0xff] }
 0x638   :  { %v3977_v31 = vsel %vm708_vm7, %v3961_v43, 0.0  ;;  %v3960_v52 = vsel %vm3959_vm0, %v3943_v42, %v3896_v36  ;;  %v3950_v22 = vsel %vm658_vm4, %v8259_v12, %v7811_v29  ;;  %v8260_v42 = vld [vmem:[#allocation15_spill] sm:$0xff] }
 0x639   :  { %3993 = vst [vmem:[#allocation2 + $0x8] sm:$0xff] %v3977_v31  ;;  %v3976_v50 = vsel %vm708_vm7, %v3960_v52, 0.0  ;;  %v3949_v43 = vsel %vm658_vm4, %v8260_v42, %v7813_v44 }
 0x63a   :  { %3992 = vst [vmem:[#allocation2] sm:$0xff] %v3976_v50 }
 0x642   :  { %v4366_v37 = vpop.f32.mrb[24].mxu1 }
 0x643   :  { %v3766_v13 = vadd.f32 %v4366_v37, %v7797_v54  ;;  %v3760_v49 = vpop.f32.mrb[25].mxu1  ;;  %v8261_v37 = vld [vmem:[#allocation14_spill] sm:$0xff] }
 0x644   :  { %v3761_v10 = vadd.f32 %v7797_v54, %v3760_v49  ;;  %v3952_v29 = vsel %vm658_vm4, %v8261_v37, %v7816_v61  ;;  %v8262_v49 = vld [vmem:[#allocation17_spill] sm:$0xff] }
 0x645   :  { %v3808_v9 = vmax.f32 %v3766_v13, 0.0  ;;  %v3951_v44 = vsel %vm658_vm4, %v8262_v49, %v7819_v48 }
 0x646   :  { %v3807_v26 = vmax.f32 %v3761_v10, 0.0 }
 0x647   :  { %3913 = vrot.lane.b32.xlu1 %v3808_v9, %s4518_s22 }
 0x648   :  { %3911 = vrot.lane.b32.xlu0 %v3807_v26, %s4518_s22 }
 0x65a   :  { %v3902_v20 = vpop.permute.xlu1 %3901 }
 0x65b   :  { %v3963_v17 = vsel %vm3959_vm0, %v3946_v3, %v3902_v20  ;;  %v3900_v58 = vpop.permute.xlu0 %3899  ;;  %v8263_v20 = vld [vmem:[#allocation12_spill] sm:$0xff] }
 0x65c   :  { %v3979_v46 = vsel %vm708_vm7, %v3963_v17, 0.0  ;;  %v3962_v60 = vsel %vm3959_vm0, %v3945_v8, %v3900_v58  ;;  %v3954_v61 = vsel %vm658_vm4, %v8263_v20, %v7823_v25  ;;  %v8264_v8 = vld [vmem:[#allocation8_spill] sm:$0xff] }
 0x65d   :  { %3995 = vst [vmem:[#allocation2 + $0x18] sm:$0xff] %v3979_v46  ;;  %v3978_v33 = vsel %vm708_vm7, %v3962_v60, 0.0  ;;  %v3953_v48 = vsel %vm658_vm4, %v8264_v8, %v7825_v41 }
 0x65e   :  { %3994 = vst [vmem:[#allocation2 + $0x10] sm:$0xff] %v3978_v33 }
 0x662   :  { %v4369_v11 = vpop.f32.mrb[26].mxu1 }
 0x663   :  { %v3776_v62 = vadd.f32 %v4369_v11, %v7797_v54  ;;  %v3770_v45 = vpop.f32.mrb[27].mxu1  ;;  %v8265_v11 = vld [vmem:[#allocation18_spill] sm:$0xff] }
 0x664   :  { %v3771_v6 = vadd.f32 %v7797_v54, %v3770_v45  ;;  %v3956_v25 = vsel %vm658_vm4, %v8265_v11, %v7827_v24  ;;  %v8266_v45 = vld [vmem:[#allocation21_spill] sm:$0xff]  ;;  %v8267_v24 = vld [vmem:[#allocation22_spill] sm:$0xff] }
 0x665   :  { %v3810_v14 = vmax.f32 %v3776_v62, 0.0  ;;  %v3955_v41 = vsel %vm658_vm4, %v8266_v45, %v7829_v34  ;;  %v8268_v34 = vld [vmem:[#allocation23_spill] sm:$0xff] }
 0x666   :  { %v3809_v15 = vmax.f32 %v3771_v6, 0.0 }
 0x667   :  { %3917 = vrot.lane.b32.xlu1 %v3810_v14, %s4518_s22 }
 0x668   :  { %3915 = vrot.lane.b32.xlu0 %v3809_v15, %s4518_s22 }
 0x682   :  { %v3906_v19 = vpop.permute.xlu1 %3905 }
 0x683   :  { %v3965_v5 = vsel %vm3959_vm0, %v3948_v55, %v3906_v19  ;;  %v3904_v39 = vpop.permute.xlu0 %3903  ;;  %v3958_v19 = vsel %vm658_vm4, %v8267_v24, %v7831_v30 }
 0x684   :  { %v3981_v51 = vsel %vm708_vm7, %v3965_v5, 0.0  ;;  %v3964_v63 = vsel %vm3959_vm0, %v3947_v7, %v3904_v39  ;;  %v3957_v7 = vsel %vm658_vm4, %v8268_v34, %v7833_v53 }
 0x685   :  { %3997 = vst [vmem:[#allocation2 + $0x28] sm:$0xff] %v3981_v51  ;;  %v3980_v16 = vsel %vm708_vm7, %v3964_v63, 0.0 }
 0x686   :  { %3996 = vst [vmem:[#allocation2 + $0x20] sm:$0xff] %v3980_v16 }
 0x687   :  { %v4372_v0 = vpop.f32.mrb[28].mxu1 }
 0x688   :  { %v3786_v27 = vadd.f32 %v4372_v0, %v7797_v54  ;;  %v3780_v23 = vpop.f32.mrb[29].mxu1 }
 0x689   :  { %v3781_v35 = vadd.f32 %v7797_v54, %v3780_v23 }
 0x68a   :  { %v3812_v28 = vmax.f32 %v3786_v27, 0.0 }
 0x68b   :  { %v3811_v38 = vmax.f32 %v3781_v35, 0.0 }
 0x68c   :  { %3921 = vrot.lane.b32.xlu1 %v3812_v28, %s4518_s22 }
 0x68d   :  { %3919 = vrot.lane.b32.xlu0 %v3811_v38, %s4518_s22 }
 0x690   :  { %v4375_v40 = vpop.f32.mrb[30].mxu1 }
 0x691   :  { %v3796_v59 = vadd.f32 %v4375_v40, %v7797_v54  ;;  %v3790_v2 = vpop.f32.mrb[31].mxu1 }
 0x692   :  { %v3791_v47 = vadd.f32 %v7797_v54, %v3790_v2 }
 0x693   :  { %v3814_v18 = vmax.f32 %v3796_v59, 0.0 }
 0x694   :  { %v3813_v32 = vmax.f32 %v3791_v47, 0.0 }
 0x695   :  { %3925 = vrot.lane.b32.xlu1 %v3814_v18, %s4518_s22 }
 0x696   :  { %3923 = vrot.lane.b32.xlu0 %v3813_v32, %s4518_s22 }
 0x699   :  { %v3910_v57 = vpop.permute.xlu1 %3909 }
 0x69a   :  { %v3967_v36 = vsel %vm3959_vm0, %v3950_v22, %v3910_v57  ;;  %v3908_v31 = vpop.permute.xlu0 %3907 }
 0x69b   :  { %v3983_v54 = vsel %vm708_vm7, %v3967_v36, 0.0  ;;  %v3966_v52 = vsel %vm3959_vm0, %v3949_v43, %v3908_v31 }
 0x69c   :  { %3999 = vst [vmem:[#allocation2 + $0x38] sm:$0xff] %v3983_v54  ;;  %v3982_v50 = vsel %vm708_vm7, %v3966_v52, 0.0 }
 0x69d   :  { %3998 = vst [vmem:[#allocation2 + $0x30] sm:$0xff] %v3982_v50 }
 0x6b9   :  { %v3914_v13 = vpop.permute.xlu1 %3913 }
 0x6ba   :  { %v3969_v10 = vsel %vm3959_vm0, %v3952_v29, %v3914_v13  ;;  %v3912_v9 = vpop.permute.xlu0 %3911 }
 0x6bb   :  { %v3985_v26 = vsel %vm708_vm7, %v3969_v10, 0.0  ;;  %v3968_v56 = vsel %vm3959_vm0, %v3951_v44, %v3912_v9 }
 0x6bc   :  { %4001 = vst [vmem:[#allocation2 + $0x48] sm:$0xff] %v3985_v26  ;;  %v3984_v3 = vsel %vm708_vm7, %v3968_v56, 0.0 }
 0x6bd   :  { %4000 = vst [vmem:[#allocation2 + $0x40] sm:$0xff] %v3984_v3 }
 0x6d9   :  { %v3918_v4 = vpop.permute.xlu1 %3917 }
 0x6da   :  { %v3971_v17 = vsel %vm3959_vm0, %v3954_v61, %v3918_v4  ;;  %v3916_v58 = vpop.permute.xlu0 %3915 }
 0x6db   :  { %v3987_v46 = vsel %vm708_vm7, %v3971_v17, 0.0  ;;  %v3970_v60 = vsel %vm3959_vm0, %v3953_v48, %v3916_v58 }
 0x6dc   :  { %4003 = vst [vmem:[#allocation2 + $0x58] sm:$0xff] %v3987_v46  ;;  %v3986_v33 = vsel %vm708_vm7, %v3970_v60, 0.0 }
 0x6dd   :  { %4002 = vst [vmem:[#allocation2 + $0x50] sm:$0xff] %v3986_v33 }
 0x6fe   :  { %v3922_v62 = vpop.permute.xlu1 %3921 }
 0x6ff   :  { %v3973_v6 = vsel %vm3959_vm0, %v3956_v25, %v3922_v62  ;;  %v3920_v14 = vpop.permute.xlu0 %3919 }
 0x700   :  { %v3989_v15 = vsel %vm708_vm7, %v3973_v6, 0.0  ;;  %v3972_v1 = vsel %vm3959_vm0, %v3955_v41, %v3920_v14 }
 0x701   :  { %4005 = vst [vmem:[#allocation2 + $0x68] sm:$0xff] %v3989_v15  ;;  %v3988_v55 = vsel %vm708_vm7, %v3972_v1, 0.0 }
 0x702   :  { %4004 = vst [vmem:[#allocation2 + $0x60] sm:$0xff] %v3988_v55 }
 0x707   :  { %v3926_v21 = vpop.permute.xlu1 %3925 }
 0x708   :  { %v3975_v5 = vsel %vm3959_vm0, %v3958_v19, %v3926_v21  ;;  %v3924_v39 = vpop.permute.xlu0 %3923 }
 0x709   :  { %v3991_v51 = vsel %vm708_vm7, %v3975_v5, 0.0  ;;  %v3974_v63 = vsel %vm3959_vm0, %v3957_v7, %v3924_v39 }
 0x70a   :  { %4007 = vst [vmem:[#allocation2 + $0x78] sm:$0xff] %v3991_v51  ;;  %v3990_v16 = vsel %vm708_vm7, %v3974_v63, 0.0 }
 0x70b   :  { %4006 = vst [vmem:[#allocation2 + $0x70] sm:$0xff] %v3990_v16 }
 0x70c   :  { %4487 = shalt.err (!%p4484_p4)
}
 0x70d   :  { %s4488_s11 = scalar_lea.hbm %s7947_s9, 2048 }
 0x70e   :  { %p4489_p5 = scmp.ne.s32.totalorder %s7947_s9, %s4488_s11  ;;  %p4492_p6 = scmp.lt.u32.totalorder %s4488_s11, %s7947_s9 }
 0x710   :  { %p4494_p7 = pnand %p4492_p6, %p4489_p5 }
 0x712   :  { %4497 = shalt.err (!%p4494_p7)
}
 0x713   :  { %s4520_s12 = smov 128  }
 0x714   :  { %4019 = dma.vmem_to_hbm [thread:$0]  %s4014_s13, 2048, %s7947_s9, [#allocation3], %s4520_s12, %s4520_s12, %s4501_s21  }
 0x715   :  { %4498 = dma.done.wait [#allocation3], 2048  }
 0x716   :  { %4499 = vsyncadd [#allocation3], 4294965248 }
 0x717   :  { %4023 = vsyncpa [#allocation3], 1 }

</bundles_post_ra>
